<compile_context>
chip_gen: v7x
topology: tpu7x:2x2x1
jax: 0.10.0
libtpu: 0.0.40
codegen_flags: <defaults>
</compile_context>

<pallas_src>
import functools

import jax
import jax.numpy as jnp
from jax import lax
from jax.experimental import pallas as pl
from jax.experimental.pallas import tpu as pltpu

BN_EPS = 1e-5


def _round_up(x, m):
    return ((x + m - 1) // m) * m


def _divisor_tile(m, cap):
    """Largest multiple of 8 that divides m and is <= cap (m a multiple of 8)."""
    if m % 8:
        return m
    t = min(cap, m)
    t -= t % 8
    t = max(t, 8)
    while m % t:
        t -= 8
    return t


def _tpu_generation():
    try:
        kind = jax.devices()[0].device_kind
    except Exception:
        return 6
    for ch in kind:
        if ch.isdigit():
            return int(ch)
    return 6


_GEN = _tpu_generation()
# Generation-dependent matmul tiles (see module docstring).
_TN_MAX = 256 if _GEN <= 5 else 512
_TM_MAX = 256 if _GEN <= 5 else 128
_VMEM_LIMIT = (64 << 20) if _GEN <= 6 else (40 << 20)
# Only CORE_PARALLEL actually shards a grid axis across v7x's two TensorCores.
_PARALLEL = getattr(pltpu, "CORE_PARALLEL", "parallel") if _GEN >= 7 else "parallel"


# ----------------------------------------------------------------------------
# Pallas kernels
# ----------------------------------------------------------------------------
def _mm_stats_kernel(a_ref, b_ref, o_ref, sum_ref, sq_ref):
    """(tm x K) @ (K x tn) tile; fused per-channel sum / sum-of-squares epilogue."""
    i = pl.program_id(1)                       # row-block index (inner, arbitrary)
    y = jnp.dot(a_ref[...], b_ref[...], preferred_element_type=jnp.float32)
    o_ref[...] = y.astype(o_ref.dtype)
    s = jnp.sum(y, axis=0, keepdims=True)
    q = jnp.sum(y * y, axis=0, keepdims=True)

    @pl.when(i == 0)
    def _():
        sum_ref[...] = s
        sq_ref[...] = q

    @pl.when(i > 0)
    def _():
        sum_ref[...] += s
        sq_ref[...] += q


def _mm_stats_pro_kernel(a_ref, s_ref, t_ref, b_ref, o_ref, sum_ref, sq_ref,
                         *, tm, m_true):
    """Same as _mm_stats_kernel but with BN-affine+ReLU fused into the A tile."""
    i = pl.program_id(1)
    a = jnp.maximum(a_ref[...].astype(jnp.float32) * s_ref[...] + t_ref[...], 0.0)
    if m_true is not None:
        # padded rows must stay zero so they do not pollute the batch stats
        rows = i * tm + lax.broadcasted_iota(jnp.int32, (tm, 1), 0)
        a = jnp.where(rows < m_true, a, 0.0)
    y = jnp.dot(a.astype(jnp.bfloat16), b_ref[...],
                preferred_element_type=jnp.float32)
    o_ref[...] = y.astype(o_ref.dtype)
    s = jnp.sum(y, axis=0, keepdims=True)
    q = jnp.sum(y * y, axis=0, keepdims=True)

    @pl.when(i == 0)
    def _():
        sum_ref[...] = s
        sq_ref[...] = q

    @pl.when(i > 0)
    def _():
        sum_ref[...] += s
        sq_ref[...] += q


def _conv3x3_kernel(x_ref, w_ref, s_ref, t_ref, y_ref, sum_ref, sq_ref,
                    xpad_ref, *, Ho, Wo):
    """Implicit-GEMM 3x3 / stride-1 / pad-1 conv over one image.

    The previous layer's BN affine + ReLU and the spatial zero-padding are
    fused into the prologue (the raw conv output is what lives in HBM); the
    9 taps are 9 MXU matmuls over static slices of a VMEM-resident padded
    image tile, so no im2col patch matrix ever touches HBM.
    """
    n = pl.program_id(1)
    C = x_ref.shape[3]

    @pl.when(n == 0)
    def _():
        xpad_ref[...] = jnp.zeros_like(xpad_ref)   # border stays zero afterwards

    xv = x_ref[0].astype(jnp.float32)              # (Ho, Wo, C) raw conv output
    xv = jnp.maximum(xv * s_ref[0] + t_ref[0], 0.0)
    xpad_ref[1:Ho + 1, 1:Wo + 1, :] = xv

    acc = jnp.zeros((Ho * Wo, y_ref.shape[2]), jnp.float32)
    for kh in range(3):
        for kw in range(3):
            a = xpad_ref[kh:kh + Ho, kw:kw + Wo, :]
            a = a.reshape(Ho * Wo, C).astype(jnp.bfloat16)
            acc = acc + jnp.dot(a, w_ref[kh * 3 + kw],
                                preferred_element_type=jnp.float32)
    y_ref[0] = acc.astype(y_ref.dtype)
    s = jnp.sum(acc, axis=0, keepdims=True)
    q = jnp.sum(acc * acc, axis=0, keepdims=True)

    @pl.when(n == 0)
    def _():
        sum_ref[...] = s
        sq_ref[...] = q

    @pl.when(n > 0)
    def _():
        sum_ref[...] += s
        sq_ref[...] += q


def _bn_kernel(x_ref, s_ref, t_ref, o_ref, *, relu):
    y = x_ref[...].astype(jnp.float32) * s_ref[...] + t_ref[...]
    if relu:
        y = jnp.maximum(y, 0.0)
    o_ref[...] = y.astype(o_ref.dtype)


def _bn_res_kernel(x_ref, r_ref, s_ref, t_ref, o_ref, *, relu):
    y = (x_ref[...].astype(jnp.float32) * s_ref[...] + t_ref[...]
         + r_ref[...].astype(jnp.float32))
    if relu:
        y = jnp.maximum(y, 0.0)
    o_ref[...] = y.astype(o_ref.dtype)


def _bn_res_aff_kernel(x_ref, r_ref, s_ref, t_ref, rs_ref, rt_ref, o_ref, *, relu):
    # main-branch BN + downsample-branch BN + residual add + ReLU in one pass
    y = (x_ref[...].astype(jnp.float32) * s_ref[...] + t_ref[...]
         + r_ref[...].astype(jnp.float32) * rs_ref[...] + rt_ref[...])
    if relu:
        y = jnp.maximum(y, 0.0)
    o_ref[...] = y.astype(o_ref.dtype)


def _avgpool_kernel(x_ref, o_ref):
    o_ref[...] = jnp.mean(x_ref[...].astype(jnp.float32), axis=1)


def _fc_kernel(x_ref, w_ref, b_ref, o_ref):
    o_ref[...] = (jnp.dot(x_ref[...], w_ref[...],
                          preferred_element_type=jnp.float32) + b_ref[...])


# ----------------------------------------------------------------------------
# Pallas wrappers
# ----------------------------------------------------------------------------
def matmul_stats(a, b, *, prologue=None, m_true=None):
    """y = a @ b (bf16 operands, f32 acc) plus per-column sum / sum-of-squares.

    a: (M, K); b: (K, Np) bf16 with Np % 128 == 0.  If `prologue=(scale, shift)`
    is given, relu(a*scale+shift) is applied to every A tile before the dot
    (the previous layer's BN fused into this matmul).  Returns
    y:(Mp,Np) bf16, sum:(1,Np) f32, sumsq:(1,Np) f32 with Mp = round_up(M, 8).
    """
    M, K = a.shape
    Np = b.shape[1]
    a = a.astype(jnp.bfloat16)
    Mp = _round_up(M, 8)
    if Mp != M:
        a = jnp.pad(a, ((0, Mp - M), (0, 0)))
    tm = _divisor_tile(Mp, _TM_MAX)
    tn = min(_TN_MAX, Np)
    grid = (Np // tn, Mp // tm)                # channel blocks outer, rows inner

    if prologue is None:
        kern = _mm_stats_kernel
        in_specs = [pl.BlockSpec((tm, K), lambda j, i: (i, 0)),
                    pl.BlockSpec((K, tn), lambda j, i: (0, j))]
        args = (a, b)
    else:
        scale, shift = prologue
        mask_m = m_true if (m_true is not None and m_true != Mp) else None
        kern = functools.partial(_mm_stats_pro_kernel, tm=tm, m_true=mask_m)
        in_specs = [pl.BlockSpec((tm, K), lambda j, i: (i, 0)),
                    pl.BlockSpec((1, K), lambda j, i: (0, 0)),
                    pl.BlockSpec((1, K), lambda j, i: (0, 0)),
                    pl.BlockSpec((K, tn), lambda j, i: (0, j))]
        args = (a, scale, shift, b)

    y, ssum, ssq = pl.pallas_call(
        kern,
        out_shape=(jax.ShapeDtypeStruct((Mp, Np), jnp.bfloat16),
                   jax.ShapeDtypeStruct((1, Np), jnp.float32),
                   jax.ShapeDtypeStruct((1, Np), jnp.float32)),
        grid_spec=pltpu.PrefetchScalarGridSpec(
            num_scalar_prefetch=0,
            grid=grid,
            in_specs=in_specs,
            out_specs=(pl.BlockSpec((tm, tn), lambda j, i: (i, j)),
                       pl.BlockSpec((1, tn), lambda j, i: (0, j)),
                       pl.BlockSpec((1, tn), lambda j, i: (0, j))),
        ),
        compiler_params=pltpu.CompilerParams(
            dimension_semantics=(_PARALLEL, "arbitrary"),
            vmem_limit_bytes=_VMEM_LIMIT),
    )(*args)
    return y, ssum, ssq


def conv3x3_s1(x, w_flat, in_scale, in_shift):
    """3x3 / stride-1 / pad-1 conv as implicit GEMM with fused BN+ReLU prologue.

    x: (N, H, W, C) bf16 raw previous-conv output; w_flat: (9*C, Cout_p) bf16
    in (kh, kw, cin) row order; in_scale/in_shift: (1, C) f32.
    Returns y:(N, H*W, Cout_p) bf16, sum:(1,Cout_p), sumsq:(1,Cout_p).
    """
    N, H, W, C = x.shape
    Cout_p = w_flat.shape[1]
    w9 = w_flat.reshape(9, C, Cout_p)
    tn = min(_TN_MAX, Cout_p)
    grid = (Cout_p // tn, N)

    kern = functools.partial(_conv3x3_kernel, Ho=H, Wo=W)
    y, ssum, ssq = pl.pallas_call(
        kern,
        out_shape=(jax.ShapeDtypeStruct((N, H * W, Cout_p), jnp.bfloat16),
                   jax.ShapeDtypeStruct((1, Cout_p), jnp.float32),
                   jax.ShapeDtypeStruct((1, Cout_p), jnp.float32)),
        grid_spec=pltpu.PrefetchScalarGridSpec(
            num_scalar_prefetch=0,
            grid=grid,
            in_specs=[pl.BlockSpec((1, H, W, C), lambda j, n: (n, 0, 0, 0)),
                      pl.BlockSpec((9, C, tn), lambda j, n: (0, 0, j)),
                      pl.BlockSpec((1, C), lambda j, n: (0, 0)),
                      pl.BlockSpec((1, C), lambda j, n: (0, 0))],
            out_specs=(pl.BlockSpec((1, H * W, tn), lambda j, n: (n, 0, j)),
                       pl.BlockSpec((1, tn), lambda j, n: (0, j)),
                       pl.BlockSpec((1, tn), lambda j, n: (0, j))),
            scratch_shapes=[pltpu.VMEM((H + 2, W + 2, C), jnp.float32)]),
        compiler_params=pltpu.CompilerParams(
            dimension_semantics=(_PARALLEL, "arbitrary"),
            vmem_limit_bytes=_VMEM_LIMIT),
    )(x.astype(jnp.bfloat16), w9, in_scale, in_shift)
    return y, ssum, ssq


def bn_affine(y, scale, shift, *, relu, res=None, res_scale=None, res_shift=None):
    """out = [relu](y*scale + shift [+ res | + res*res_scale + res_shift]).

    y: (Mp, Np) bf16; scale/shift (and res_scale/res_shift): (1, Np) f32.
    Lane-dense tiles of ~2 MiB per input.
    """
    Mp, Np = y.shape
    cap = max(8, min(4096, (2 << 20) // (Np * 2)))
    tm = _divisor_tile(Mp, cap)
    tile = pl.BlockSpec((tm, Np), lambda i: (i, 0))
    vec = pl.BlockSpec((1, Np), lambda i: (0, 0))
    if res is None:
        kern = functools.partial(_bn_kernel, relu=relu)
        in_specs = [tile, vec, vec]
        args = (y, scale, shift)
    else:
        if res.shape[0] != Mp:
            res = jnp.pad(res, ((0, Mp - res.shape[0]), (0, 0)))
        if res_scale is None:
            kern = functools.partial(_bn_res_kernel, relu=relu)
            in_specs = [tile, tile, vec, vec]
            args = (y, res, scale, shift)
        else:
            kern = functools.partial(_bn_res_aff_kernel, relu=relu)
            in_specs = [tile, tile, vec, vec, vec, vec]
            args = (y, res, scale, shift, res_scale, res_shift)
    return pl.pallas_call(
        kern,
        out_shape=jax.ShapeDtypeStruct((Mp, Np), jnp.bfloat16),
        grid_spec=pltpu.PrefetchScalarGridSpec(
            num_scalar_prefetch=0,
            grid=(Mp // tm,),
            in_specs=in_specs,
            out_specs=tile,
        ),
        compiler_params=pltpu.CompilerParams(
            dimension_semantics=(_PARALLEL,),
            vmem_limit_bytes=_VMEM_LIMIT),
    )(*args)


def global_avg_pool(x):
    """x:(N, HW, C) bf16 -> (N, C) f32 (adaptive avg pool to 1x1)."""
    N, HW, C = x.shape
    return pl.pallas_call(
        _avgpool_kernel,
        out_shape=jax.ShapeDtypeStruct((N, C), jnp.float32),
        grid=(1,),
        in_specs=[pl.BlockSpec((N, HW, C), lambda i: (0, 0, 0))],
        out_specs=pl.BlockSpec((N, C), lambda i: (0, 0)),
    )(x)


def fc_layer(x, w, b):
    """x:(N,K) f32, w:(K,Np) f32, b:(1,Np) f32 -> (N,Np) f32 (bf16 MXU operands)."""
    N, K = x.shape
    Np = w.shape[1]
    Mp = _round_up(N, 8)
    if Mp != N:
        x = jnp.pad(x, ((0, Mp - N), (0, 0)))
    out = pl.pallas_call(
        _fc_kernel,
        out_shape=jax.ShapeDtypeStruct((Mp, Np), jnp.float32),
        grid=(1,),
        in_specs=[pl.BlockSpec((Mp, K), lambda i: (0, 0)),
                  pl.BlockSpec((K, Np), lambda i: (0, 0)),
                  pl.BlockSpec((1, Np), lambda i: (0, 0))],
        out_specs=pl.BlockSpec((Mp, Np), lambda i: (0, 0)),
    )(x.astype(jnp.bfloat16), w.astype(jnp.bfloat16), b)
    return out[:N]


# ----------------------------------------------------------------------------
# Plain-JAX glue
# ----------------------------------------------------------------------------
def _bn_scale_shift(ssum, ssq, m, gamma, beta):
    # TODO(synk): variance via E[x^2]-E[x]^2 in f32 can lose precision for
    # large-magnitude activations (clamped to >= 0).
    mean = ssum / float(m)
    var = jnp.maximum(ssq / float(m) - mean * mean, 0.0)
    scale = gamma * lax.rsqrt(var + BN_EPS)
    shift = beta - mean * scale
    return scale, shift


def im2col(x, ksize, stride, pad):
    """x:(N,H,W,C) -> (N,Ho,Wo,ksize*ksize*C), patch order (kh, kw, c).

    Only used for the 7x7/s2 stem and the three 3x3/s2 convs; all other 3x3
    convs use the implicit-GEMM Pallas kernel.
    """
    N, H, W, C = x.shape
    if pad:
        x = jnp.pad(x, ((0, 0), (pad, pad), (pad, pad), (0, 0)))
    Hp, Wp = H + 2 * pad, W + 2 * pad
    Ho = (Hp - ksize) // stride + 1
    Wo = (Wp - ksize) // stride + 1
    cols = []
    for i in range(ksize):
        for j in range(ksize):
            cols.append(x[:, i:i + stride * (Ho - 1) + 1:stride,
                          j:j + stride * (Wo - 1) + 1:stride, :])
    patches = cols[0] if len(cols) == 1 else jnp.concatenate(cols, axis=-1)
    return patches, Ho, Wo


def maxpool_3x3_s2(x):
    # TODO(synk): 3x3/s2 max pool uses XLA's fused reduce_window rather than a
    # Pallas kernel; this avoids materializing a 9x patch tensor in HBM.
    return lax.reduce_window(x, jnp.asarray(-jnp.inf, x.dtype), lax.max,
                             window_dimensions=(1, 3, 3, 1),
                             window_strides=(1, 2, 2, 1),
                             padding=((0, 0), (1, 1), (1, 1), (0, 0)))


# ----------------------------------------------------------------------------
# Parameters (pre-transposed / channel-padded / bf16 at init)
# ----------------------------------------------------------------------------
def init_conv_weight(key, cout, cin, k, cin_p, cout_p):
    """He-init conv weight, pre-transformed to (k*k*cin_p, cout_p) bf16."""
    fan_in = cin * k * k
    std = (2.0 / fan_in) ** 0.5
    w = jax.random.normal(key, (cout, cin, k, k), jnp.float32) * std
    w = jnp.transpose(w, (2, 3, 1, 0))                     # (k, k, cin, cout)
    w = jnp.pad(w, ((0, 0), (0, 0), (0, cin_p - cin), (0, cout_p - cout)))
    return w.reshape(k * k * cin_p, cout_p).astype(jnp.bfloat16)


def init_bn_params(key, c, c_p):
    k1, k2 = jax.random.split(key)
    gamma = 1.0 + 0.1 * jax.random.normal(k1, (c,), jnp.float32)
    beta = 0.1 * jax.random.normal(k2, (c,), jnp.float32)
    gamma = jnp.pad(gamma, (0, c_p - c)).reshape(1, c_p)   # padded channels -> 0
    beta = jnp.pad(beta, (0, c_p - c)).reshape(1, c_p)
    return gamma, beta


def make_bottleneck_params(key, inplanes, planes, downsample):
    in_p = _round_up(inplanes, 128)
    mid_p = _round_up(planes, 128)
    out_p = _round_up(planes * 4, 128)
    keys = jax.random.split(key, 8)
    p = {
        "conv1": init_conv_weight(keys[0], planes, inplanes, 1, in_p, mid_p),
        "bn1": init_bn_params(keys[1], planes, mid_p),
        "conv2": init_conv_weight(keys[2], planes, planes, 3, mid_p, mid_p),
        "bn2": init_bn_params(keys[3], planes, mid_p),
        "conv3": init_conv_weight(keys[4], planes * 4, planes, 1, mid_p, out_p),
        "bn3": init_bn_params(keys[5], planes * 4, out_p),
    }
    if downsample:
        p["down_conv"] = init_conv_weight(keys[6], planes * 4, inplanes, 1, in_p, out_p)
        p["down_bn"] = init_bn_params(keys[7], planes * 4, out_p)
    return p


def make_resnet50_params(key, num_classes=2):
    keys = jax.random.split(key, 4)
    params = {
        # stem cin padded 3 -> 8 so the im2col K (49*8=392) is sublane aligned
        "stem_w": init_conv_weight(keys[0], 64, 3, 7, 8, 128),
        "stem_bn": init_bn_params(keys[1], 64, 128),
    }
    layer_cfg = [(64, 3, 1), (128, 4, 2), (256, 6, 2), (512, 3, 2)]
    inplanes = 64
    blocks, cfg = [], []
    lkeys = jax.random.split(keys[2], 4)
    for (planes, nblocks, stride), lk in zip(layer_cfg, lkeys):
        bkeys = jax.random.split(lk, nblocks)
        for bi in range(nblocks):
            s = stride if bi == 0 else 1
            ds = (bi == 0) and (s != 1 or inplanes != planes * 4)
            blocks.append(make_bottleneck_params(bkeys[bi], inplanes, planes, ds))
            cfg.append(s)
            inplanes = planes * 4
    params["blocks"] = blocks
    kw, kb = jax.random.split(keys[3])
    bound = 1.0 / (2048 ** 0.5)
    nc_p = _round_up(num_classes, 128)
    fw = jax.random.uniform(kw, (num_classes, 2048), jnp.float32, -bound, bound)
    fb = jax.random.uniform(kb, (num_classes,), jnp.float32, -bound, bound)
    params["fc_w"] = jnp.pad(fw.T, ((0, 0), (0, nc_p - num_classes)))
    params["fc_b"] = jnp.pad(fb, (0, nc_p - num_classes)).reshape(1, nc_p)
    return params, tuple(cfg)


# ----------------------------------------------------------------------------
# Forward
# ----------------------------------------------------------------------------
@jax.jit
def stem_forward(x_nchw, w, gamma, beta):
    # PyTorch NCHW input -> NHWC bf16 (channels on the 128-lane axis).
    x = jnp.transpose(x_nchw, (0, 2, 3, 1)).astype(jnp.bfloat16)
    N, H, W, C = x.shape
    x = jnp.pad(x, ((0, 0), (0, 0), (0, 0), (0, 8 - C)))
    patches, Ho, Wo = im2col(x, 7, 2, 3)
    M = N * Ho * Wo
    y, s, q = matmul_stats(patches.reshape(M, 49 * 8), w)
    sc, sh = _bn_scale_shift(s, q, M, gamma, beta)
    a = bn_affine(y, sc, sh, relu=True)
    if a.shape[0] != M:
        a = a[:M]
    a = a.reshape(N, Ho, Wo, w.shape[1])
    return maxpool_3x3_s2(a)


@functools.partial(jax.jit, static_argnums=(2,))
def bottleneck_forward(x, p, stride):
    N, H, W, Cin = x.shape
    M_in = N * H * W
    Cmid = p["conv1"].shape[1]
    Cout = p["conv3"].shape[1]

    # conv1 (1x1, stride 1): raw matmul with fused batch stats
    y1, s1, q1 = matmul_stats(x.reshape(M_in, Cin), p["conv1"])
    sc1, sh1 = _bn_scale_shift(s1, q1, M_in, *p["bn1"])

    if stride == 1:
        # conv2 (3x3/s1): implicit GEMM; bn1 + ReLU + zero-pad fused in-kernel.
        if y1.shape[0] != M_in:
            y1 = y1[:M_in]
        y2, s2, q2 = conv3x3_s1(y1.reshape(N, H, W, Cmid), p["conv2"], sc1, sh1)
        Ho, Wo = H, W
        M_out = M_in
        y2 = y2.reshape(M_out, Cmid)
    else:
        # conv2 (3x3/s2): bn1 pass + im2col GEMM (only three such blocks).
        a1 = bn_affine(y1, sc1, sh1, relu=True)
        if a1.shape[0] != M_in:
            a1 = a1[:M_in]
        patches, Ho, Wo = im2col(a1.reshape(N, H, W, Cmid), 3, stride, 1)
        M_out = N * Ho * Wo
        y2, s2, q2 = matmul_stats(patches.reshape(M_out, 9 * Cmid), p["conv2"])
    sc2, sh2 = _bn_scale_shift(s2, q2, M_out, *p["bn2"])

    # conv3 (1x1): bn2 + ReLU fused into the matmul's A-tile prologue.
    y3, s3, q3 = matmul_stats(y2, p["conv3"], prologue=(sc2, sh2), m_true=M_out)
    sc3, sh3 = _bn_scale_shift(s3, q3, M_out, *p["bn3"])

    if "down_conv" in p:
        xs = x if stride == 1 else x[:, ::stride, ::stride, :]
        yd, sd, qd = matmul_stats(xs.reshape(M_out, Cin), p["down_conv"])
        scd, shd = _bn_scale_shift(sd, qd, M_out, *p["down_bn"])
        out = bn_affine(y3, sc3, sh3, relu=True,
                        res=yd, res_scale=scd, res_shift=shd)
    else:
        out = bn_affine(y3, sc3, sh3, relu=True, res=x.reshape(M_in, Cout))
    if out.shape[0] != M_out:
        out = out[:M_out]
    return out.reshape(N, Ho, Wo, Cout)


@functools.partial(jax.jit, static_argnums=(3,))
def head_forward(x, fc_w, fc_b, num_classes):
    N, H, W, C = x.shape
    pooled = global_avg_pool(x.reshape(N, H * W, C))       # (N, 2048) f32
    logits = fc_layer(pooled, fc_w, fc_b)
    return logits[:, :num_classes]


def standard_resnest_forward(x_nchw, params, cfg, num_classes=2):
    """Forward of StandardResNest: resnet50 with fc -> Linear(2048, num_classes)."""
    x = stem_forward(x_nchw, params["stem_w"], *params["stem_bn"])
    for p, stride in zip(params["blocks"], cfg):
        x = bottleneck_forward(x, p, stride)
    return head_forward(x, params["fc_w"], params["fc_b"], num_classes)


if __name__ == "__main__":
    key = jax.random.PRNGKey(0)
    k_x, k_p = jax.random.split(key)
    # small but downsample-compatible input: batch=2, 3x64x64 (NCHW like PyTorch)
    x = jax.random.normal(k_x, (2, 3, 64, 64), jnp.float32)
    params, cfg = make_resnet50_params(k_p, num_classes=2)

    logits = standard_resnest_forward(x, params, cfg, num_classes=2)
    logits = jax.block_until_ready(logits)

    assert logits.shape == (2, 2), logits.shape
    assert bool(jnp.all(jnp.isfinite(logits)))
    print("KERNEL_OK")
</pallas_src>

<mosaic_0001>
module attributes {stable_mosaic.version = 11 : i64} {
  func.func @_mm_stats_kernel(%arg0: i32, %arg1: i32, %arg2: memref<128x392xbf16, #tpu.memory_space<vmem>>, %arg3: memref<392x128xbf16, #tpu.memory_space<vmem>>, %arg4: memref<128x128xbf16, #tpu.memory_space<vmem>>, %arg5: memref<1x128xf32, #tpu.memory_space<vmem>>, %arg6: memref<1x128xf32, #tpu.memory_space<vmem>>) attributes {dimension_semantics = [#tpu.dimension_semantics<parallel>, #tpu.dimension_semantics<arbitrary>], iteration_bounds = array<i64: 1, 16>, scalar_prefetch = 0 : i64, scratch_operands = 0 : i64, tpu.core_type = #tpu.core_type<tc>, window_params = [{transform_indices = @transform_0, window_bounds = array<i64: 128, 392>}, {transform_indices = @transform_1, window_bounds = array<i64: 392, 128>}, {transform_indices = @transform_2, window_bounds = array<i64: 128, 128>}, {transform_indices = @transform_3, window_bounds = array<i64: 1, 128>}, {transform_indices = @transform_4, window_bounds = array<i64: 1, 128>}]} {
    %c0 = arith.constant 0 : index
    %c0_0 = arith.constant 0 : index
    %0 = vector.load %arg2[%c0, %c0_0] : memref<128x392xbf16, #tpu.memory_space<vmem>>, vector<128x392xbf16>
    %c0_1 = arith.constant 0 : index
    %c0_2 = arith.constant 0 : index
    %1 = vector.load %arg3[%c0_1, %c0_2] : memref<392x128xbf16, #tpu.memory_space<vmem>>, vector<392x128xbf16>
    %cst = arith.constant dense<0.000000e+00> : vector<128x128xf32>
    %2 = tpu.matmul %0, %1, %cst {dimension_numbers = #tpu.dot_dimension_numbers<[1], [0], [0], [1], [0, 0, 1, 1], [], []>} : vector<128x392xbf16>, vector<392x128xbf16>, vector<128x128xf32> -> vector<128x128xf32>
    %3 = arith.truncf %2 : vector<128x128xf32> to vector<128x128xbf16>
    %c0_3 = arith.constant 0 : index
    %c0_4 = arith.constant 0 : index
    %4 = vector.load %arg4[%c0_3, %c0_4] : memref<128x128xbf16, #tpu.memory_space<vmem>>, vector<128x128xbf16>
    tpu.vector_store %arg4[%c0_3, %c0_4], %3 {strides = array<i32>} : memref<128x128xbf16, #tpu.memory_space<vmem>>, vector<128x128xbf16>,
    %cst_5 = arith.constant dense<0.000000e+00> : vector<128xf32>
    %5 = vector.multi_reduction <add>, %2, %cst_5 [0] : vector<128x128xf32> to vector<128xf32>
    %6 = vector.shape_cast %5 : vector<128xf32> to vector<1x128xf32>
    %7 = arith.mulf %2, %2 : vector<128x128xf32>
    %cst_6 = arith.constant dense<0.000000e+00> : vector<128xf32>
    %8 = vector.multi_reduction <add>, %7, %cst_6 [0] : vector<128x128xf32> to vector<128xf32>
    %9 = vector.shape_cast %8 : vector<128xf32> to vector<1x128xf32>
    %c0_i32 = arith.constant 0 : i32
    %10 = arith.cmpi eq, %arg1, %c0_i32 : i32
    %11 = arith.extui %10 : i1 to i32
    %c0_i32_7 = arith.constant 0 : i32
    %12 = arith.cmpi ne, %11, %c0_i32_7 : i32
    scf.if %12 {
      %c0_10 = arith.constant 0 : index
      %c0_11 = arith.constant 0 : index
      %16 = vector.load %arg5[%c0_10, %c0_11] : memref<1x128xf32, #tpu.memory_space<vmem>>, vector<1x128xf32>
      tpu.vector_store %arg5[%c0_10, %c0_11], %6 {strides = array<i32>} : memref<1x128xf32, #tpu.memory_space<vmem>>, vector<1x128xf32>,
      %c0_12 = arith.constant 0 : index
      %c0_13 = arith.constant 0 : index
      %17 = vector.load %arg6[%c0_12, %c0_13] : memref<1x128xf32, #tpu.memory_space<vmem>>, vector<1x128xf32>
      tpu.vector_store %arg6[%c0_12, %c0_13], %9 {strides = array<i32>} : memref<1x128xf32, #tpu.memory_space<vmem>>, vector<1x128xf32>,
    } else {
    }
    %c0_i32_8 = arith.constant 0 : i32
    %13 = arith.cmpi sgt, %arg1, %c0_i32_8 : i32
    %14 = arith.extui %13 : i1 to i32
    %c0_i32_9 = arith.constant 0 : i32
    %15 = arith.cmpi ne, %14, %c0_i32_9 : i32
    scf.if %15 {
      %c0_10 = arith.constant 0 : index
      %c0_11 = arith.constant 0 : index
      %16 = vector.load %arg5[%c0_10, %c0_11] : memref<1x128xf32, #tpu.memory_space<vmem>>, vector<1x128xf32>
      %17 = arith.addf %16, %6 : vector<1x128xf32>
      %c0_12 = arith.constant 0 : index
      %c0_13 = arith.constant 0 : index
      %18 = vector.load %arg5[%c0_12, %c0_13] : memref<1x128xf32, #tpu.memory_space<vmem>>, vector<1x128xf32>
      tpu.vector_store %arg5[%c0_12, %c0_13], %17 {strides = array<i32>} : memref<1x128xf32, #tpu.memory_space<vmem>>, vector<1x128xf32>,
      %c0_14 = arith.constant 0 : index
      %c0_15 = arith.constant 0 : index
      %19 = vector.load %arg6[%c0_14, %c0_15] : memref<1x128xf32, #tpu.memory_space<vmem>>, vector<1x128xf32>
      %20 = arith.addf %19, %9 : vector<1x128xf32>
      %c0_16 = arith.constant 0 : index
      %c0_17 = arith.constant 0 : index
      %21 = vector.load %arg6[%c0_16, %c0_17] : memref<1x128xf32, #tpu.memory_space<vmem>>, vector<1x128xf32>
      tpu.vector_store %arg6[%c0_16, %c0_17], %20 {strides = array<i32>} : memref<1x128xf32, #tpu.memory_space<vmem>>, vector<1x128xf32>,
    } else {
    }
    return
  }
  func.func @transform_0(%arg0: i32, %arg1: i32) -> (i32, i32) {
    %c0_i32 = arith.constant 0 : i32
    %c0_i32_0 = arith.constant 0 : i32
    return %arg1, %c0_i32 : i32, i32
  }
  func.func @transform_1(%arg0: i32, %arg1: i32) -> (i32, i32) {
    %c0_i32 = arith.constant 0 : i32
    %c0_i32_0 = arith.constant 0 : i32
    return %c0_i32, %arg0 : i32, i32
  }
  func.func @transform_2(%arg0: i32, %arg1: i32) -> (i32, i32) {
    %c0_i32 = arith.constant 0 : i32
    return %arg1, %arg0 : i32, i32
  }
  func.func @transform_3(%arg0: i32, %arg1: i32) -> (i32, i32) {
    %c0_i32 = arith.constant 0 : i32
    %c0_i32_0 = arith.constant 0 : i32
    return %c0_i32, %arg0 : i32, i32
  }
  func.func @transform_4(%arg0: i32, %arg1: i32) -> (i32, i32) {
    %c0_i32 = arith.constant 0 : i32
    %c0_i32_0 = arith.constant 0 : i32
    return %c0_i32, %arg0 : i32, i32
  }
}

module attributes {stable_mosaic.version = 11 : i64} {
  func.func @_bn_kernel(%arg0: i32, %arg1: memref<2048x128xbf16, #tpu.memory_space<vmem>>, %arg2: memref<1x128xf32, #tpu.memory_space<vmem>>, %arg3: memref<1x128xf32, #tpu.memory_space<vmem>>, %arg4: memref<2048x128xbf16, #tpu.memory_space<vmem>>) attributes {dimension_semantics = [#tpu.dimension_semantics<parallel>], iteration_bounds = array<i64: 1>, scalar_prefetch = 0 : i64, scratch_operands = 0 : i64, tpu.core_type = #tpu.core_type<tc>, window_params = [{transform_indices = @transform_0, window_bounds = array<i64: 2048, 128>}, {pipeline_mode = #tpu.pipeline_mode<synchronous>, transform_indices = @transform_1, window_bounds = array<i64: 1, 128>}, {pipeline_mode = #tpu.pipeline_mode<synchronous>, transform_indices = @transform_2, window_bounds = array<i64: 1, 128>}, {transform_indices = @transform_3, window_bounds = array<i64: 2048, 128>}]} {
    %c0 = arith.constant 0 : index
    %c0_0 = arith.constant 0 : index
    %0 = vector.load %arg1[%c0, %c0_0] : memref<2048x128xbf16, #tpu.memory_space<vmem>>, vector<2048x128xbf16>
    %1 = arith.extf %0 : vector<2048x128xbf16> to vector<2048x128xf32>
    %c0_1 = arith.constant 0 : index
    %c0_2 = arith.constant 0 : index
    %2 = vector.load %arg2[%c0_1, %c0_2] : memref<1x128xf32, #tpu.memory_space<vmem>>, vector<1x128xf32>
    %3 = vector.broadcast %2 : vector<1x128xf32> to vector<2048x128xf32>
    %4 = arith.mulf %1, %3 : vector<2048x128xf32>
    %c0_3 = arith.constant 0 : index
    %c0_4 = arith.constant 0 : index
    %5 = vector.load %arg3[%c0_3, %c0_4] : memref<1x128xf32, #tpu.memory_space<vmem>>, vector<1x128xf32>
    %6 = vector.broadcast %5 : vector<1x128xf32> to vector<2048x128xf32>
    %7 = arith.addf %4, %6 : vector<2048x128xf32>
    %cst = arith.constant 0.000000e+00 : f32
    %8 = vector.broadcast %cst : f32 to vector<2048x128xf32>
    %9 = arith.maximumf %7, %8 : vector<2048x128xf32>
    %10 = arith.truncf %9 : vector<2048x128xf32> to vector<2048x128xbf16>
    %c0_5 = arith.constant 0 : index
    %c0_6 = arith.constant 0 : index
    %11 = vector.load %arg4[%c0_5, %c0_6] : memref<2048x128xbf16, #tpu.memory_space<vmem>>, vector<2048x128xbf16>
    tpu.vector_store %arg4[%c0_5, %c0_6], %10 {strides = array<i32>} : memref<2048x128xbf16, #tpu.memory_space<vmem>>, vector<2048x128xbf16>,
    return
  }
  func.func @transform_0(%arg0: i32) -> (i32, i32) {
    %c0_i32 = arith.constant 0 : i32
    %c0_i32_0 = arith.constant 0 : i32
    return %arg0, %c0_i32 : i32, i32
  }
  func.func @transform_1(%arg0: i32) -> (i32, i32) {
    %c0_i32 = arith.constant 0 : i32
    %c0_i32_0 = arith.constant 0 : i32
    %c0_i32_1 = arith.constant 0 : i32
    return %c0_i32, %c0_i32_0 : i32, i32
  }
  func.func @transform_2(%arg0: i32) -> (i32, i32) {
    %c0_i32 = arith.constant 0 : i32
    %c0_i32_0 = arith.constant 0 : i32
    %c0_i32_1 = arith.constant 0 : i32
    return %c0_i32, %c0_i32_0 : i32, i32
  }
  func.func @transform_3(%arg0: i32) -> (i32, i32) {
    %c0_i32 = arith.constant 0 : i32
    %c0_i32_0 = arith.constant 0 : i32
    return %arg0, %c0_i32 : i32, i32
  }
}

</mosaic_0001>

<bundles_post_ra>
// kernel: stem_forward.2
= control target key start
LH: loop header
LB: loop body
LE: loop exit
PB: predicated region body
PF: predicated region fallthrough
CT: control target
= control target key end

     0   :  { %10 = vsyncpa [#allocation3], 0  ;;  %s2143_s0 = inlined_call_operand.hbm [shape: bf16[2048,392], index: 0, kind: input, shape index: {}]   ;;  %s2144_s1 = inlined_call_operand.hbm [shape: bf16[392,128], index: 1, kind: input, shape index: {}]   ;;  %s2145_s2 = inlined_call_operand.hbm [shape: bf16[2048,128], index: 2, kind: output, shape index: {0}]   ;;  %s2146_s3 = inlined_call_operand.hbm [shape: f32[1,128], index: 3, kind: output, shape index: {1}]   ;;  %s2147_s4 = inlined_call_operand.hbm [shape: f32[1,128], index: 4, kind: output, shape index: {2}]  }
   0x1   :  { %12 = vsyncpa [#allocation3 + $0x1], 0 }
   0x2   :  { %13 = vsyncpa [#allocation6], 0 }
   0x3   :  { %14 = vsyncpa [#allocation4], 0 }
   0x4   :  { %16 = vsyncpa [#allocation4 + $0x1], 0 }
   0x5   :  { %17 = vsyncpa [#allocation9], 0  ;;  %s1821_s15 = smov 0   ;;  %s1823_s16 = smov 0  }
   0x6   :  { %s1825_s17 = smov 0   ;;  %s1827_s18 = smov 0  }
   0x7   :  { %s1829_s19 = smov 0   ;;  %s1831_s20 = smov 0  }
   0x8 LB: > { %s1180_s21 = sadd.s32 4294967295, %s1782_s20   ;;  %s1181_s22 = sadd.s32 4294967294, %s1782_s20   ;;  %s1782_s20 = sphi %s1831_s20, %s23_s20   ;;  %s1778_s19 = sphi %s1829_s19, %s2172_s19   ;;  %s1774_s18 = sphi %s1827_s18, %s2171_s18   ;;  %s1770_s17 = sphi %s1825_s17, %s2170_s17   ;;  %s1766_s16 = sphi %s1823_s16, %s2169_s16   ;;  %s1762_s15 = sphi %s1821_s15, %s2168_s15  }
   0x9   : > { %p55_p0 = scmp.ne.s32.totalorder %s1766_s16, %s1762_s15  ;;  %p1855_p1 = scmp.eq.s32.totalorder %s1180_s21, 0 }
   0xa   : > { %p1859_p2 = scmp.eq.s32.totalorder %s1180_s21, 15  ;;  %p113_p3 = scmp.eq.s32.totalorder %s1181_s22, 15 }
   0xb   : > { %s2153_s23 = scalar_select %p1855_p1, 1, 0 }
   0xc   : > { %s2154_s24 = scalar_select %p1859_p2, 1, 0 }
   0xd   : > { %p1865_p4 = por %p1855_p1, %p55_p0  ;;  %p1182_p5 = scmp.ge.s32.totalorder %s1782_s20, 1 }
   0xe   : > { %p1870_p6 = por %p113_p3, %p55_p0  ;;  %p172_p7 = scmp.lt.s32.totalorder %s1782_s20, 17 }
   0xf   : > { %s2155_s25 = scalar_select %p1865_p4, 1, 0 }
  0x10   : > { %s2156_s26 = scalar_select %p1870_p6, 1, 0 }
  0x11   : > { %p1875_p8 = pnand %p1182_p5, %p172_p7  ;;  %s1784_s28 = smov [#allocation5]  }
  0x12   : > { %s186_s29 = sshll.u32 %s1784_s28, 4  ;;  %s32_s5 = sadd.s32 1, %s1778_s19  ;;  %s187_s29 = int_to_ptr.vmem [resolvable:$true] %s186_s29 }
  0x13   : > { %s2157_s27 = scalar_select %p1875_p8, 1, 0 }
  0x14   : > { %p1431_p9 = pneg %p1875_p8  ;;  %s1582_s8 = scalar_lea.hbm %s2144_s1, 3136 }
  0x15   : > { %p1583_p11 = scmp.ne.s32.totalorder %s2144_s1, %s1582_s8  ;;  %p1589_p3 = scmp.lt.u32.totalorder %s1582_s8, %s2144_s1 }
  0x16   : > { %p1883_p10 = pnand %p1431_p9, %p1855_p1 }
  0x18   : > { %p1584_p12 = pneg %p1883_p10 }
  0x1a   : > { %p1585_p13 = pnand %p1584_p12, %p1583_p11 }
  0x1c   : > { %p1586_p0 = pneg %p1585_p13 }
  0x1e   : > { %p1591_p5 = pnand %p1589_p3, %p1586_p0 }
  0x20   : > { %1594 = shalt.err (!%p1591_p5)
}
  0x21   : > { %s1595_s13 = scalar_lea.vmem %s187_s29, 3136  ;;  %p1603_p1 = scmp.lt.s32.totalorder %s187_s29, %s187_s29 }
  0x22   : > { %p1596_p7 = scmp.ne.s32.totalorder %s187_s29, %s1595_s13  ;;  %p1604_p4 = scmp.lt.s32.totalorder %s1595_s13, %s1595_s13 }
  0x24   : > { %p1598_p9 = pnand %p1596_p7, %p1584_p12  ;;  %p1605_p8 = por %p1604_p4, %p1603_p1 }
  0x26   : > { %p1599_p6 = pneg %p1598_p9 }
  0x28   : > { %p1606_p2 = pnand %p1605_p8, %p1599_p6 }
  0x2a   : > { %1609 = shalt.err (!%p1606_p2)
}
  0x2b   : > { %s1785_s14 = smov 64   ;;  %s1786_s21 = smov 4  }
  0x2c   : > { %1434 = dma.hbm_to_vmem [thread:$0]  (!%p1883_p10), %s2144_s1, 3136, %s187_s29, [#allocation6], %s1785_s14, %s1785_s14, %s1786_s21  }
  0x2d   : > { %p33_p1 = scmp.ge.s32.totalorder %s32_s5, 16  ;;  %s42_s6 = sadd.s32 1, %s1770_s17 }
  0x2e   : > { %p49_p2 = scmp.ne.s32.totalorder %s1770_s17, %s1766_s16  ;;  %p50_p4 = scmp.eq.s32.totalorder %s1782_s20, 0 }
  0x2f   : > { %s2174_s5 = smov (%p33_p1, %s32_s5), 0  ;;  %p2160_p8 = scmp.ne.s32.totalorder %s2154_s24, 0 }
  0x30   : > { %p1910_p6 = por %p50_p4, %p49_p2  ;;  %s39_s30 = ssub.s32 %s1778_s19, %s2174_s5 }
  0x31   : > { %p1916_p11 = por %p2160_p8, %p49_p2  ;;  %p1444_p12 = scmp.lt.s32.totalorder %s1782_s20, 16 }
  0x32   : > { %p40_p10 = scmp.eq.s32.totalorder %s39_s30, 0  ;;  %s200_s29 = sand.u32 1, %s1770_s17  }
  0x33   : > { %s1185_s9 = sshll.u32 %s200_s29, 8  ;;  %s1286_s11 = sshll.u32 %s1778_s19, 12 }
  0x34   : > { %s1925_s10 = scalar_select %p40_p10, %s1770_s17, %s42_s6  }
  0x35   : > { %s1931_s14 = scalar_lea.hbm %s2143_s0, %s1286_s11  ;;  %s204_s21 = scalar_lea.vmem [#allocation2], %s1185_s9 }
  0x36   : > { %s212_s22 = sshll.u32 %s204_s21, 4  ;;  %p1937_p13 = pnand %p1444_p12, %p1910_p6  ;;  %s1933_s22 = int_to_ptr.vmem [resolvable:$true] %s212_s22 }
  0x37   : > { %s1941_s6 = scalar_lea.sflag [#allocation3], %s200_s29  ;;  %s1610_s30 = scalar_lea.hbm %s1931_s14, 4096 }
  0x38   : > { %p1611_p0 = scmp.ne.s32.totalorder %s1931_s14, %s1610_s30  ;;  %p1612_p3 = pneg %p1937_p13 }
  0x39   : > { %s1615_s7 = scalar_lea.hbm %s2143_s0, 65536  ;;  %p1616_p9 = scmp.lt.u32.totalorder %s1931_s14, %s2143_s0 }
  0x3a   : > { %p1613_p5 = pnand %p1612_p3, %p1611_p0  ;;  %p1617_p1 = scmp.lt.u32.totalorder %s1615_s7, %s1610_s30 }
  0x3b   : > { %p1619_p4 = scmp.lt.u32.totalorder %s1610_s30, %s1931_s14 }
  0x3c   : > { %p1614_p7 = pneg %p1613_p5  ;;  %p1618_p2 = por %p1617_p1, %p1616_p9 }
  0x3e   : > { %p1620_p6 = por %p1619_p4, %p1618_p2 }
  0x40   : > { %p1621_p8 = pnand %p1620_p6, %p1614_p7 }
  0x42   : > { %1624 = shalt.err (!%p1621_p8)
}
  0x43   : > { %s1625_s29 = scalar_lea.vmem %s1933_s22, 4096  ;;  %s1787_s21 = smov [#allocation2]  }
  0x44   : > { %p1626_p12 = scmp.ne.s32.totalorder %s1933_s22, %s1625_s29  ;;  %s1630_s9 = sshll.u32 %s1787_s21, 4  ;;  %s1631_s9 = int_to_ptr.vmem [resolvable:$false] %s1630_s9 }
  0x45   : > { %s1632_s11 = scalar_lea.vmem %s1631_s9, 8192  ;;  %p1633_p5 = scmp.lt.s32.totalorder %s1933_s22, %s1631_s9 }
  0x46   : > { %p1628_p10 = pnand %p1626_p12, %p1612_p3  ;;  %p1634_p9 = scmp.lt.s32.totalorder %s1632_s11, %s1625_s29 }
  0x48   : > { %p1629_p0 = pneg %p1628_p10  ;;  %p1635_p1 = por %p1634_p9, %p1633_p5 }
  0x4a   : > { %p1636_p2 = pnand %p1635_p1, %p1629_p0 }
  0x4c   : > { %1639 = shalt.err (!%p1636_p2)
}
  0x4d   : > { %s1788_s30 = smov 256   ;;  %s1789_s7 = smov 16  }
  0x4e   : > { %1438 = dma.hbm_to_vmem [thread:$0]  (!%p1937_p13), %s1931_s14, 4096, %s1933_s22, %s1941_s6, %s1788_s30, %s1788_s30, %s1789_s7  }
  0x4f   : > { %p2163_p3 = scmp.ne.s32.totalorder %s2157_s27, 0 }
  0x50   : > { %s1972_s12 = sand.u32 (!%p2163_p3), 1, %s1766_s16   ;;  %p2164_p7 = scmp.ne.s32.totalorder (!%p2163_p3), %s2155_s25, 0 }
  0x51   : > { %224 = sbr.rel (%p2163_p3) target bundleno = 501 (0x1f5), region = 28  ;;  %s1190_s13 = sshll.u32 (!%p2163_p3), %s1972_s12, 8 }
  0x52   : > { %s227_s29 = scalar_lea.sflag (!%p2163_p3), [#allocation3], %s1972_s12  ;;  %s1976_s21 = scalar_lea.vmem (!%p2163_p3), [#allocation2], %s1190_s13 }
  0x58   : > { %1745 = dma.done.wait (%p2164_p7), %s227_s29, 4096  }
  0x59   : > { %1747 = vsyncadd (%p2164_p7), %s227_s29, 4294963200  ;;  %p2165_p13 = scmp.ne.s32.totalorder %s2153_s23, 0 }
  0x5b   : > { %1749 = dma.done.wait (%p2165_p13), [#allocation6], 3136  }
  0x5c   : > { %1751 = vsyncadd (%p2165_p13), [#allocation6], 4294964160  ;;  %v1790_v0 = vmov 0   ;;  %v1509_v1 = vld [vmem:[#allocation5 + $0x40] sm:$0xff]   ;;  %v1512_v4 = vld [vmem:[#allocation5 + $0x48] sm:$0xff]   ;;  %vm642_vm0 = vcmask 64512  }
  0x5d   : > { %768 = vmatprep.subr.bf16.mxu1 %v1790_v0  ;;  %v1510_v2 = vld [vmem:[#allocation5 + $0x80] sm:$0xff]   ;;  %1351 = vmatprep.subr.bf16.mxu0 %v1509_v1  ;;  %v1513_v5 = vld [vmem:[#allocation5 + $0x88] sm:$0xff]   ;;  %v1515_v7 = vld [vmem:[#allocation5 + $0x50] sm:$0xff]   ;;  %vm667_vm1 = vcmask 1043456   ;;  %s1192_s23 = sshll.u32 %s1972_s12, 6  ;;  %p1274_p4 = scmp.ne.s32.totalorder %s1774_s18, 0 }
  0x5e   : > { %v1511_v3 = vld [vmem:[#allocation5] sm:$0xff]   ;;  %769 = vmatpush1.bf16.msra.mxu1 %v1510_v2  ;;  %v1514_v6 = vld [vmem:[#allocation5 + $0x8] sm:$0xff]   ;;  %v1516_v8 = vld [vmem:[#allocation5 + $0x90] sm:$0xff]   ;;  %s2036_s25 = scalar_lea.vmem [#allocation7], %s1192_s23 }
  0x5f   : > { %1352 = vmatpush3.bf16.msra.mxu0 %v1511_v3  ;;  %770 = vmatprep.subr.bf16.mxu1 %v1790_v0  ;;  %v1517_v9 = vld [vmem:[#allocation5 + $0x10] sm:$0xff]   ;;  %v1518_v10 = vld [vmem:[#allocation5 + $0x58] sm:$0xff]   ;;  %v1521_v13 = vld [vmem:[#allocation5 + $0x60] sm:$0xff]  }
  0x60   : > { %1353 = vmatprep.subr.bf16.mxu0 %v1512_v4  ;;  %v1519_v11 = vld [vmem:[#allocation5 + $0x98] sm:$0xff]   ;;  %v1522_v14 = vld [vmem:[#allocation5 + $0xa0] sm:$0xff]   ;;  %v1524_v16 = vld [vmem:[#allocation5 + $0x68] sm:$0xff]  }
  0x61   : > { %v1520_v12 = vld [vmem:[#allocation5 + $0x18] sm:$0xff]   ;;  %v1523_v15 = vld [vmem:[#allocation5 + $0x20] sm:$0xff]   ;;  %v1525_v17 = vld [vmem:[#allocation5 + $0xa8] sm:$0xff]  }
  0x62   : > { %771 = vmatpush1.bf16.msra.mxu1 %v1513_v5  ;;  %v1526_v18 = vld [vmem:[#allocation5 + $0x28] sm:$0xff]   ;;  %v1527_v19 = vld [vmem:[#allocation5 + $0x70] sm:$0xff]   ;;  %v1530_v22 = vld [vmem:[#allocation5 + $0x78] sm:$0xff]  }
  0x63   : > { %1354 = vmatpush3.bf16.msra.mxu0 %v1514_v6  ;;  %772 = vmatprep.subr.bf16.mxu1 %v1790_v0  ;;  %v1528_v20 = vld [vmem:[#allocation5 + $0xb0] sm:$0xff]   ;;  %v1531_v24 = vld [vmem:[#allocation5 + $0xb8] sm:$0xff]   ;;  %v1536_v27 = vld [vmem:[#allocation5 + $0xc0] ss:$0 sps:$4 sm:$0xff]  }
  0x64   : > { %1355 = vmatprep.subr.bf16.mxu0 %v1515_v7  ;;  %v1529_v21 = vld [vmem:[#allocation5 + $0x30] sm:$0xff]   ;;  %v1539_v25 = vld [vmem:[%s1976_s21 + $0xc] ss:$16 sps:$4 sm:$0xff]   ;;  %v669_v29 = vsel %vm667_vm1, %v1536_v27, 0  ;;  %v1537_v31 = vld [vmem:[%s1976_s21 + $0x8] ss:$16 sps:$4 sm:$0xff]  }
  0x65   : > { %v1535_v23 = vld [vmem:[%s1976_s21 + $0x4] ss:$16 sps:$4 sm:$0xff]   ;;  %v1532_v26 = vld [vmem:[#allocation5 + $0x38] sm:$0xff]   ;;  %1250 = vmatprep.mubr.msk.bf16.mxu1 %vm642_vm0, %v1539_v25  ;;  %v1533_v28 = vld [vmem:[%s1976_s21] ss:$16 sps:$4 sm:$0xff]  }
  0x66   : > { %773 = vmatpush1.bf16.msra.mxu1 %v1516_v8  ;;  %703 = vmatprep.mubr.bf16.mxu0 %v1535_v23  ;;  %v1540_v30 = vld [vmem:[%s1976_s21 + $0x24] ss:$16 sps:$4 sm:$0xff]   ;;  %v1543_v32 = vld [vmem:[%s1976_s21 + $0x2c] ss:$16 sps:$4 sm:$0xff]   ;;  %v1542_v33 = vld [vmem:[%s1976_s21 + $0x20] ss:$16 sps:$4 sm:$0xff]  }
  0x67   : > { %1356 = vmatpush3.bf16.msra.mxu0 %v1517_v9  ;;  %774 = vmatprep.subr.bf16.mxu1 %v1790_v0  ;;  %v1546_v34 = vld [vmem:[%s1976_s21 + $0x44] ss:$16 sps:$4 sm:$0xff]   ;;  %v1545_v35 = vld [vmem:[%s1976_s21 + $0x28] ss:$16 sps:$4 sm:$0xff]   ;;  %v1549_v36 = vld [vmem:[%s1976_s21 + $0x4c] ss:$16 sps:$4 sm:$0xff]  }
  0x68   : > { %1357 = vmatprep.subr.bf16.mxu0 %v1518_v10  ;;  %v1548_v37 = vld [vmem:[%s1976_s21 + $0x40] ss:$16 sps:$4 sm:$0xff]   ;;  %v1552_v38 = vld [vmem:[%s1976_s21 + $0x64] ss:$16 sps:$4 sm:$0xff]   ;;  %v1551_v39 = vld [vmem:[%s1976_s21 + $0x48] ss:$16 sps:$4 sm:$0xff]  }
  0x69   : > { %v1555_v40 = vld [vmem:[%s1976_s21 + $0x6c] ss:$16 sps:$4 sm:$0xff]   ;;  %v1554_v41 = vld [vmem:[%s1976_s21 + $0x60] ss:$16 sps:$4 sm:$0xff]   ;;  %v1558_v42 = vld [vmem:[%s1976_s21 + $0x84] ss:$16 sps:$4 sm:$0xff]  }
  0x6a   : > { %775 = vmatpush1.bf16.msra.mxu1 %v1519_v11  ;;  %v1557_v43 = vld [vmem:[%s1976_s21 + $0x68] ss:$16 sps:$4 sm:$0xff]   ;;  %v1561_v44 = vld [vmem:[%s1976_s21 + $0x8c] ss:$16 sps:$4 sm:$0xff]   ;;  %v1560_v45 = vld [vmem:[%s1976_s21 + $0x80] ss:$16 sps:$4 sm:$0xff]  }
  0x6b   : > { %1358 = vmatpush3.bf16.msra.mxu0 %v1520_v12  ;;  %776 = vmatprep.subr.bf16.mxu1 %v1790_v0  ;;  %v1564_v46 = vld [vmem:[%s1976_s21 + $0xa4] ss:$16 sps:$4 sm:$0xff]   ;;  %v1563_v47 = vld [vmem:[%s1976_s21 + $0x88] ss:$16 sps:$4 sm:$0xff]   ;;  %v1567_v48 = vld [vmem:[%s1976_s21 + $0xac] ss:$16 sps:$4 sm:$0xff]  }
  0x6c   : > { %1359 = vmatprep.subr.bf16.mxu0 %v1521_v13  ;;  %v1566_v49 = vld [vmem:[%s1976_s21 + $0xa0] ss:$16 sps:$4 sm:$0xff]   ;;  %v1570_v50 = vld [vmem:[%s1976_s21 + $0xc4] ss:$16 sps:$4 sm:$0xff]   ;;  %v1569_v51 = vld [vmem:[%s1976_s21 + $0xa8] ss:$16 sps:$4 sm:$0xff]  }
  0x6d   : > { %v1573_v52 = vld [vmem:[%s1976_s21 + $0xcc] ss:$16 sps:$4 sm:$0xff]   ;;  %v1572_v53 = vld [vmem:[%s1976_s21 + $0xc0] ss:$16 sps:$4 sm:$0xff]   ;;  %v1576_v54 = vld [vmem:[%s1976_s21 + $0xe4] ss:$16 sps:$4 sm:$0xff]  }
  0x6e   : > { %777 = vmatpush1.bf16.msra.mxu1 %v1522_v14  ;;  %v1575_v55 = vld [vmem:[%s1976_s21 + $0xc8] ss:$16 sps:$4 sm:$0xff]   ;;  %v1579_v56 = vld [vmem:[%s1976_s21 + $0xec] ss:$16 sps:$4 sm:$0xff]   ;;  %v1578_v57 = vld [vmem:[%s1976_s21 + $0xe0] ss:$16 sps:$4 sm:$0xff]  }
  0x6f   : > { %1360 = vmatpush3.bf16.msra.mxu0 %v1523_v15  ;;  %778 = vmatprep.subr.bf16.mxu1 %v1790_v0  ;;  %v1581_v58 = vld [vmem:[%s1976_s21 + $0xe8] ss:$16 sps:$4 sm:$0xff]  }
  0x70   : > { %1361 = vmatprep.subr.bf16.mxu0 %v1524_v16 }
  0x72   : > { %779 = vmatpush1.bf16.msra.mxu1 %v1525_v17 }
  0x73   : > { %1362 = vmatpush3.bf16.msra.mxu0 %v1526_v18  ;;  %780 = vmatprep.subr.bf16.mxu1 %v1790_v0 }
  0x74   : > { %1363 = vmatprep.subr.bf16.mxu0 %v1527_v19 }
  0x76   : > { %781 = vmatpush1.bf16.msra.mxu1 %v1528_v20 }
  0x77   : > { %1364 = vmatpush3.bf16.msra.mxu0 %v1529_v21  ;;  %782 = vmatprep.subr.bf16.mxu1 %v1790_v0 }
  0x78   : > { %1365 = vmatprep.subr.bf16.mxu0 %v1530_v22 }
  0x7a   : > { %783 = vmatpush1.bf16.msra.mxu1 %v1531_v24 }
  0x7b   : > { %1366 = vmatpush3.bf16.msra.mxu0 %v1532_v26  ;;  %784 = vmatprep.subr.bf16.mxu1 %v1790_v0 }
  0x7e   : > { %704 = vmatmul.mubr.bf16.vlgmr.msra.gmra.mrb[0].mxu0 %v1533_v28  ;;  %785 = vmatpush1.bf16.msra.mxu1 %v669_v29 }
  0x7f   : > { %711 = vmatprep.mubr.bf16.mxu0 %v1540_v30 }
  0x81   : > { %801 = vmatmul.mubr.bf16.vlgmr.msra.gmra.mrb[0].mxu1 %v1537_v31 }
  0x82   : > { %1251 = vmatprep.mubr.msk.bf16.mxu1 %vm642_vm0, %v1543_v32 }
  0x86   : > { %712 = vmatmul.mubr.bf16.gmra.mrb[4].mxu0 %v1542_v33 }
  0x87   : > { %719 = vmatprep.mubr.bf16.mxu0 %v1546_v34 }
  0x89   : > { %809 = vmatmul.mubr.bf16.gmra.mrb[4].mxu1 %v1545_v35 }
  0x8a   : > { %1252 = vmatprep.mubr.msk.bf16.mxu1 %vm642_vm0, %v1549_v36 }
  0x8e   : > { %720 = vmatmul.mubr.bf16.gmra.mrb[8].mxu0 %v1548_v37 }
  0x8f   : > { %727 = vmatprep.mubr.bf16.mxu0 %v1552_v38 }
  0x91   : > { %817 = vmatmul.mubr.bf16.gmra.mrb[8].mxu1 %v1551_v39 }
  0x92   : > { %1253 = vmatprep.mubr.msk.bf16.mxu1 %vm642_vm0, %v1555_v40 }
  0x96   : > { %728 = vmatmul.mubr.bf16.gmra.mrb[12].mxu0 %v1554_v41 }
  0x97   : > { %735 = vmatprep.mubr.bf16.mxu0 %v1558_v42 }
  0x99   : > { %825 = vmatmul.mubr.bf16.gmra.mrb[12].mxu1 %v1557_v43 }
  0x9a   : > { %1254 = vmatprep.mubr.msk.bf16.mxu1 %vm642_vm0, %v1561_v44 }
  0x9e   : > { %736 = vmatmul.mubr.bf16.gmra.mrb[16].mxu0 %v1560_v45 }
  0x9f   : > { %743 = vmatprep.mubr.bf16.mxu0 %v1564_v46 }
  0xa1   : > { %833 = vmatmul.mubr.bf16.gmra.mrb[16].mxu1 %v1563_v47 }
  0xa2   : > { %1255 = vmatprep.mubr.msk.bf16.mxu1 %vm642_vm0, %v1567_v48 }
  0xa6   : > { %744 = vmatmul.mubr.bf16.gmra.mrb[20].mxu0 %v1566_v49 }
  0xa7   : > { %751 = vmatprep.mubr.bf16.mxu0 %v1570_v50 }
  0xa9   : > { %841 = vmatmul.mubr.bf16.gmra.mrb[20].mxu1 %v1569_v51 }
  0xaa   : > { %1256 = vmatprep.mubr.msk.bf16.mxu1 %vm642_vm0, %v1573_v52 }
  0xae   : > { %752 = vmatmul.mubr.bf16.gmra.mrb[24].mxu0 %v1572_v53 }
  0xaf   : > { %759 = vmatprep.mubr.bf16.mxu0 %v1576_v54 }
  0xb1   : > { %849 = vmatmul.mubr.bf16.gmra.mrb[24].mxu1 %v1575_v55 }
  0xb2   : > { %1257 = vmatprep.mubr.msk.bf16.mxu1 %vm642_vm0, %v1579_v56 }
  0xb6   : > { %760 = vmatmul.mubr.bf16.gmra.mrb[28].mxu0 %v1578_v57 }
  0xb9   : > { %857 = vmatmul.mubr.bf16.gmra.mrb[28].mxu1 %v1581_v58 }
 0x151   : > { %v1367_v59 = vpop.f32.mrb[0].mxu0 }
 0x152   : > { %v1368_v60 = vpop.f32.mrb[1].mxu0 }
 0x153   : > { %v1369_v61 = vadd.f32 %v1368_v60, %v1367_v59  ;;  %v1370_v62 = vpop.f32.mrb[2].mxu0 }
 0x154   : > { %v1371_v63 = vpop.f32.mrb[3].mxu0  ;;  %v802_v0 = vpop.f32.mrb[0].mxu1 }
 0x155   : > { %v1372_v1 = vadd.f32 %v1371_v63, %v1370_v62  ;;  %v803_v2 = vadd.f32 %v1369_v61, %v802_v0  ;;  %v804_v3 = vpop.f32.mrb[1].mxu1 }
 0x156   : > { %v805_v4 = vpop.f32.mrb[2].mxu1 }
 0x157   : > { %v806_v5 = vadd.f32 %v1372_v1, %v805_v4  ;;  %v807_v6 = vpop.f32.mrb[3].mxu1  ;;  %v966_v7 = vmul.f32 %v803_v2, %v803_v2 }
 0x159   : > { %v1307_v8 = vpack.c.bf16 %v806_v5, %v803_v2  ;;  %v945_v9 = vadd.f32 %v806_v5, %v803_v2  ;;  %v967_v10 = vmul.f32 %v806_v5, %v806_v5  ;;  %v1373_v11 = vpop.f32.mrb[4].mxu0 }
 0x15a   : > { %v1374_v12 = vpop.f32.mrb[5].mxu0 }
 0x15b   : > { %1308 = vst [vmem:[%s2036_s25] sm:$0xff] %v1307_v8   ;;  %v982_v13 = vadd.f32 %v967_v10, %v966_v7  ;;  %v1375_v14 = vadd.f32 %v1374_v12, %v1373_v11  ;;  %v1376_v15 = vpop.f32.mrb[6].mxu0 }
 0x15c   : > { %v1377_v16 = vpop.f32.mrb[7].mxu0  ;;  %v810_v17 = vpop.f32.mrb[4].mxu1 }
 0x15d   : > { %v1378_v18 = vadd.f32 %v1377_v16, %v1376_v15  ;;  %v811_v19 = vadd.f32 %v1375_v14, %v810_v17  ;;  %v812_v20 = vpop.f32.mrb[5].mxu1 }
 0x15e   : > { %v813_v21 = vpop.f32.mrb[6].mxu1 }
 0x15f   : > { %v946_v22 = vadd.f32 %v945_v9, %v811_v19  ;;  %v968_v23 = vmul.f32 %v811_v19, %v811_v19  ;;  %v814_v24 = vadd.f32 %v1378_v18, %v813_v21  ;;  %v815_v25 = vpop.f32.mrb[7].mxu1 }
 0x161   : > { %v983_v26 = vadd.f32 %v982_v13, %v968_v23  ;;  %v1312_v27 = vpack.c.bf16 %v814_v24, %v811_v19  ;;  %v947_v28 = vadd.f32 %v946_v22, %v814_v24  ;;  %v969_v29 = vmul.f32 %v814_v24, %v814_v24  ;;  %v1379_v30 = vpop.f32.mrb[8].mxu0 }
 0x162   : > { %v1380_v31 = vpop.f32.mrb[9].mxu0 }
 0x163   : > { %1344 = vst [vmem:[%s2036_s25 + $0x8] sm:$0xff] %v1312_v27   ;;  %v984_v32 = vadd.f32 %v983_v26, %v969_v29  ;;  %v1381_v33 = vadd.f32 %v1380_v31, %v1379_v30  ;;  %v1382_v34 = vpop.f32.mrb[10].mxu0 }
 0x164   : > { %v1383_v35 = vpop.f32.mrb[11].mxu0  ;;  %v818_v36 = vpop.f32.mrb[8].mxu1 }
 0x165   : > { %v1384_v37 = vadd.f32 %v1383_v35, %v1382_v34  ;;  %v819_v38 = vadd.f32 %v1381_v33, %v818_v36  ;;  %v820_v39 = vpop.f32.mrb[9].mxu1 }
 0x166   : > { %v821_v40 = vpop.f32.mrb[10].mxu1 }
 0x167   : > { %v948_v41 = vadd.f32 %v947_v28, %v819_v38  ;;  %v970_v42 = vmul.f32 %v819_v38, %v819_v38  ;;  %v822_v43 = vadd.f32 %v1384_v37, %v821_v40  ;;  %v823_v44 = vpop.f32.mrb[11].mxu1 }
 0x169   : > { %v985_v45 = vadd.f32 %v984_v32, %v970_v42  ;;  %v1317_v46 = vpack.c.bf16 %v822_v43, %v819_v38  ;;  %v949_v47 = vadd.f32 %v948_v41, %v822_v43  ;;  %v971_v48 = vmul.f32 %v822_v43, %v822_v43  ;;  %v1385_v49 = vpop.f32.mrb[12].mxu0 }
 0x16a   : > { %v1386_v50 = vpop.f32.mrb[13].mxu0 }
 0x16b   : > { %1345 = vst [vmem:[%s2036_s25 + $0x10] sm:$0xff] %v1317_v46   ;;  %v986_v51 = vadd.f32 %v985_v45, %v971_v48  ;;  %v1387_v52 = vadd.f32 %v1386_v50, %v1385_v49  ;;  %v1388_v53 = vpop.f32.mrb[14].mxu0 }
 0x16c   : > { %v1389_v54 = vpop.f32.mrb[15].mxu0  ;;  %v826_v55 = vpop.f32.mrb[12].mxu1 }
 0x16d   : > { %v1390_v56 = vadd.f32 %v1389_v54, %v1388_v53  ;;  %v827_v57 = vadd.f32 %v1387_v52, %v826_v55  ;;  %v828_v58 = vpop.f32.mrb[13].mxu1 }
 0x16e   : > { %v829_v59 = vpop.f32.mrb[14].mxu1 }
 0x16f   : > { %v950_v60 = vadd.f32 %v949_v47, %v827_v57  ;;  %v972_v61 = vmul.f32 %v827_v57, %v827_v57  ;;  %v830_v62 = vadd.f32 %v1390_v56, %v829_v59  ;;  %v831_v63 = vpop.f32.mrb[15].mxu1 }
 0x171   : > { %v987_v0 = vadd.f32 %v986_v51, %v972_v61  ;;  %v1322_v1 = vpack.c.bf16 %v830_v62, %v827_v57  ;;  %v951_v2 = vadd.f32 %v950_v60, %v830_v62  ;;  %v973_v3 = vmul.f32 %v830_v62, %v830_v62  ;;  %v1391_v4 = vpop.f32.mrb[16].mxu0 }
 0x172   : > { %v1392_v5 = vpop.f32.mrb[17].mxu0 }
 0x173   : > { %1346 = vst [vmem:[%s2036_s25 + $0x18] sm:$0xff] %v1322_v1   ;;  %v988_v6 = vadd.f32 %v987_v0, %v973_v3  ;;  %v1393_v7 = vadd.f32 %v1392_v5, %v1391_v4  ;;  %v1394_v8 = vpop.f32.mrb[18].mxu0 }
 0x174   : > { %v1395_v9 = vpop.f32.mrb[19].mxu0  ;;  %v834_v10 = vpop.f32.mrb[16].mxu1 }
 0x175   : > { %v1396_v11 = vadd.f32 %v1395_v9, %v1394_v8  ;;  %v835_v12 = vadd.f32 %v1393_v7, %v834_v10  ;;  %v836_v13 = vpop.f32.mrb[17].mxu1 }
 0x176   : > { %v837_v14 = vpop.f32.mrb[18].mxu1 }
 0x177   : > { %v952_v15 = vadd.f32 %v951_v2, %v835_v12  ;;  %v974_v16 = vmul.f32 %v835_v12, %v835_v12  ;;  %v838_v17 = vadd.f32 %v1396_v11, %v837_v14  ;;  %v839_v18 = vpop.f32.mrb[19].mxu1 }
 0x179   : > { %v989_v19 = vadd.f32 %v988_v6, %v974_v16  ;;  %v1327_v20 = vpack.c.bf16 %v838_v17, %v835_v12  ;;  %v953_v21 = vadd.f32 %v952_v15, %v838_v17  ;;  %v975_v22 = vmul.f32 %v838_v17, %v838_v17  ;;  %v1397_v23 = vpop.f32.mrb[20].mxu0 }
 0x17a   : > { %v1398_v24 = vpop.f32.mrb[21].mxu0 }
 0x17b   : > { %1347 = vst [vmem:[%s2036_s25 + $0x20] sm:$0xff] %v1327_v20   ;;  %v990_v25 = vadd.f32 %v989_v19, %v975_v22  ;;  %v1399_v26 = vadd.f32 %v1398_v24, %v1397_v23  ;;  %v1400_v27 = vpop.f32.mrb[22].mxu0 }
 0x17c   : > { %v1401_v28 = vpop.f32.mrb[23].mxu0  ;;  %v842_v29 = vpop.f32.mrb[20].mxu1 }
 0x17d   : > { %v1402_v30 = vadd.f32 %v1401_v28, %v1400_v27  ;;  %v843_v31 = vadd.f32 %v1399_v26, %v842_v29  ;;  %v844_v32 = vpop.f32.mrb[21].mxu1 }
 0x17e   : > { %v845_v33 = vpop.f32.mrb[22].mxu1 }
 0x17f   : > { %v954_v34 = vadd.f32 %v953_v21, %v843_v31  ;;  %v976_v35 = vmul.f32 %v843_v31, %v843_v31  ;;  %v846_v36 = vadd.f32 %v1402_v30, %v845_v33  ;;  %v847_v37 = vpop.f32.mrb[23].mxu1 }
 0x181   : > { %v991_v38 = vadd.f32 %v990_v25, %v976_v35  ;;  %v1332_v39 = vpack.c.bf16 %v846_v36, %v843_v31  ;;  %v955_v40 = vadd.f32 %v954_v34, %v846_v36  ;;  %v977_v41 = vmul.f32 %v846_v36, %v846_v36  ;;  %v1403_v42 = vpop.f32.mrb[24].mxu0 }
 0x182   : > { %v1404_v43 = vpop.f32.mrb[25].mxu0 }
 0x183   : > { %1348 = vst [vmem:[%s2036_s25 + $0x28] sm:$0xff] %v1332_v39   ;;  %v992_v44 = vadd.f32 %v991_v38, %v977_v41  ;;  %v1405_v45 = vadd.f32 %v1404_v43, %v1403_v42  ;;  %v1406_v46 = vpop.f32.mrb[26].mxu0 }
 0x184   : > { %v1407_v47 = vpop.f32.mrb[27].mxu0  ;;  %v850_v48 = vpop.f32.mrb[24].mxu1 }
 0x185   : > { %v1408_v49 = vadd.f32 %v1407_v47, %v1406_v46  ;;  %v851_v50 = vadd.f32 %v1405_v45, %v850_v48  ;;  %v852_v51 = vpop.f32.mrb[25].mxu1 }
 0x186   : > { %v853_v52 = vpop.f32.mrb[26].mxu1 }
 0x187   : > { %v956_v53 = vadd.f32 %v955_v40, %v851_v50  ;;  %v978_v54 = vmul.f32 %v851_v50, %v851_v50  ;;  %v854_v55 = vadd.f32 %v1408_v49, %v853_v52  ;;  %v855_v56 = vpop.f32.mrb[27].mxu1 }
 0x189   : > { %v993_v57 = vadd.f32 %v992_v44, %v978_v54  ;;  %v1337_v58 = vpack.c.bf16 %v854_v55, %v851_v50  ;;  %v957_v59 = vadd.f32 %v956_v53, %v854_v55  ;;  %v979_v60 = vmul.f32 %v854_v55, %v854_v55  ;;  %v1409_v61 = vpop.f32.mrb[28].mxu0 }
 0x18a   : > { %v1410_v62 = vpop.f32.mrb[29].mxu0 }
 0x18b   : > { %1349 = vst [vmem:[%s2036_s25 + $0x30] sm:$0xff] %v1337_v58   ;;  %v994_v63 = vadd.f32 %v993_v57, %v979_v60  ;;  %v1411_v0 = vadd.f32 %v1410_v62, %v1409_v61  ;;  %v1412_v1 = vpop.f32.mrb[30].mxu0 }
 0x18c   : > { %v1413_v2 = vpop.f32.mrb[31].mxu0  ;;  %v858_v3 = vpop.f32.mrb[28].mxu1 }
 0x18d   : > { %v1414_v4 = vadd.f32 %v1413_v2, %v1412_v1  ;;  %v859_v5 = vadd.f32 %v1411_v0, %v858_v3  ;;  %v860_v6 = vpop.f32.mrb[29].mxu1 }
 0x18e   : > { %v861_v7 = vpop.f32.mrb[30].mxu1 }
 0x18f   : > { %v958_v8 = vadd.f32 %v957_v59, %v859_v5  ;;  %v980_v9 = vmul.f32 %v859_v5, %v859_v5  ;;  %v862_v10 = vadd.f32 %v1414_v4, %v861_v7  ;;  %v863_v11 = vpop.f32.mrb[31].mxu1 }
 0x191   : > { %v995_v12 = vadd.f32 %v994_v63, %v980_v9  ;;  %v1342_v13 = vpack.c.bf16 %v862_v10, %v859_v5  ;;  %v959_v14 = vadd.f32 %v958_v8, %v862_v10  ;;  %v981_v15 = vmul.f32 %v862_v10, %v862_v10 }
 0x193   : > { %1350 = vst [vmem:[%s2036_s25 + $0x38] sm:$0xff] %v1342_v13   ;;  %v960_v16 = vrot.slane %v959_v14, 4  ;;  %v996_v17 = vadd.f32 %v995_v12, %v981_v15 }
 0x195   : > { %v961_v18 = vadd.f32 %v960_v16, %v959_v14  ;;  %v997_v19 = vrot.slane %v996_v17, 4 }
 0x197   : > { %v962_v20 = vrot.slane %v961_v18, 2  ;;  %v998_v21 = vadd.f32 %v997_v19, %v996_v17 }
 0x199   : > { %v963_v22 = vadd.f32 %v962_v20, %v961_v18  ;;  %v999_v23 = vrot.slane %v998_v21, 2  ;;  %1006 = sbr.rel (%p1274_p4) target bundleno = 418 (0x1a2), region = 40 }
 0x19b   : > { %v964_v24 = vrot.slane %v963_v22, 1  ;;  %v1000_v25 = vadd.f32 %v999_v23, %v998_v21 }
 0x19d   : > { %v965_v26 = vadd.f32 %v964_v24, %v963_v22  ;;  %v1001_v27 = vrot.slane %v1000_v25, 1 }
 0x19f   : > { %v1002_v28 = vadd.f32 %v1001_v27, %v1000_v25  ;;  %1007 = vst [vmem:[#allocation8] sm:$0x1] (!%p1274_p4), %v965_v26 }
 0x1a1   : > { %1008 = vst [vmem:[#allocation10] sm:$0x1] %v1002_v28 }
 0x1a2 PF: > { %p1275_p6 = scmp.le.s32.totalorder %s1774_s18, 0 }
 0x1a4   : > { %1012 = sbr.rel (%p1275_p6) target bundleno = 428 (0x1ac), region = 44 }
 0x1a8   : > { %v1013_v29 = vld [vmem:[#allocation8] sm:$0x1] (!%p1275_p6)  ;;  %v1016_v30 = vld [vmem:[#allocation10] sm:$0x1] (!%p1275_p6) }
 0x1a9   : > { %v1014_v31 = vadd.f32 (!%p1275_p6), %v1013_v29, %v965_v26  ;;  %v1017_v32 = vadd.f32 (!%p1275_p6), %v1016_v30, %v1002_v28 }
 0x1ab   : > { %1015 = vst [vmem:[#allocation8] sm:$0x1] %v1014_v31  ;;  %1018 = vst [vmem:[#allocation10] sm:$0x1] %v1017_v32 }
 0x1ac PF: > { %s1791_s27 = smov [#allocation8]   ;;  %s1303_s22 = sshll.u32 %s1774_s18, 10 }
 0x1ad   : > { %s1050_s14 = sshll.u32 %s1791_s27, 4  ;;  %p2166_p12 = scmp.ne.s32.totalorder %s2154_s24, 0  ;;  %s1051_s14 = int_to_ptr.vmem [resolvable:$true] %s1050_s14 }
 0x1ae   : > { %s1640_s28 = scalar_lea.vmem %s1051_s14, 16  ;;  %s1646_s6 = scalar_lea.vmem %s1051_s14, 32 }
 0x1af   : > { %p1641_p8 = scmp.ne.s32.totalorder %s1051_s14, %s1640_s28  ;;  %p1647_p5 = scmp.lt.s32.totalorder %s1051_s14, %s1051_s14 }
 0x1b0   : > { %p1648_p9 = scmp.lt.s32.totalorder %s1646_s6, %s1640_s28 }
 0x1b1   : > { %p1642_p10 = pnand %p1641_p8, %p2166_p12 }
 0x1b2   : > { %p1649_p1 = por %p1648_p9, %p1647_p5 }
 0x1b3   : > { %p1643_p0 = pneg %p1642_p10 }
 0x1b5   : > { %p1650_p2 = pnand %p1649_p1, %p1643_p0 }
 0x1b7   : > { %1653 = shalt.err (!%p1650_p2)
}
 0x1b8   : > { %s1654_s30 = scalar_lea.hbm %s2146_s3, 16 }
 0x1b9   : > { %p1655_p3 = scmp.ne.s32.totalorder %s2146_s3, %s1654_s30  ;;  %p1660_p4 = scmp.lt.u32.totalorder %s1654_s30, %s2146_s3 }
 0x1bb   : > { %p1656_p7 = pnand %p1655_p3, %p2166_p12 }
 0x1bd   : > { %p1657_p13 = pneg %p1656_p7 }
 0x1bf   : > { %p1662_p6 = pnand %p1660_p4, %p1657_p13 }
 0x1c1   : > { %1665 = shalt.err (!%p1662_p6)
}
 0x1c2   : > { %1423 = dma.vmem_to_hbm [thread:$0]  (%p2166_p12), %s1051_s14, 16, %s2146_s3, [#allocation9]  }
 0x1c3   : > { %s2070_s6 = scalar_lea.hbm %s2145_s2, %s1303_s22  ;;  %s1034_s9 = sshll.u32 %s2036_s25, 4  ;;  %s2073_s9 = int_to_ptr.vmem [resolvable:$true] %s1034_s9 }
 0x1c4   : > { %s1020_s11 = scalar_lea.sflag [#allocation4], %s1972_s12  ;;  %s1666_s30 = scalar_lea.vmem %s2073_s9, 1024 }
 0x1c5   : > { %p1667_p8 = scmp.ne.s32.totalorder %s2073_s9, %s1666_s30  ;;  %s1792_s7 = smov [#allocation7]  }
 0x1c6   : > { %s1670_s13 = sshll.u32 %s1792_s7, 4  ;;  %s1671_s13 = int_to_ptr.vmem [resolvable:$false] %s1670_s13 }
 0x1c7   : > { %p1668_p10 = pnand %p1667_p8, %p1916_p11  ;;  %s1672_s14 = scalar_lea.vmem %s1671_s13, 2048 }
 0x1c8   : > { %p1673_p5 = scmp.lt.s32.totalorder %s2073_s9, %s1671_s13  ;;  %p1674_p9 = scmp.lt.s32.totalorder %s1672_s14, %s1666_s30 }
 0x1c9   : > { %p1669_p0 = pneg %p1668_p10 }
 0x1ca   : > { %p1675_p1 = por %p1674_p9, %p1673_p5 }
 0x1cc   : > { %p1676_p2 = pnand %p1675_p1, %p1669_p0 }
 0x1ce   : > { %1679 = shalt.err (!%p1676_p2)
}
 0x1cf   : > { %s1680_s25 = scalar_lea.hbm %s2070_s6, 1024  ;;  %s1684_s29 = scalar_lea.hbm %s2145_s2, 16384 }
 0x1d0   : > { %p1681_p3 = scmp.ne.s32.totalorder %s2070_s6, %s1680_s25  ;;  %p1685_p4 = scmp.lt.u32.totalorder %s2070_s6, %s2145_s2 }
 0x1d1   : > { %p1686_p6 = scmp.lt.u32.totalorder %s1684_s29, %s1680_s25  ;;  %p1688_p10 = scmp.lt.u32.totalorder %s1680_s25, %s2070_s6 }
 0x1d2   : > { %p1682_p7 = pnand %p1681_p3, %p1916_p11 }
 0x1d3   : > { %p1687_p8 = por %p1686_p6, %p1685_p4 }
 0x1d4   : > { %p1683_p13 = pneg %p1682_p7 }
 0x1d5   : > { %p1689_p0 = por %p1688_p10, %p1687_p8 }
 0x1d7   : > { %p1690_p5 = pnand %p1689_p0, %p1683_p13 }
 0x1d9   : > { %1693 = shalt.err (!%p1690_p5)
}
 0x1da   : > { %s1793_s27 = smov 64   ;;  %s1794_s28 = smov 4  }
 0x1db   : > { %1421 = dma.vmem_to_hbm [thread:$0]  (%p1916_p11), %s2073_s9, 1024, %s2070_s6, %s1020_s11, %s1793_s27, %s1793_s27, %s1794_s28  }
 0x1dc   : > { %s1795_s30 = smov [#allocation10]  }
 0x1dd   : > { %s1063_s7 = sshll.u32 %s1795_s30, 4  ;;  %s1064_s7 = int_to_ptr.vmem [resolvable:$true] %s1063_s7 }
 0x1de   : > { %s1694_s13 = scalar_lea.vmem %s1064_s7, 16  ;;  %s1700_s14 = scalar_lea.vmem %s1064_s7, 32 }
 0x1df   : > { %p1695_p9 = scmp.ne.s32.totalorder %s1064_s7, %s1694_s13  ;;  %p1701_p3 = scmp.lt.s32.totalorder %s1064_s7, %s1064_s7 }
 0x1e0   : > { %p1702_p7 = scmp.lt.s32.totalorder %s1700_s14, %s1694_s13 }
 0x1e1   : > { %p1696_p1 = pnand %p1695_p9, %p2166_p12 }
 0x1e2   : > { %p1703_p13 = por %p1702_p7, %p1701_p3 }
 0x1e3   : > { %p1697_p2 = pneg %p1696_p1 }
 0x1e5   : > { %p1704_p4 = pnand %p1703_p13, %p1697_p2 }
 0x1e7   : > { %1707 = shalt.err (!%p1704_p4)
}
 0x1e8   : > { %s1708_s8 = scalar_lea.hbm %s2147_s4, 16 }
 0x1e9   : > { %p1709_p11 = scmp.ne.s32.totalorder %s2147_s4, %s1708_s8  ;;  %p1714_p10 = scmp.lt.u32.totalorder %s1708_s8, %s2147_s4 }
 0x1eb   : > { %p1710_p6 = pnand %p1709_p11, %p2166_p12 }
 0x1ed   : > { %p1711_p8 = pneg %p1710_p6 }
 0x1ef   : > { %p1716_p0 = pnand %p1714_p10, %p1711_p8 }
 0x1f1   : > { %1719 = shalt.err (!%p1716_p0)
}
 0x1f2   : > { %1425 = dma.vmem_to_hbm [thread:$0]  (%p2166_p12), %s1064_s7, 16, %s2147_s4, [#allocation9]  }
 0x1f3   : > { %1753 = dma.done.wait (%p2166_p12), [#allocation9], 32  }
 0x1f4   : > { %1755 = vsyncadd (%p2166_p12), [#allocation9], 4294967264 }
 0x1f5 PF: > { %p1450_p5 = scmp.ge.s32.totalorder %s1782_s20, 2  ;;  %s1083_s21 = sand.u32 1, %s1762_s15  }
 0x1f6   : > { %p2167_p9 = scmp.ne.s32.totalorder %s2156_s26, 0  ;;  %s1084_s23 = scalar_lea.sflag [#allocation4], %s1083_s21 }
 0x1f8   : > { %p1440_p1 = pnand %p1450_p5, %p2167_p9 }
 0x1fa   : > { %1757 = dma.done.wait (!%p1440_p1), %s1084_s23, 1024  }
 0x1fb   : > { %1759 = vsyncadd (!%p1440_p1), %s1084_s23, 4294966272  ;;  %s23_s20 = sadd.s32 1, %s1782_s20   ;;  %s2168_s15 = smov %s1766_s16 }
 0x1fc   : > { %p20_p2 = scmp.ge.s32.totalorder %s23_s20, 18   ;;  %s2169_s16 = smov %s1770_s17 }
 0x1fd   : > { %s2170_s17 = smov %s1925_s10  ;;  %s2171_s18 = smov %s1778_s19 }
 0x1fe   : > { %s2172_s19 = smov %s2174_s5  ;;  %22 = sbr.rel (!%p20_p2) target bundleno = 8 (0x8), region = 104 }
 0x205   :  { %1089 = vsyncpa [#allocation3], 1 }
 0x206   :  { %1091 = vsyncpa [#allocation3 + $0x1], 1 }
 0x207   :  { %1092 = vsyncpa [#allocation6], 1 }
 0x208   :  { %1093 = vsyncpa [#allocation4], 1 }
 0x209   :  { %1095 = vsyncpa [#allocation4 + $0x1], 1 }
 0x20a   :  { %1096 = vsyncpa [#allocation9], 1 }

// kernel: stem_forward.3
= control target key start
LH: loop header
LB: loop body
LE: loop exit
PB: predicated region body
PF: predicated region fallthrough
CT: control target
= control target key end

     0   :  { %8 = vsyncpa [#allocation3], 0  ;;  %s5279_s0 = inlined_call_operand.hbm [shape: bf16[2048,128], index: 0, kind: input, shape index: {}]   ;;  %s5280_s1 = inlined_call_operand.hbm [shape: f32[1,128], index: 1, kind: input, shape index: {}]   ;;  %s5281_s2 = inlined_call_operand.hbm [shape: f32[1,128], index: 2, kind: input, shape index: {}]   ;;  %s5282_s3 = inlined_call_operand.hbm [shape: bf16[2048,128], index: 3, kind: output, shape index: {}]  }
   0x1   :  { %9 = vsyncpa [#allocation6], 0 }
   0x2   :  { %10 = vsyncpa [#allocation4], 0  ;;  %s4668_s12 = smov [#allocation5]   ;;  %s4669_s14 = smov [#allocation2]  }
   0x3   :  { %s29_s13 = sshll.u32 %s4668_s12, 4  ;;  %s16_s15 = sshll.u32 %s4669_s14, 4  ;;  %s30_s13 = int_to_ptr.vmem [resolvable:$true] %s29_s13  ;;  %s4694_s15 = int_to_ptr.vmem [resolvable:$true] %s16_s15 }
   0x4   :  { %s4574_s18 = scalar_lea.hbm %s5280_s1, 16 }
   0x5   :  { %p4575_p0 = scmp.ne.s32.totalorder %s5280_s1, %s4574_s18  ;;  %p4578_p1 = scmp.lt.u32.totalorder %s4574_s18, %s5280_s1 }
   0x7   :  { %p4580_p2 = pnand %p4578_p1, %p4575_p0 }
   0x9   :  { %4583 = shalt.err (!%p4580_p2)
}
   0xa   :  { %s4584_s23 = scalar_lea.vmem %s30_s13, 16  ;;  %s4588_s24 = scalar_lea.vmem %s30_s13, 32 }
   0xb   :  { %p4585_p3 = scmp.ne.s32.totalorder %s30_s13, %s4584_s23  ;;  %p4589_p4 = scmp.lt.s32.totalorder %s30_s13, %s30_s13 }
   0xc   :  { %p4590_p5 = scmp.lt.s32.totalorder %s4588_s24, %s4584_s23 }
   0xe   :  { %p4591_p6 = por %p4590_p5, %p4589_p4 }
  0x10   :  { %p4592_p7 = pnand %p4591_p6, %p4585_p3 }
  0x12   :  { %4595 = shalt.err (!%p4592_p7)
}
  0x13   :  { %32 = dma.hbm_to_vmem [thread:$0]  %s5280_s1, 16, %s30_s13, [#allocation6]  }
  0x14   :  { %s4596_s29 = scalar_lea.hbm %s5279_s0, 16384 }
  0x15   :  { %p4597_p8 = scmp.ne.s32.totalorder %s5279_s0, %s4596_s29  ;;  %p4600_p9 = scmp.lt.u32.totalorder %s4596_s29, %s5279_s0 }
  0x17   :  { %p4602_p10 = pnand %p4600_p9, %p4597_p8 }
  0x19   :  { %4605 = shalt.err (!%p4602_p10)
}
  0x1a   :  { %s4606_s7 = scalar_lea.vmem %s4694_s15, 16384  ;;  %p4611_p12 = scmp.lt.s32.totalorder %s4694_s15, %s4694_s15 }
  0x1b   :  { %p4607_p11 = scmp.ne.s32.totalorder %s4694_s15, %s4606_s7  ;;  %p4612_p13 = scmp.lt.s32.totalorder %s4606_s7, %s4606_s7 }
  0x1d   :  { %p4613_p0 = por %p4612_p13, %p4611_p12 }
  0x1f   :  { %p4614_p1 = pnand %p4613_p0, %p4607_p11 }
  0x21   :  { %4617 = shalt.err (!%p4614_p1)
}
  0x22   :  { %s4670_s1 = smov 64   ;;  %s4671_s8 = smov 4  }
  0x23   :  { %22 = dma.hbm_to_vmem [thread:$0]  %s5279_s0, 16384, %s4694_s15, [#allocation3], %s4670_s1, %s4670_s1, %s4671_s8  }
  0x24   :  { %s4672_s11 = smov [#allocation7]   ;;  %s4618_s16 = scalar_lea.hbm %s5281_s2, 16 }
  0x25   :  { %s39_s12 = sshll.u32 %s4672_s11, 4  ;;  %p4619_p2 = scmp.ne.s32.totalorder %s5281_s2, %s4618_s16  ;;  %s40_s12 = int_to_ptr.vmem [resolvable:$true] %s39_s12 }
  0x26   :  { %p4622_p3 = scmp.lt.u32.totalorder %s4618_s16, %s5281_s2 }
  0x28   :  { %p4624_p4 = pnand %p4622_p3, %p4619_p2 }
  0x2a   :  { %4627 = shalt.err (!%p4624_p4)
}
  0x2b   :  { %s4628_s21 = scalar_lea.vmem %s40_s12, 16  ;;  %s4632_s0 = scalar_lea.vmem %s40_s12, 32 }
  0x2c   :  { %p4629_p5 = scmp.ne.s32.totalorder %s40_s12, %s4628_s21  ;;  %p4633_p6 = scmp.lt.s32.totalorder %s40_s12, %s40_s12 }
  0x2d   :  { %p4634_p7 = scmp.lt.s32.totalorder %s4632_s0, %s4628_s21 }
  0x2f   :  { %p4635_p8 = por %p4634_p7, %p4633_p6 }
  0x31   :  { %p4636_p9 = pnand %p4635_p8, %p4629_p5 }
  0x33   :  { %4639 = shalt.err (!%p4636_p9)
}
  0x34   :  { %42 = dma.hbm_to_vmem [thread:$0]  %s5281_s2, 16, %s40_s12, [#allocation6]  }
  0x35   :  { %4662 = dma.done.wait [#allocation3], 16384  }
  0x36   :  { %4663 = vsyncadd [#allocation3], 4294950912 }
  0x37   :  { %4664 = dma.done.wait [#allocation6], 32  }
  0x38   :  { %4665 = vsyncadd [#allocation6], 4294967264  ;;  %v3159_v0 = vld [vmem:[#allocation2] sm:$0xff]   ;;  %v4310_v4 = vld [vmem:[#allocation2 + $0x8] sm:$0xff]   ;;  %s4673_s2 = smov [#allocation8]  }
  0x39   :  { %v4740_v1 = vld [vmem:[#allocation5] ss:$0 sm:$0xff]  ;;  %v3160_v2 = vunpack.c.l.bf16 %v3159_v0  ;;  %v3161_v3 = vunpack.c.h.bf16 %v3159_v0  ;;  %v4311_v5 = vld [vmem:[#allocation2 + $0x10] sm:$0xff]   ;;  %v4312_v6 = vld [vmem:[#allocation2 + $0x18] sm:$0xff]   ;;  %v3164_v8 = vunpack.c.l.bf16 %v4310_v4  ;;  %v3165_v9 = vunpack.c.h.bf16 %v4310_v4  ;;  %s2631_s23 = sshll.u32 %s4673_s2, 4  ;;  %s2632_s23 = int_to_ptr.vmem [resolvable:$true] %s2631_s23 }
  0x3a   :  { %v4742_v7 = vld [vmem:[#allocation7] ss:$0 sm:$0xff]  ;;  %v3168_v10 = vunpack.c.l.bf16 %v4311_v5  ;;  %v3169_v11 = vunpack.c.h.bf16 %v4311_v5  ;;  %v3172_v14 = vunpack.c.l.bf16 %v4312_v6  ;;  %v3173_v15 = vunpack.c.h.bf16 %v4312_v6  ;;  %v4314_v33 = vld [vmem:[#allocation2 + $0x28] sm:$0xff]   ;;  %v4315_v38 = vld [vmem:[#allocation2 + $0x30] sm:$0xff]   ;;  %s4640_s24 = scalar_lea.vmem %s2632_s23, 16384  ;;  %p4645_p11 = scmp.lt.s32.totalorder %s2632_s23, %s2632_s23 }
  0x3b   :  { %v571_v12 = vmul.f32 %v3160_v2, %v4740_v1  ;;  %v572_v13 = vmul.f32 %v3161_v3, %v4740_v1  ;;  %v573_v16 = vmul.f32 %v3164_v8, %v4740_v1  ;;  %v574_v17 = vmul.f32 %v3165_v9, %v4740_v1  ;;  %v4313_v28 = vld [vmem:[#allocation2 + $0x20] sm:$0xff]   ;;  %v4316_v43 = vld [vmem:[#allocation2 + $0x38] sm:$0xff]   ;;  %p4641_p10 = scmp.ne.s32.totalorder %s2632_s23, %s4640_s24  ;;  %p4646_p12 = scmp.lt.s32.totalorder %s4640_s24, %s4640_s24 }
  0x3c   :  { %v575_v18 = vmul.f32 %v3168_v10, %v4740_v1  ;;  %v576_v19 = vmul.f32 %v3169_v11, %v4740_v1  ;;  %v577_v22 = vmul.f32 %v3172_v14, %v4740_v1  ;;  %v578_v23 = vmul.f32 %v3173_v15, %v4740_v1  ;;  %v4317_v0 = vld [vmem:[#allocation2 + $0x40] sm:$0xff]   ;;  %v4318_v11 = vld [vmem:[#allocation2 + $0x48] sm:$0xff]  }
  0x3d   :  { %v834_v20 = vadd.f32 %v4742_v7, %v571_v12  ;;  %v835_v21 = vadd.f32 %v4742_v7, %v572_v13  ;;  %v836_v24 = vadd.f32 %v4742_v7, %v573_v16  ;;  %v837_v25 = vadd.f32 %v4742_v7, %v574_v17  ;;  %v4319_v16 = vld [vmem:[#allocation2 + $0x50] sm:$0xff]   ;;  %p4647_p13 = por %p4646_p12, %p4645_p11 }
  0x3e   :  { %v838_v26 = vadd.f32 %v4742_v7, %v575_v18  ;;  %v839_v27 = vadd.f32 %v4742_v7, %v576_v19  ;;  %v840_v31 = vadd.f32 %v4742_v7, %v577_v22  ;;  %v841_v32 = vadd.f32 %v4742_v7, %v578_v23 }
  0x3f   :  { %v1090_v29 = vmax.f32 %v834_v20, 0.0  ;;  %v1091_v30 = vmax.f32 %v835_v21, 0.0  ;;  %v1092_v34 = vmax.f32 %v836_v24, 0.0  ;;  %v1093_v35 = vmax.f32 %v837_v25, 0.0  ;;  %v4320_v25 = vld [vmem:[#allocation2 + $0x58] sm:$0xff]   ;;  %p4648_p0 = pnand %p4647_p13, %p4641_p10 }
  0x40   :  { %v1094_v36 = vmax.f32 %v838_v26, 0.0  ;;  %v1095_v37 = vmax.f32 %v839_v27, 0.0  ;;  %v1096_v40 = vmax.f32 %v840_v31, 0.0  ;;  %v1097_v41 = vmax.f32 %v841_v32, 0.0 }
  0x41   :  { %v3673_v39 = vpack.c.bf16 %v1091_v30, %v1090_v29  ;;  %v3176_v42 = vunpack.c.l.bf16 %v4313_v28  ;;  %v3678_v44 = vpack.c.bf16 %v1093_v35, %v1092_v34  ;;  %v3177_v46 = vunpack.c.h.bf16 %v4313_v28 }
  0x42   :  { %v3683_v45 = vpack.c.bf16 %v1095_v37, %v1094_v36  ;;  %v3180_v47 = vunpack.c.l.bf16 %v4314_v33  ;;  %v3688_v48 = vpack.c.bf16 %v1097_v41, %v1096_v40  ;;  %v3181_v50 = vunpack.c.h.bf16 %v4314_v33 }
  0x43   :  { %3674 = vst [vmem:[#allocation8] sm:$0xff] %v3673_v39   ;;  %v579_v49 = vmul.f32 %v3176_v42, %v4740_v1  ;;  %v3184_v51 = vunpack.c.l.bf16 %v4315_v38  ;;  %4437 = vst [vmem:[#allocation8 + $0x8] sm:$0xff] %v3678_v44   ;;  %v580_v52 = vmul.f32 %v3177_v46, %v4740_v1  ;;  %v3185_v54 = vunpack.c.h.bf16 %v4315_v38  ;;  %v4321_v38 = vld [vmem:[#allocation2 + $0x60] sm:$0xff]  }
  0x44   :  { %4438 = vst [vmem:[#allocation8 + $0x10] sm:$0xff] %v3683_v45   ;;  %v581_v53 = vmul.f32 %v3180_v47, %v4740_v1  ;;  %v3188_v55 = vunpack.c.l.bf16 %v4316_v43  ;;  %4439 = vst [vmem:[#allocation8 + $0x18] sm:$0xff] %v3688_v48   ;;  %v582_v57 = vmul.f32 %v3181_v50, %v4740_v1  ;;  %v3189_v59 = vunpack.c.h.bf16 %v4316_v43 }
  0x45   :  { %v842_v56 = vadd.f32 %v4742_v7, %v579_v49  ;;  %v583_v58 = vmul.f32 %v3184_v51, %v4740_v1  ;;  %v843_v60 = vadd.f32 %v4742_v7, %v580_v52  ;;  %v584_v62 = vmul.f32 %v3185_v54, %v4740_v1  ;;  %v4322_v51 = vld [vmem:[#allocation2 + $0x68] sm:$0xff]  }
  0x46   :  { %v844_v61 = vadd.f32 %v4742_v7, %v581_v53  ;;  %v585_v63 = vmul.f32 %v3188_v55, %v4740_v1  ;;  %v845_v3 = vadd.f32 %v4742_v7, %v582_v57  ;;  %v586_v5 = vmul.f32 %v3189_v59, %v4740_v1 }
  0x47   :  { %v1098_v2 = vmax.f32 %v842_v56, 0.0  ;;  %v846_v4 = vadd.f32 %v4742_v7, %v583_v58  ;;  %v1099_v6 = vmax.f32 %v843_v60, 0.0  ;;  %v847_v9 = vadd.f32 %v4742_v7, %v584_v62  ;;  %v4323_v60 = vld [vmem:[#allocation2 + $0x70] sm:$0xff]  }
  0x48   :  { %v1100_v8 = vmax.f32 %v844_v61, 0.0  ;;  %v848_v10 = vadd.f32 %v4742_v7, %v585_v63  ;;  %v1101_v12 = vmax.f32 %v845_v3, 0.0  ;;  %v849_v14 = vadd.f32 %v4742_v7, %v586_v5 }
  0x49   :  { %v1102_v13 = vmax.f32 %v846_v4, 0.0  ;;  %v3192_v15 = vunpack.c.l.bf16 %v4317_v0  ;;  %v3693_v17 = vpack.c.bf16 %v1099_v6, %v1098_v2  ;;  %v1103_v18 = vmax.f32 %v847_v9, 0.0  ;;  %v4324_v2 = vld [vmem:[#allocation2 + $0x78] sm:$0xff]  }
  0x4a   :  { %v1104_v19 = vmax.f32 %v848_v10, 0.0  ;;  %v3193_v20 = vunpack.c.h.bf16 %v4317_v0  ;;  %v3698_v21 = vpack.c.bf16 %v1101_v12, %v1100_v8  ;;  %v1105_v22 = vmax.f32 %v849_v14, 0.0  ;;  %v4325_v12 = vld [vmem:[#allocation2 + $0x80] sm:$0xff]  }
  0x4b   :  { %v587_v23 = vmul.f32 %v3192_v15, %v4740_v1  ;;  %v3196_v24 = vunpack.c.l.bf16 %v4318_v11  ;;  %4440 = vst [vmem:[#allocation8 + $0x20] sm:$0xff] %v3693_v17   ;;  %v3703_v26 = vpack.c.bf16 %v1103_v18, %v1102_v13  ;;  %v3197_v28 = vunpack.c.h.bf16 %v4318_v11 }
  0x4c   :  { %v588_v27 = vmul.f32 %v3193_v20, %v4740_v1  ;;  %v3200_v29 = vunpack.c.l.bf16 %v4319_v16  ;;  %4441 = vst [vmem:[#allocation8 + $0x28] sm:$0xff] %v3698_v21   ;;  %v3708_v30 = vpack.c.bf16 %v1105_v22, %v1104_v19  ;;  %v3201_v33 = vunpack.c.h.bf16 %v4319_v16 }
  0x4d   :  { %v850_v31 = vadd.f32 %v4742_v7, %v587_v23  ;;  %v589_v32 = vmul.f32 %v3196_v24, %v4740_v1  ;;  %4442 = vst [vmem:[#allocation8 + $0x30] sm:$0xff] %v3703_v26   ;;  %v590_v35 = vmul.f32 %v3197_v28, %v4740_v1  ;;  %v3204_v37 = vunpack.c.l.bf16 %v4320_v25 }
  0x4e   :  { %v851_v34 = vadd.f32 %v4742_v7, %v588_v27  ;;  %v591_v36 = vmul.f32 %v3200_v29, %v4740_v1  ;;  %4443 = vst [vmem:[#allocation8 + $0x38] sm:$0xff] %v3708_v30   ;;  %v592_v41 = vmul.f32 %v3201_v33, %v4740_v1  ;;  %v3205_v42 = vunpack.c.h.bf16 %v4320_v25  ;;  %v4326_v29 = vld [vmem:[#allocation2 + $0x88] sm:$0xff]  }
  0x4f   :  { %v1106_v39 = vmax.f32 %v850_v31, 0.0  ;;  %v852_v40 = vadd.f32 %v4742_v7, %v589_v32  ;;  %v853_v44 = vadd.f32 %v4742_v7, %v590_v35  ;;  %v593_v46 = vmul.f32 %v3204_v37, %v4740_v1 }
  0x50   :  { %v1107_v43 = vmax.f32 %v851_v34, 0.0  ;;  %v854_v45 = vadd.f32 %v4742_v7, %v591_v36  ;;  %v855_v48 = vadd.f32 %v4742_v7, %v592_v41  ;;  %v594_v49 = vmul.f32 %v3205_v42, %v4740_v1  ;;  %v4327_v34 = vld [vmem:[#allocation2 + $0x90] sm:$0xff]  }
  0x51   :  { %v1108_v47 = vmax.f32 %v852_v40, 0.0  ;;  %v3208_v50 = vunpack.c.l.bf16 %v4321_v38  ;;  %v1109_v53 = vmax.f32 %v853_v44, 0.0  ;;  %v856_v55 = vadd.f32 %v4742_v7, %v593_v46 }
  0x52   :  { %v3713_v52 = vpack.c.bf16 %v1107_v43, %v1106_v39  ;;  %v1110_v54 = vmax.f32 %v854_v45, 0.0  ;;  %v1111_v56 = vmax.f32 %v855_v48, 0.0  ;;  %v857_v57 = vadd.f32 %v4742_v7, %v594_v49  ;;  %v4328_v43 = vld [vmem:[#allocation2 + $0x98] sm:$0xff]  }
  0x53   :  { %v3209_v58 = vunpack.c.h.bf16 %v4321_v38  ;;  %v595_v59 = vmul.f32 %v3208_v50, %v4740_v1  ;;  %v3718_v61 = vpack.c.bf16 %v1109_v53, %v1108_v47  ;;  %v1112_v62 = vmax.f32 %v856_v55, 0.0 }
  0x54   :  { %4444 = vst [vmem:[#allocation8 + $0x40] sm:$0xff] %v3713_v52   ;;  %v3212_v63 = vunpack.c.l.bf16 %v4322_v51  ;;  %v3213_v0 = vunpack.c.h.bf16 %v4322_v51  ;;  %v3723_v3 = vpack.c.bf16 %v1111_v56, %v1110_v54  ;;  %v1113_v4 = vmax.f32 %v857_v57, 0.0  ;;  %v4329_v56 = vld [vmem:[#allocation2 + $0xa0] sm:$0xff]  }
  0x55   :  { %v596_v5 = vmul.f32 %v3209_v58, %v4740_v1  ;;  %v858_v6 = vadd.f32 %v4742_v7, %v595_v59  ;;  %4445 = vst [vmem:[#allocation8 + $0x48] sm:$0xff] %v3718_v61   ;;  %v3216_v10 = vunpack.c.l.bf16 %v4323_v60  ;;  %v3217_v11 = vunpack.c.h.bf16 %v4323_v60 }
  0x56   :  { %v597_v8 = vmul.f32 %v3212_v63, %v4740_v1  ;;  %v598_v9 = vmul.f32 %v3213_v0, %v4740_v1  ;;  %4446 = vst [vmem:[#allocation8 + $0x50] sm:$0xff] %v3723_v3   ;;  %v3728_v13 = vpack.c.bf16 %v1113_v4, %v1112_v62  ;;  %v3220_v16 = vunpack.c.l.bf16 %v4324_v2 }
  0x57   :  { %v859_v14 = vadd.f32 %v4742_v7, %v596_v5  ;;  %v1114_v15 = vmax.f32 %v858_v6, 0.0  ;;  %v599_v19 = vmul.f32 %v3216_v10, %v4740_v1  ;;  %v600_v20 = vmul.f32 %v3217_v11, %v4740_v1 }
  0x58   :  { %v860_v17 = vadd.f32 %v4742_v7, %v597_v8  ;;  %v861_v18 = vadd.f32 %v4742_v7, %v598_v9  ;;  %4447 = vst [vmem:[#allocation8 + $0x58] sm:$0xff] %v3728_v13   ;;  %v3221_v22 = vunpack.c.h.bf16 %v4324_v2  ;;  %v601_v23 = vmul.f32 %v3220_v16, %v4740_v1  ;;  %v4330_v2 = vld [vmem:[#allocation2 + $0xa8] sm:$0xff]   ;;  %v4331_v16 = vld [vmem:[#allocation2 + $0xb0] sm:$0xff]  }
  0x59   :  { %v1115_v21 = vmax.f32 %v859_v14, 0.0  ;;  %v3224_v24 = vunpack.c.l.bf16 %v4325_v12  ;;  %v862_v27 = vadd.f32 %v4742_v7, %v599_v19  ;;  %v863_v28 = vadd.f32 %v4742_v7, %v600_v20 }
  0x5a   :  { %v1116_v25 = vmax.f32 %v860_v17, 0.0  ;;  %v1117_v26 = vmax.f32 %v861_v18, 0.0  ;;  %v602_v31 = vmul.f32 %v3221_v22, %v4740_v1  ;;  %v864_v32 = vadd.f32 %v4742_v7, %v601_v23 }
  0x5b   :  { %v3733_v30 = vpack.c.bf16 %v1115_v21, %v1114_v15  ;;  %v3225_v33 = vunpack.c.h.bf16 %v4325_v12  ;;  %v1118_v36 = vmax.f32 %v862_v27, 0.0  ;;  %v1119_v37 = vmax.f32 %v863_v28, 0.0  ;;  %v4332_v21 = vld [vmem:[#allocation2 + $0xb8] sm:$0xff]  }
  0x5c   :  { %v3738_v35 = vpack.c.bf16 %v1117_v26, %v1116_v25  ;;  %v603_v38 = vmul.f32 %v3224_v24, %v4740_v1  ;;  %v865_v39 = vadd.f32 %v4742_v7, %v602_v31  ;;  %v1120_v40 = vmax.f32 %v864_v32, 0.0 }
  0x5d   :  { %4448 = vst [vmem:[#allocation8 + $0x60] sm:$0xff] %v3733_v30   ;;  %v604_v41 = vmul.f32 %v3225_v33, %v4740_v1  ;;  %v3228_v42 = vunpack.c.l.bf16 %v4326_v29  ;;  %v3743_v44 = vpack.c.bf16 %v1119_v37, %v1118_v36  ;;  %v3229_v46 = vunpack.c.h.bf16 %v4326_v29 }
  0x5e   :  { %4449 = vst [vmem:[#allocation8 + $0x68] sm:$0xff] %v3738_v35   ;;  %v866_v45 = vadd.f32 %v4742_v7, %v603_v38  ;;  %v3232_v47 = vunpack.c.l.bf16 %v4327_v34  ;;  %v1121_v48 = vmax.f32 %v865_v39, 0.0  ;;  %v3233_v51 = vunpack.c.h.bf16 %v4327_v34  ;;  %v4333_v34 = vld [vmem:[#allocation2 + $0xc0] sm:$0xff]  }
  0x5f   :  { %v867_v49 = vadd.f32 %v4742_v7, %v604_v41  ;;  %v605_v50 = vmul.f32 %v3228_v42, %v4740_v1  ;;  %4450 = vst [vmem:[#allocation8 + $0x70] sm:$0xff] %v3743_v44   ;;  %v606_v53 = vmul.f32 %v3229_v46, %v4740_v1  ;;  %v3236_v55 = vunpack.c.l.bf16 %v4328_v43 }
  0x60   :  { %v1122_v52 = vmax.f32 %v866_v45, 0.0  ;;  %v607_v54 = vmul.f32 %v3232_v47, %v4740_v1  ;;  %v3748_v57 = vpack.c.bf16 %v1121_v48, %v1120_v40  ;;  %v608_v60 = vmul.f32 %v3233_v51, %v4740_v1  ;;  %v4334_v47 = vld [vmem:[#allocation2 + $0xc8] sm:$0xff]  }
  0x61   :  { %v1123_v58 = vmax.f32 %v867_v49, 0.0  ;;  %v868_v59 = vadd.f32 %v4742_v7, %v605_v50  ;;  %v869_v61 = vadd.f32 %v4742_v7, %v606_v53  ;;  %v3237_v63 = vunpack.c.h.bf16 %v4328_v43 }
  0x62   :  { %v870_v62 = vadd.f32 %v4742_v7, %v607_v54  ;;  %v609_v0 = vmul.f32 %v3236_v55, %v4740_v1  ;;  %4451 = vst [vmem:[#allocation8 + $0x78] sm:$0xff] %v3748_v57   ;;  %v871_v5 = vadd.f32 %v4742_v7, %v608_v60  ;;  %v3240_v6 = vunpack.c.l.bf16 %v4329_v56 }
  0x63   :  { %v3753_v3 = vpack.c.bf16 %v1123_v58, %v1122_v52  ;;  %v1124_v4 = vmax.f32 %v868_v59, 0.0  ;;  %v1125_v8 = vmax.f32 %v869_v61, 0.0  ;;  %v610_v10 = vmul.f32 %v3237_v63, %v4740_v1  ;;  %v4335_v52 = vld [vmem:[#allocation2 + $0xd0] sm:$0xff]   ;;  %v4336_v61 = vld [vmem:[#allocation2 + $0xd8] sm:$0xff]  }
  0x64   :  { %v1126_v9 = vmax.f32 %v870_v62, 0.0  ;;  %v872_v11 = vadd.f32 %v4742_v7, %v609_v0  ;;  %v1127_v12 = vmax.f32 %v871_v5, 0.0  ;;  %v3241_v13 = vunpack.c.h.bf16 %v4329_v56 }
  0x65   :  { %4452 = vst [vmem:[#allocation8 + $0x80] sm:$0xff] %v3753_v3   ;;  %v611_v14 = vmul.f32 %v3240_v6, %v4740_v1  ;;  %v3244_v15 = vunpack.c.l.bf16 %v4330_v2  ;;  %v3758_v17 = vpack.c.bf16 %v1125_v8, %v1124_v4  ;;  %v873_v18 = vadd.f32 %v4742_v7, %v610_v10 }
  0x66   :  { %v1128_v19 = vmax.f32 %v872_v11, 0.0  ;;  %v3245_v20 = vunpack.c.h.bf16 %v4330_v2  ;;  %v3763_v22 = vpack.c.bf16 %v1127_v12, %v1126_v9  ;;  %v612_v23 = vmul.f32 %v3241_v13, %v4740_v1  ;;  %v4337_v12 = vld [vmem:[#allocation2 + $0xe0] sm:$0xff]  }
  0x67   :  { %v874_v24 = vadd.f32 %v4742_v7, %v611_v14  ;;  %v613_v25 = vmul.f32 %v3244_v15, %v4740_v1  ;;  %4453 = vst [vmem:[#allocation8 + $0x88] sm:$0xff] %v3758_v17   ;;  %v1129_v26 = vmax.f32 %v873_v18, 0.0  ;;  %v3248_v28 = vunpack.c.l.bf16 %v4331_v16 }
  0x68   :  { %v614_v27 = vmul.f32 %v3245_v20, %v4740_v1  ;;  %v3249_v29 = vunpack.c.h.bf16 %v4331_v16  ;;  %4454 = vst [vmem:[#allocation8 + $0x90] sm:$0xff] %v3763_v22   ;;  %v875_v30 = vadd.f32 %v4742_v7, %v612_v23  ;;  %v3252_v33 = vunpack.c.l.bf16 %v4332_v21 }
  0x69   :  { %v1130_v31 = vmax.f32 %v874_v24, 0.0  ;;  %v876_v32 = vadd.f32 %v4742_v7, %v613_v25  ;;  %v3768_v35 = vpack.c.bf16 %v1129_v26, %v1128_v19  ;;  %v615_v37 = vmul.f32 %v3248_v28, %v4740_v1 }
  0x6a   :  { %v877_v36 = vadd.f32 %v4742_v7, %v614_v27  ;;  %v616_v38 = vmul.f32 %v3249_v29, %v4740_v1  ;;  %v1131_v39 = vmax.f32 %v875_v30, 0.0  ;;  %v3253_v41 = vunpack.c.h.bf16 %v4332_v21  ;;  %v4338_v21 = vld [vmem:[#allocation2 + $0xe8] sm:$0xff]  }
  0x6b   :  { %v1132_v40 = vmax.f32 %v876_v32, 0.0  ;;  %v617_v42 = vmul.f32 %v3252_v33, %v4740_v1  ;;  %4455 = vst [vmem:[#allocation8 + $0x98] sm:$0xff] %v3768_v35   ;;  %v878_v44 = vadd.f32 %v4742_v7, %v615_v37  ;;  %v3256_v46 = vunpack.c.l.bf16 %v4333_v34 }
  0x6c   :  { %v1133_v43 = vmax.f32 %v877_v36, 0.0  ;;  %v879_v45 = vadd.f32 %v4742_v7, %v616_v38  ;;  %v3773_v48 = vpack.c.bf16 %v1131_v39, %v1130_v31  ;;  %v618_v49 = vmul.f32 %v3253_v41, %v4740_v1  ;;  %v4340_v39 = vld [vmem:[#allocation2 + $0xf8] sm:$0xff]  }
  0x6d   :  { %v880_v50 = vadd.f32 %v4742_v7, %v617_v42  ;;  %v3257_v51 = vunpack.c.h.bf16 %v4333_v34  ;;  %v1134_v54 = vmax.f32 %v878_v44, 0.0  ;;  %v619_v56 = vmul.f32 %v3256_v46, %v4740_v1  ;;  %v4339_v34 = vld [vmem:[#allocation2 + $0xf0] sm:$0xff]  }
  0x6e   :  { %v3778_v53 = vpack.c.bf16 %v1133_v43, %v1132_v40  ;;  %v1135_v55 = vmax.f32 %v879_v45, 0.0  ;;  %4456 = vst [vmem:[#allocation8 + $0xa0] sm:$0xff] %v3773_v48   ;;  %v881_v57 = vadd.f32 %v4742_v7, %v618_v49  ;;  %v3260_v60 = vunpack.c.l.bf16 %v4334_v47 }
  0x6f   :  { %v1136_v58 = vmax.f32 %v880_v50, 0.0  ;;  %v620_v59 = vmul.f32 %v3257_v51, %v4740_v1  ;;  %v882_v63 = vadd.f32 %v4742_v7, %v619_v56  ;;  %v3261_v0 = vunpack.c.h.bf16 %v4334_v47 }
  0x70   :  { %4457 = vst [vmem:[#allocation8 + $0xa8] sm:$0xff] %v3778_v53   ;;  %v3783_v62 = vpack.c.bf16 %v1135_v55, %v1134_v54  ;;  %v3264_v2 = vunpack.c.l.bf16 %v4335_v52  ;;  %v1137_v3 = vmax.f32 %v881_v57, 0.0  ;;  %v621_v5 = vmul.f32 %v3260_v60, %v4740_v1 }
  0x71   :  { %v883_v4 = vadd.f32 %v4742_v7, %v620_v59  ;;  %v3265_v6 = vunpack.c.h.bf16 %v4335_v52  ;;  %v1138_v8 = vmax.f32 %v882_v63, 0.0  ;;  %v622_v9 = vmul.f32 %v3261_v0, %v4740_v1  ;;  %v4341_v52 = vld [vmem:[#allocation2 + $0x100] sm:$0xff]  }
  0x72   :  { %4458 = vst [vmem:[#allocation8 + $0xb0] sm:$0xff] %v3783_v62   ;;  %v623_v10 = vmul.f32 %v3264_v2, %v4740_v1  ;;  %v3268_v11 = vunpack.c.l.bf16 %v4336_v61  ;;  %v3788_v13 = vpack.c.bf16 %v1137_v3, %v1136_v58  ;;  %v884_v15 = vadd.f32 %v4742_v7, %v621_v5  ;;  %v4342_v2 = vld [vmem:[#allocation2 + $0x108] sm:$0xff]  }
  0x73   :  { %v1139_v14 = vmax.f32 %v883_v4, 0.0  ;;  %v624_v16 = vmul.f32 %v3265_v6, %v4740_v1  ;;  %v885_v17 = vadd.f32 %v4742_v7, %v622_v9  ;;  %v3269_v19 = vunpack.c.h.bf16 %v4336_v61 }
  0x74   :  { %v886_v18 = vadd.f32 %v4742_v7, %v623_v10  ;;  %v625_v20 = vmul.f32 %v3268_v11, %v4740_v1  ;;  %4459 = vst [vmem:[#allocation8 + $0xb8] sm:$0xff] %v3788_v13   ;;  %v1140_v23 = vmax.f32 %v884_v15, 0.0  ;;  %v3272_v25 = vunpack.c.l.bf16 %v4337_v12 }
  0x75   :  { %v3793_v22 = vpack.c.bf16 %v1139_v14, %v1138_v8  ;;  %v887_v24 = vadd.f32 %v4742_v7, %v624_v16  ;;  %v1141_v26 = vmax.f32 %v885_v17, 0.0  ;;  %v626_v28 = vmul.f32 %v3269_v19, %v4740_v1  ;;  %v4343_v8 = vld [vmem:[#allocation2 + $0x110] sm:$0xff]   ;;  %v4344_v17 = vld [vmem:[#allocation2 + $0x118] sm:$0xff]  }
  0x76   :  { %v1142_v27 = vmax.f32 %v886_v18, 0.0  ;;  %v888_v29 = vadd.f32 %v4742_v7, %v625_v20  ;;  %v3273_v31 = vunpack.c.h.bf16 %v4337_v12  ;;  %v627_v32 = vmul.f32 %v3272_v25, %v4740_v1 }
  0x77   :  { %4460 = vst [vmem:[#allocation8 + $0xc0] sm:$0xff] %v3793_v22   ;;  %v1143_v30 = vmax.f32 %v887_v24, 0.0  ;;  %v3276_v33 = vunpack.c.l.bf16 %v4338_v21  ;;  %v3798_v35 = vpack.c.bf16 %v1141_v26, %v1140_v23  ;;  %v889_v36 = vadd.f32 %v4742_v7, %v626_v28 }
  0x78   :  { %v1144_v37 = vmax.f32 %v888_v29, 0.0  ;;  %v3277_v38 = vunpack.c.h.bf16 %v4338_v21  ;;  %v628_v41 = vmul.f32 %v3273_v31, %v4740_v1  ;;  %v890_v42 = vadd.f32 %v4742_v7, %v627_v32 }
  0x79   :  { %v3803_v40 = vpack.c.bf16 %v1143_v30, %v1142_v27  ;;  %v629_v43 = vmul.f32 %v3276_v33, %v4740_v1  ;;  %4461 = vst [vmem:[#allocation8 + $0xc8] sm:$0xff] %v3798_v35   ;;  %v1145_v44 = vmax.f32 %v889_v36, 0.0  ;;  %v3280_v46 = vunpack.c.l.bf16 %v4339_v34  ;;  %v4345_v30 = vld [vmem:[#allocation2 + $0x120] sm:$0xff]  }
  0x7a   :  { %v630_v45 = vmul.f32 %v3277_v38, %v4740_v1  ;;  %v3281_v47 = vunpack.c.h.bf16 %v4339_v34  ;;  %v891_v48 = vadd.f32 %v4742_v7, %v628_v41  ;;  %v1146_v49 = vmax.f32 %v890_v42, 0.0 }
  0x7b   :  { %4462 = vst [vmem:[#allocation8 + $0xd0] sm:$0xff] %v3803_v40   ;;  %v892_v50 = vadd.f32 %v4742_v7, %v629_v43  ;;  %v3284_v51 = vunpack.c.l.bf16 %v4340_v39  ;;  %v3808_v53 = vpack.c.bf16 %v1145_v44, %v1144_v37  ;;  %v631_v55 = vmul.f32 %v3280_v46, %v4740_v1 }
  0x7c   :  { %v893_v54 = vadd.f32 %v4742_v7, %v630_v45  ;;  %v632_v56 = vmul.f32 %v3281_v47, %v4740_v1  ;;  %v1147_v57 = vmax.f32 %v891_v48, 0.0  ;;  %v3285_v59 = vunpack.c.h.bf16 %v4340_v39  ;;  %v4346_v39 = vld [vmem:[#allocation2 + $0x128] sm:$0xff]  }
  0x7d   :  { %v1148_v58 = vmax.f32 %v892_v50, 0.0  ;;  %v633_v60 = vmul.f32 %v3284_v51, %v4740_v1  ;;  %4463 = vst [vmem:[#allocation8 + $0xd8] sm:$0xff] %v3808_v53   ;;  %v894_v62 = vadd.f32 %v4742_v7, %v631_v55  ;;  %v3288_v0 = vunpack.c.l.bf16 %v4341_v52 }
  0x7e   :  { %v1149_v61 = vmax.f32 %v893_v54, 0.0  ;;  %v895_v63 = vadd.f32 %v4742_v7, %v632_v56  ;;  %v3813_v3 = vpack.c.bf16 %v1147_v57, %v1146_v49  ;;  %v634_v4 = vmul.f32 %v3285_v59, %v4740_v1  ;;  %v4348_v57 = vld [vmem:[#allocation2 + $0x138] sm:$0xff]  }
  0x7f   :  { %v896_v5 = vadd.f32 %v4742_v7, %v633_v60  ;;  %v3289_v6 = vunpack.c.h.bf16 %v4341_v52  ;;  %v1150_v10 = vmax.f32 %v894_v62, 0.0  ;;  %v635_v12 = vmul.f32 %v3288_v0, %v4740_v1  ;;  %v4347_v52 = vld [vmem:[#allocation2 + $0x130] sm:$0xff]  }
  0x80   :  { %v3818_v9 = vpack.c.bf16 %v1149_v61, %v1148_v58  ;;  %v1151_v11 = vmax.f32 %v895_v63, 0.0  ;;  %4464 = vst [vmem:[#allocation8 + $0xe0] sm:$0xff] %v3813_v3   ;;  %v897_v13 = vadd.f32 %v4742_v7, %v634_v4  ;;  %v3292_v16 = vunpack.c.l.bf16 %v4342_v2 }
  0x81   :  { %v1152_v14 = vmax.f32 %v896_v5, 0.0  ;;  %v636_v15 = vmul.f32 %v3289_v6, %v4740_v1  ;;  %v898_v19 = vadd.f32 %v4742_v7, %v635_v12  ;;  %v3293_v20 = vunpack.c.h.bf16 %v4342_v2 }
  0x82   :  { %4465 = vst [vmem:[#allocation8 + $0xe8] sm:$0xff] %v3818_v9   ;;  %v3823_v18 = vpack.c.bf16 %v1151_v11, %v1150_v10  ;;  %v3296_v21 = vunpack.c.l.bf16 %v4343_v8  ;;  %v1153_v22 = vmax.f32 %v897_v13, 0.0  ;;  %v637_v24 = vmul.f32 %v3292_v16, %v4740_v1 }
  0x83   :  { %v899_v23 = vadd.f32 %v4742_v7, %v636_v15  ;;  %v3297_v25 = vunpack.c.h.bf16 %v4343_v8  ;;  %v1154_v26 = vmax.f32 %v898_v19, 0.0  ;;  %v638_v27 = vmul.f32 %v3293_v20, %v4740_v1  ;;  %v4349_v8 = vld [vmem:[#allocation2 + $0x140] sm:$0xff]  }
  0x84   :  { %4466 = vst [vmem:[#allocation8 + $0xf0] sm:$0xff] %v3823_v18   ;;  %v639_v28 = vmul.f32 %v3296_v21, %v4740_v1  ;;  %v3300_v29 = vunpack.c.l.bf16 %v4344_v17  ;;  %v3828_v31 = vpack.c.bf16 %v1153_v22, %v1152_v14  ;;  %v900_v33 = vadd.f32 %v4742_v7, %v637_v24  ;;  %v4350_v21 = vld [vmem:[#allocation2 + $0x148] sm:$0xff]  }
  0x85   :  { %v1155_v32 = vmax.f32 %v899_v23, 0.0  ;;  %v640_v34 = vmul.f32 %v3297_v25, %v4740_v1  ;;  %v901_v35 = vadd.f32 %v4742_v7, %v638_v27  ;;  %v3301_v37 = vunpack.c.h.bf16 %v4344_v17 }
  0x86   :  { %v902_v36 = vadd.f32 %v4742_v7, %v639_v28  ;;  %v641_v38 = vmul.f32 %v3300_v29, %v4740_v1  ;;  %4467 = vst [vmem:[#allocation8 + $0xf8] sm:$0xff] %v3828_v31   ;;  %v1156_v41 = vmax.f32 %v900_v33, 0.0  ;;  %v3304_v43 = vunpack.c.l.bf16 %v4345_v30 }
  0x87   :  { %v3833_v40 = vpack.c.bf16 %v1155_v32, %v1154_v26  ;;  %v903_v42 = vadd.f32 %v4742_v7, %v640_v34  ;;  %v1157_v44 = vmax.f32 %v901_v35, 0.0  ;;  %v642_v46 = vmul.f32 %v3301_v37, %v4740_v1  ;;  %v4351_v26 = vld [vmem:[#allocation2 + $0x150] sm:$0xff]   ;;  %v4352_v35 = vld [vmem:[#allocation2 + $0x158] sm:$0xff]  }
  0x88   :  { %v1158_v45 = vmax.f32 %v902_v36, 0.0  ;;  %v904_v47 = vadd.f32 %v4742_v7, %v641_v38  ;;  %v3305_v49 = vunpack.c.h.bf16 %v4345_v30  ;;  %v643_v50 = vmul.f32 %v3304_v43, %v4740_v1 }
  0x89   :  { %4468 = vst [vmem:[#allocation8 + $0x100] sm:$0xff] %v3833_v40   ;;  %v1159_v48 = vmax.f32 %v903_v42, 0.0  ;;  %v3308_v51 = vunpack.c.l.bf16 %v4346_v39  ;;  %v3838_v53 = vpack.c.bf16 %v1157_v44, %v1156_v41  ;;  %v905_v54 = vadd.f32 %v4742_v7, %v642_v46 }
  0x8a   :  { %v1160_v55 = vmax.f32 %v904_v47, 0.0  ;;  %v3309_v56 = vunpack.c.h.bf16 %v4346_v39  ;;  %v644_v59 = vmul.f32 %v3305_v49, %v4740_v1  ;;  %v906_v60 = vadd.f32 %v4742_v7, %v643_v50 }
  0x8b   :  { %v3843_v58 = vpack.c.bf16 %v1159_v48, %v1158_v45  ;;  %v645_v61 = vmul.f32 %v3308_v51, %v4740_v1  ;;  %4469 = vst [vmem:[#allocation8 + $0x108] sm:$0xff] %v3838_v53   ;;  %v1161_v62 = vmax.f32 %v905_v54, 0.0  ;;  %v3312_v0 = vunpack.c.l.bf16 %v4347_v52  ;;  %v4353_v48 = vld [vmem:[#allocation2 + $0x160] sm:$0xff]  }
  0x8c   :  { %v646_v63 = vmul.f32 %v3309_v56, %v4740_v1  ;;  %v3313_v2 = vunpack.c.h.bf16 %v4347_v52  ;;  %v907_v3 = vadd.f32 %v4742_v7, %v644_v59  ;;  %v1162_v4 = vmax.f32 %v906_v60, 0.0 }
  0x8d   :  { %4470 = vst [vmem:[#allocation8 + $0x110] sm:$0xff] %v3843_v58   ;;  %v908_v5 = vadd.f32 %v4742_v7, %v645_v61  ;;  %v3316_v6 = vunpack.c.l.bf16 %v4348_v57  ;;  %v3848_v9 = vpack.c.bf16 %v1161_v62, %v1160_v55  ;;  %v647_v11 = vmul.f32 %v3312_v0, %v4740_v1 }
  0x8e   :  { %v909_v10 = vadd.f32 %v4742_v7, %v646_v63  ;;  %v648_v12 = vmul.f32 %v3313_v2, %v4740_v1  ;;  %v1163_v13 = vmax.f32 %v907_v3, 0.0  ;;  %v3317_v15 = vunpack.c.h.bf16 %v4348_v57  ;;  %v4354_v57 = vld [vmem:[#allocation2 + $0x168] sm:$0xff]  }
  0x8f   :  { %v1164_v14 = vmax.f32 %v908_v5, 0.0  ;;  %v649_v16 = vmul.f32 %v3316_v6, %v4740_v1  ;;  %4471 = vst [vmem:[#allocation8 + $0x118] sm:$0xff] %v3848_v9   ;;  %v910_v18 = vadd.f32 %v4742_v7, %v647_v11  ;;  %v3320_v20 = vunpack.c.l.bf16 %v4349_v8 }
  0x90   :  { %v1165_v17 = vmax.f32 %v909_v10, 0.0  ;;  %v911_v19 = vadd.f32 %v4742_v7, %v648_v12  ;;  %v3853_v22 = vpack.c.bf16 %v1163_v13, %v1162_v4  ;;  %v650_v23 = vmul.f32 %v3317_v15, %v4740_v1  ;;  %v4356_v13 = vld [vmem:[#allocation2 + $0x178] sm:$0xff]  }
  0x91   :  { %v912_v24 = vadd.f32 %v4742_v7, %v649_v16  ;;  %v3321_v25 = vunpack.c.h.bf16 %v4349_v8  ;;  %v1166_v28 = vmax.f32 %v910_v18, 0.0  ;;  %v651_v30 = vmul.f32 %v3320_v20, %v4740_v1  ;;  %v4355_v8 = vld [vmem:[#allocation2 + $0x170] sm:$0xff]  }
  0x92   :  { %v3858_v27 = vpack.c.bf16 %v1165_v17, %v1164_v14  ;;  %v1167_v29 = vmax.f32 %v911_v19, 0.0  ;;  %4472 = vst [vmem:[#allocation8 + $0x120] sm:$0xff] %v3853_v22   ;;  %v913_v31 = vadd.f32 %v4742_v7, %v650_v23  ;;  %v3324_v34 = vunpack.c.l.bf16 %v4350_v21 }
  0x93   :  { %v1168_v32 = vmax.f32 %v912_v24, 0.0  ;;  %v652_v33 = vmul.f32 %v3321_v25, %v4740_v1  ;;  %v914_v37 = vadd.f32 %v4742_v7, %v651_v30  ;;  %v3325_v38 = vunpack.c.h.bf16 %v4350_v21 }
  0x94   :  { %4473 = vst [vmem:[#allocation8 + $0x128] sm:$0xff] %v3858_v27   ;;  %v3863_v36 = vpack.c.bf16 %v1167_v29, %v1166_v28  ;;  %v3328_v39 = vunpack.c.l.bf16 %v4351_v26  ;;  %v1169_v40 = vmax.f32 %v913_v31, 0.0  ;;  %v653_v42 = vmul.f32 %v3324_v34, %v4740_v1 }
  0x95   :  { %v915_v41 = vadd.f32 %v4742_v7, %v652_v33  ;;  %v3329_v43 = vunpack.c.h.bf16 %v4351_v26  ;;  %v1170_v44 = vmax.f32 %v914_v37, 0.0  ;;  %v654_v45 = vmul.f32 %v3325_v38, %v4740_v1  ;;  %v4357_v26 = vld [vmem:[#allocation2 + $0x180] sm:$0xff]  }
  0x96   :  { %4474 = vst [vmem:[#allocation8 + $0x130] sm:$0xff] %v3863_v36   ;;  %v655_v46 = vmul.f32 %v3328_v39, %v4740_v1  ;;  %v3332_v47 = vunpack.c.l.bf16 %v4352_v35  ;;  %v3868_v49 = vpack.c.bf16 %v1169_v40, %v1168_v32  ;;  %v916_v51 = vadd.f32 %v4742_v7, %v653_v42  ;;  %v4358_v39 = vld [vmem:[#allocation2 + $0x188] sm:$0xff]  }
  0x97   :  { %v1171_v50 = vmax.f32 %v915_v41, 0.0  ;;  %v656_v52 = vmul.f32 %v3329_v43, %v4740_v1  ;;  %v917_v53 = vadd.f32 %v4742_v7, %v654_v45  ;;  %v3333_v55 = vunpack.c.h.bf16 %v4352_v35  ;;  %v4933_v41 = vld [vmem:[#allocation5] ss:$0 sm:$0xff]  ;;  %v4936_v43 = vld [vmem:[#allocation7] ss:$0 sm:$0xff] }
  0x98   :  { %v918_v54 = vadd.f32 %v4742_v7, %v655_v46  ;;  %v657_v56 = vmul.f32 %v3332_v47, %v4740_v1  ;;  %4475 = vst [vmem:[#allocation8 + $0x138] sm:$0xff] %v3868_v49   ;;  %v1172_v59 = vmax.f32 %v916_v51, 0.0  ;;  %v3336_v61 = vunpack.c.l.bf16 %v4353_v48  ;;  %v4359_v46 = vld [vmem:[#allocation2 + $0x190] sm:$0xff]  }
  0x99   :  { %v3873_v58 = vpack.c.bf16 %v1171_v50, %v1170_v44  ;;  %v919_v60 = vadd.f32 %v4742_v7, %v656_v52  ;;  %v1173_v62 = vmax.f32 %v917_v53, 0.0  ;;  %v658_v0 = vmul.f32 %v3333_v55, %v4740_v1  ;;  %v4360_v53 = vld [vmem:[#allocation2 + $0x198] sm:$0xff]  }
  0x9a   :  { %v1174_v63 = vmax.f32 %v918_v54, 0.0  ;;  %v920_v2 = vadd.f32 %v4742_v7, %v657_v56  ;;  %v3337_v4 = vunpack.c.h.bf16 %v4353_v48  ;;  %v659_v5 = vmul.f32 %v3336_v61, %v4740_v1 }
  0x9b   :  { %4476 = vst [vmem:[#allocation8 + $0x140] sm:$0xff] %v3873_v58   ;;  %v1175_v3 = vmax.f32 %v919_v60, 0.0  ;;  %v3340_v6 = vunpack.c.l.bf16 %v4354_v57  ;;  %v3878_v9 = vpack.c.bf16 %v1173_v62, %v1172_v59  ;;  %v921_v10 = vadd.f32 %v4742_v7, %v658_v0 }
  0x9c   :  { %v1176_v11 = vmax.f32 %v920_v2, 0.0  ;;  %v3341_v12 = vunpack.c.h.bf16 %v4354_v57  ;;  %v660_v15 = vmul.f32 %v3337_v4, %v4740_v1  ;;  %v922_v16 = vadd.f32 %v4742_v7, %v659_v5 }
  0x9d   :  { %v3883_v14 = vpack.c.bf16 %v1175_v3, %v1174_v63  ;;  %v661_v17 = vmul.f32 %v3340_v6, %v4740_v1  ;;  %4477 = vst [vmem:[#allocation8 + $0x148] sm:$0xff] %v3878_v9   ;;  %v1177_v18 = vmax.f32 %v921_v10, 0.0  ;;  %v3344_v20 = vunpack.c.l.bf16 %v4355_v8  ;;  %v4361_v3 = vld [vmem:[#allocation2 + $0x1a0] sm:$0xff]  }
  0x9e   :  { %v662_v19 = vmul.f32 %v3341_v12, %v4740_v1  ;;  %v3345_v21 = vunpack.c.h.bf16 %v4355_v8  ;;  %v923_v22 = vadd.f32 %v4742_v7, %v660_v15  ;;  %v1178_v23 = vmax.f32 %v922_v16, 0.0 }
  0x9f   :  { %4478 = vst [vmem:[#allocation8 + $0x150] sm:$0xff] %v3883_v14   ;;  %v924_v24 = vadd.f32 %v4742_v7, %v661_v17  ;;  %v3348_v25 = vunpack.c.l.bf16 %v4356_v13  ;;  %v3888_v27 = vpack.c.bf16 %v1177_v18, %v1176_v11  ;;  %v663_v29 = vmul.f32 %v3344_v20, %v4740_v1 }
  0xa0   :  { %v925_v28 = vadd.f32 %v4742_v7, %v662_v19  ;;  %v664_v30 = vmul.f32 %v3345_v21, %v4740_v1  ;;  %v1179_v31 = vmax.f32 %v923_v22, 0.0  ;;  %v3349_v33 = vunpack.c.h.bf16 %v4356_v13  ;;  %v4362_v13 = vld [vmem:[#allocation2 + $0x1a8] sm:$0xff]  }
  0xa1   :  { %v1180_v32 = vmax.f32 %v924_v24, 0.0  ;;  %v665_v34 = vmul.f32 %v3348_v25, %v4740_v1  ;;  %4479 = vst [vmem:[#allocation8 + $0x158] sm:$0xff] %v3888_v27   ;;  %v926_v36 = vadd.f32 %v4742_v7, %v663_v29  ;;  %v3352_v38 = vunpack.c.l.bf16 %v4357_v26 }
  0xa2   :  { %v1181_v35 = vmax.f32 %v925_v28, 0.0  ;;  %v927_v37 = vadd.f32 %v4742_v7, %v664_v30  ;;  %v3893_v40 = vpack.c.bf16 %v1179_v31, %v1178_v23  ;;  %v666_v42 = vmul.f32 %v4933_v41, %v3349_v33  ;;  %v4364_v31 = vld [vmem:[#allocation2 + $0x1b8] sm:$0xff]  }
  0xa3   :  { %v928_v44 = vadd.f32 %v4936_v43, %v665_v34  ;;  %v3353_v45 = vunpack.c.h.bf16 %v4357_v26  ;;  %v1182_v47 = vmax.f32 %v926_v36, 0.0  ;;  %v667_v49 = vmul.f32 %v4933_v41, %v3352_v38  ;;  %v4363_v26 = vld [vmem:[#allocation2 + $0x1b0] sm:$0xff]  }
  0xa4   :  { %v3898_v1 = vpack.c.bf16 %v1181_v35, %v1180_v32  ;;  %v1183_v48 = vmax.f32 %v927_v37, 0.0  ;;  %4480 = vst [vmem:[#allocation8 + $0x160] sm:$0xff] %v3893_v40   ;;  %v929_v7 = vadd.f32 %v4936_v43, %v666_v42  ;;  %v3356_v52 = vunpack.c.l.bf16 %v4358_v39 }
  0xa5   :  { %v1184_v50 = vmax.f32 %v928_v44, 0.0  ;;  %v668_v51 = vmul.f32 %v4933_v41, %v3353_v45  ;;  %v930_v55 = vadd.f32 %v4936_v43, %v667_v49  ;;  %v3357_v56 = vunpack.c.h.bf16 %v4358_v39 }
  0xa6   :  { %4481 = vst [vmem:[#allocation8 + $0x168] sm:$0xff] %v3898_v1   ;;  %v3903_v54 = vpack.c.bf16 %v1183_v48, %v1182_v47  ;;  %v3360_v57 = vunpack.c.l.bf16 %v4359_v46  ;;  %v1185_v58 = vmax.f32 %v929_v7, 0.0  ;;  %v669_v60 = vmul.f32 %v4933_v41, %v3356_v52 }
  0xa7   :  { %v931_v59 = vadd.f32 %v4936_v43, %v668_v51  ;;  %v3361_v61 = vunpack.c.h.bf16 %v4359_v46  ;;  %v1186_v62 = vmax.f32 %v930_v55, 0.0  ;;  %v670_v63 = vmul.f32 %v4933_v41, %v3357_v56  ;;  %v4365_v46 = vld [vmem:[#allocation2 + $0x1c0] sm:$0xff]  }
  0xa8   :  { %4482 = vst [vmem:[#allocation8 + $0x170] sm:$0xff] %v3903_v54   ;;  %v671_v0 = vmul.f32 %v4933_v41, %v3360_v57  ;;  %v3364_v2 = vunpack.c.l.bf16 %v4360_v53  ;;  %v3908_v4 = vpack.c.bf16 %v1185_v58, %v1184_v50  ;;  %v932_v6 = vadd.f32 %v4936_v43, %v669_v60  ;;  %v4366_v57 = vld [vmem:[#allocation2 + $0x1c8] sm:$0xff]  }
  0xa9   :  { %v1187_v5 = vmax.f32 %v931_v59, 0.0  ;;  %v672_v8 = vmul.f32 %v4933_v41, %v3361_v61  ;;  %v933_v9 = vadd.f32 %v4936_v43, %v670_v63  ;;  %v3365_v11 = vunpack.c.h.bf16 %v4360_v53 }
  0xaa   :  { %v934_v10 = vadd.f32 %v4936_v43, %v671_v0  ;;  %v673_v12 = vmul.f32 %v4933_v41, %v3364_v2  ;;  %4483 = vst [vmem:[#allocation8 + $0x178] sm:$0xff] %v3908_v4   ;;  %v1188_v15 = vmax.f32 %v932_v6, 0.0  ;;  %v3368_v17 = vunpack.c.l.bf16 %v4361_v3 }
  0xab   :  { %v3913_v14 = vpack.c.bf16 %v1187_v5, %v1186_v62  ;;  %v935_v16 = vadd.f32 %v4936_v43, %v672_v8  ;;  %v1189_v18 = vmax.f32 %v933_v9, 0.0  ;;  %v674_v20 = vmul.f32 %v4933_v41, %v3365_v11  ;;  %v4367_v62 = vld [vmem:[#allocation2 + $0x1d0] sm:$0xff]   ;;  %v4368_v9 = vld [vmem:[#allocation2 + $0x1d8] sm:$0xff]  }
  0xac   :  { %v1190_v19 = vmax.f32 %v934_v10, 0.0  ;;  %v936_v21 = vadd.f32 %v4936_v43, %v673_v12  ;;  %v3369_v23 = vunpack.c.h.bf16 %v4361_v3  ;;  %v675_v24 = vmul.f32 %v4933_v41, %v3368_v17 }
  0xad   :  { %4484 = vst [vmem:[#allocation8 + $0x180] sm:$0xff] %v3913_v14   ;;  %v1191_v22 = vmax.f32 %v935_v16, 0.0  ;;  %v3372_v25 = vunpack.c.l.bf16 %v4362_v13  ;;  %v3918_v27 = vpack.c.bf16 %v1189_v18, %v1188_v15  ;;  %v937_v28 = vadd.f32 %v4936_v43, %v674_v20 }
  0xae   :  { %v1192_v29 = vmax.f32 %v936_v21, 0.0  ;;  %v3373_v30 = vunpack.c.h.bf16 %v4362_v13  ;;  %v676_v33 = vmul.f32 %v4933_v41, %v3369_v23  ;;  %v938_v34 = vadd.f32 %v4936_v43, %v675_v24 }
  0xaf   :  { %v3923_v32 = vpack.c.bf16 %v1191_v22, %v1190_v19  ;;  %v677_v35 = vmul.f32 %v4933_v41, %v3372_v25  ;;  %4485 = vst [vmem:[#allocation8 + $0x188] sm:$0xff] %v3918_v27   ;;  %v1193_v36 = vmax.f32 %v937_v28, 0.0  ;;  %v3376_v38 = vunpack.c.l.bf16 %v4363_v26  ;;  %v4369_v22 = vld [vmem:[#allocation2 + $0x1e0] sm:$0xff]  }
  0xb0   :  { %v678_v37 = vmul.f32 %v4933_v41, %v3373_v30  ;;  %v3377_v39 = vunpack.c.h.bf16 %v4363_v26  ;;  %v939_v40 = vadd.f32 %v4936_v43, %v676_v33  ;;  %v1194_v42 = vmax.f32 %v938_v34, 0.0 }
  0xb1   :  { %4486 = vst [vmem:[#allocation8 + $0x190] sm:$0xff] %v3923_v32   ;;  %v940_v44 = vadd.f32 %v4936_v43, %v677_v35  ;;  %v3380_v45 = vunpack.c.l.bf16 %v4364_v31  ;;  %v3928_v1 = vpack.c.bf16 %v1193_v36, %v1192_v29  ;;  %v679_v48 = vmul.f32 %v4933_v41, %v3376_v38 }
  0xb2   :  { %v941_v47 = vadd.f32 %v4936_v43, %v678_v37  ;;  %v680_v49 = vmul.f32 %v4933_v41, %v3377_v39  ;;  %v1195_v7 = vmax.f32 %v939_v40, 0.0  ;;  %v3381_v51 = vunpack.c.h.bf16 %v4364_v31  ;;  %v4370_v31 = vld [vmem:[#allocation2 + $0x1e8] sm:$0xff]  }
  0xb3   :  { %v1196_v50 = vmax.f32 %v940_v44, 0.0  ;;  %v681_v52 = vmul.f32 %v4933_v41, %v3380_v45  ;;  %4487 = vst [vmem:[#allocation8 + $0x198] sm:$0xff] %v3928_v1   ;;  %v942_v54 = vadd.f32 %v4936_v43, %v679_v48  ;;  %v3384_v56 = vunpack.c.l.bf16 %v4365_v46 }
  0xb4   :  { %v1197_v53 = vmax.f32 %v941_v47, 0.0  ;;  %v943_v55 = vadd.f32 %v4936_v43, %v680_v49  ;;  %v3933_v58 = vpack.c.bf16 %v1195_v7, %v1194_v42  ;;  %v682_v59 = vmul.f32 %v4933_v41, %v3381_v51  ;;  %v4372_v7 = vld [vmem:[#allocation2 + $0x1f8] sm:$0xff]  }
  0xb5   :  { %v944_v60 = vadd.f32 %v4936_v43, %v681_v52  ;;  %v3385_v61 = vunpack.c.h.bf16 %v4365_v46  ;;  %v1198_v0 = vmax.f32 %v942_v54, 0.0  ;;  %v683_v3 = vmul.f32 %v4933_v41, %v3384_v56  ;;  %v4371_v46 = vld [vmem:[#allocation2 + $0x1f0] sm:$0xff]  }
  0xb6   :  { %v3938_v63 = vpack.c.bf16 %v1197_v53, %v1196_v50  ;;  %v1199_v2 = vmax.f32 %v943_v55, 0.0  ;;  %4488 = vst [vmem:[#allocation8 + $0x1a0] sm:$0xff] %v3933_v58   ;;  %v945_v4 = vadd.f32 %v4936_v43, %v682_v59  ;;  %v3388_v8 = vunpack.c.l.bf16 %v4366_v57 }
  0xb7   :  { %v1200_v5 = vmax.f32 %v944_v60, 0.0  ;;  %v684_v6 = vmul.f32 %v4933_v41, %v3385_v61  ;;  %v946_v11 = vadd.f32 %v4936_v43, %v683_v3  ;;  %v3389_v12 = vunpack.c.h.bf16 %v4366_v57 }
  0xb8   :  { %4489 = vst [vmem:[#allocation8 + $0x1a8] sm:$0xff] %v3938_v63   ;;  %v3943_v10 = vpack.c.bf16 %v1199_v2, %v1198_v0  ;;  %v3392_v13 = vunpack.c.l.bf16 %v4367_v62  ;;  %v1201_v14 = vmax.f32 %v945_v4, 0.0  ;;  %v685_v16 = vmul.f32 %v4933_v41, %v3388_v8 }
  0xb9   :  { %v947_v15 = vadd.f32 %v4936_v43, %v684_v6  ;;  %v3393_v17 = vunpack.c.h.bf16 %v4367_v62  ;;  %v1202_v18 = vmax.f32 %v946_v11, 0.0  ;;  %v686_v19 = vmul.f32 %v4933_v41, %v3389_v12  ;;  %v4373_v62 = vld [vmem:[#allocation2 + $0x200] sm:$0xff]  }
  0xba   :  { %4490 = vst [vmem:[#allocation8 + $0x1b0] sm:$0xff] %v3943_v10   ;;  %v687_v20 = vmul.f32 %v4933_v41, %v3392_v13  ;;  %v3396_v21 = vunpack.c.l.bf16 %v4368_v9  ;;  %v3948_v23 = vpack.c.bf16 %v1201_v14, %v1200_v5  ;;  %v948_v25 = vadd.f32 %v4936_v43, %v685_v16  ;;  %v4374_v13 = vld [vmem:[#allocation2 + $0x208] sm:$0xff]  }
  0xbb   :  { %v1203_v24 = vmax.f32 %v947_v15, 0.0  ;;  %v688_v26 = vmul.f32 %v4933_v41, %v3393_v17  ;;  %v949_v27 = vadd.f32 %v4936_v43, %v686_v19  ;;  %v3397_v29 = vunpack.c.h.bf16 %v4368_v9 }
  0xbc   :  { %v950_v28 = vadd.f32 %v4936_v43, %v687_v20  ;;  %v689_v30 = vmul.f32 %v4933_v41, %v3396_v21  ;;  %4491 = vst [vmem:[#allocation8 + $0x1b8] sm:$0xff] %v3948_v23   ;;  %v1204_v33 = vmax.f32 %v948_v25, 0.0  ;;  %v3400_v35 = vunpack.c.l.bf16 %v4369_v22 }
  0xbd   :  { %v3953_v32 = vpack.c.bf16 %v1203_v24, %v1202_v18  ;;  %v951_v34 = vadd.f32 %v4936_v43, %v688_v26  ;;  %v1205_v36 = vmax.f32 %v949_v27, 0.0  ;;  %v690_v38 = vmul.f32 %v4933_v41, %v3397_v29  ;;  %v4375_v18 = vld [vmem:[#allocation2 + $0x210] sm:$0xff]   ;;  %v4376_v27 = vld [vmem:[#allocation2 + $0x218] sm:$0xff]  }
  0xbe   :  { %v1206_v37 = vmax.f32 %v950_v28, 0.0  ;;  %v952_v39 = vadd.f32 %v4936_v43, %v689_v30  ;;  %v3401_v42 = vunpack.c.h.bf16 %v4369_v22  ;;  %v691_v44 = vmul.f32 %v4933_v41, %v3400_v35 }
  0xbf   :  { %4492 = vst [vmem:[#allocation8 + $0x1c0] sm:$0xff] %v3953_v32   ;;  %v1207_v40 = vmax.f32 %v951_v34, 0.0  ;;  %v3404_v45 = vunpack.c.l.bf16 %v4370_v31  ;;  %v3958_v1 = vpack.c.bf16 %v1205_v36, %v1204_v33  ;;  %v953_v47 = vadd.f32 %v4936_v43, %v690_v38 }
  0xc0   :  { %v1208_v48 = vmax.f32 %v952_v39, 0.0  ;;  %v3405_v49 = vunpack.c.h.bf16 %v4370_v31  ;;  %v692_v51 = vmul.f32 %v4933_v41, %v3401_v42  ;;  %v954_v52 = vadd.f32 %v4936_v43, %v691_v44 }
  0xc1   :  { %v3963_v50 = vpack.c.bf16 %v1207_v40, %v1206_v37  ;;  %v693_v53 = vmul.f32 %v4933_v41, %v3404_v45  ;;  %4493 = vst [vmem:[#allocation8 + $0x1c8] sm:$0xff] %v3958_v1   ;;  %v1209_v54 = vmax.f32 %v953_v47, 0.0  ;;  %v3408_v56 = vunpack.c.l.bf16 %v4371_v46  ;;  %v4377_v40 = vld [vmem:[#allocation2 + $0x220] sm:$0xff]  }
  0xc2   :  { %v694_v55 = vmul.f32 %v4933_v41, %v3405_v49  ;;  %v3409_v57 = vunpack.c.h.bf16 %v4371_v46  ;;  %v955_v58 = vadd.f32 %v4936_v43, %v692_v51  ;;  %v1210_v59 = vmax.f32 %v954_v52, 0.0 }
  0xc3   :  { %4494 = vst [vmem:[#allocation8 + $0x1d0] sm:$0xff] %v3963_v50   ;;  %v956_v60 = vadd.f32 %v4936_v43, %v693_v53  ;;  %v3412_v61 = vunpack.c.l.bf16 %v4372_v7  ;;  %v3968_v63 = vpack.c.bf16 %v1209_v54, %v1208_v48  ;;  %v695_v2 = vmul.f32 %v4933_v41, %v3408_v56 }
  0xc4   :  { %v957_v0 = vadd.f32 %v4936_v43, %v694_v55  ;;  %v696_v3 = vmul.f32 %v4933_v41, %v3409_v57  ;;  %v1211_v4 = vmax.f32 %v955_v58, 0.0  ;;  %v3413_v6 = vunpack.c.h.bf16 %v4372_v7  ;;  %v4378_v7 = vld [vmem:[#allocation2 + $0x228] sm:$0xff]  }
  0xc5   :  { %v1212_v5 = vmax.f32 %v956_v60, 0.0  ;;  %v697_v8 = vmul.f32 %v4933_v41, %v3412_v61  ;;  %4495 = vst [vmem:[#allocation8 + $0x1d8] sm:$0xff] %v3968_v63   ;;  %v958_v10 = vadd.f32 %v4936_v43, %v695_v2  ;;  %v3416_v12 = vunpack.c.l.bf16 %v4373_v62 }
  0xc6   :  { %v1213_v9 = vmax.f32 %v957_v0, 0.0  ;;  %v959_v11 = vadd.f32 %v4936_v43, %v696_v3  ;;  %v3973_v14 = vpack.c.bf16 %v1211_v4, %v1210_v59  ;;  %v698_v15 = vmul.f32 %v4933_v41, %v3413_v6  ;;  %v4380_v4 = vld [vmem:[#allocation2 + $0x238] sm:$0xff]  }
  0xc7   :  { %v960_v16 = vadd.f32 %v4936_v43, %v697_v8  ;;  %v3417_v17 = vunpack.c.h.bf16 %v4373_v62  ;;  %v1214_v20 = vmax.f32 %v958_v10, 0.0  ;;  %v699_v22 = vmul.f32 %v4933_v41, %v3416_v12  ;;  %v4379_v62 = vld [vmem:[#allocation2 + $0x230] sm:$0xff]  }
  0xc8   :  { %v3978_v19 = vpack.c.bf16 %v1213_v9, %v1212_v5  ;;  %v1215_v21 = vmax.f32 %v959_v11, 0.0  ;;  %4496 = vst [vmem:[#allocation8 + $0x1e0] sm:$0xff] %v3973_v14   ;;  %v961_v23 = vadd.f32 %v4936_v43, %v698_v15  ;;  %v3420_v26 = vunpack.c.l.bf16 %v4374_v13 }
  0xc9   :  { %v1216_v24 = vmax.f32 %v960_v16, 0.0  ;;  %v700_v25 = vmul.f32 %v4933_v41, %v3417_v17  ;;  %v962_v29 = vadd.f32 %v4936_v43, %v699_v22  ;;  %v3421_v30 = vunpack.c.h.bf16 %v4374_v13 }
  0xca   :  { %4497 = vst [vmem:[#allocation8 + $0x1e8] sm:$0xff] %v3978_v19   ;;  %v3983_v28 = vpack.c.bf16 %v1215_v21, %v1214_v20  ;;  %v3424_v31 = vunpack.c.l.bf16 %v4375_v18  ;;  %v1217_v32 = vmax.f32 %v961_v23, 0.0  ;;  %v701_v34 = vmul.f32 %v4933_v41, %v3420_v26 }
  0xcb   :  { %v963_v33 = vadd.f32 %v4936_v43, %v700_v25  ;;  %v3425_v35 = vunpack.c.h.bf16 %v4375_v18  ;;  %v1218_v36 = vmax.f32 %v962_v29, 0.0  ;;  %v702_v37 = vmul.f32 %v4933_v41, %v3421_v30  ;;  %v4381_v18 = vld [vmem:[#allocation2 + $0x240] sm:$0xff]  }
  0xcc   :  { %4498 = vst [vmem:[#allocation8 + $0x1f0] sm:$0xff] %v3983_v28   ;;  %v703_v38 = vmul.f32 %v4933_v41, %v3424_v31  ;;  %v3428_v39 = vunpack.c.l.bf16 %v4376_v27  ;;  %v3988_v42 = vpack.c.bf16 %v1217_v32, %v1216_v24  ;;  %v964_v45 = vadd.f32 %v4936_v43, %v701_v34  ;;  %v4382_v31 = vld [vmem:[#allocation2 + $0x248] sm:$0xff]  }
  0xcd   :  { %v1219_v44 = vmax.f32 %v963_v33, 0.0  ;;  %v704_v46 = vmul.f32 %v4933_v41, %v3425_v35  ;;  %v965_v1 = vadd.f32 %v4936_v43, %v702_v37  ;;  %v3429_v48 = vunpack.c.h.bf16 %v4376_v27 }
  0xce   :  { %v966_v47 = vadd.f32 %v4936_v43, %v703_v38  ;;  %v705_v49 = vmul.f32 %v4933_v41, %v3428_v39  ;;  %4499 = vst [vmem:[#allocation8 + $0x1f8] sm:$0xff] %v3988_v42   ;;  %v1220_v51 = vmax.f32 %v964_v45, 0.0  ;;  %v3432_v53 = vunpack.c.l.bf16 %v4377_v40 }
  0xcf   :  { %v3993_v50 = vpack.c.bf16 %v1219_v44, %v1218_v36  ;;  %v967_v52 = vadd.f32 %v4936_v43, %v704_v46  ;;  %v1221_v54 = vmax.f32 %v965_v1, 0.0  ;;  %v706_v56 = vmul.f32 %v4933_v41, %v3429_v48  ;;  %v4383_v36 = vld [vmem:[#allocation2 + $0x250] sm:$0xff]   ;;  %v4384_v1 = vld [vmem:[#allocation2 + $0x258] sm:$0xff]  }
  0xd0   :  { %v1222_v55 = vmax.f32 %v966_v47, 0.0  ;;  %v968_v57 = vadd.f32 %v4936_v43, %v705_v49  ;;  %v3433_v59 = vunpack.c.h.bf16 %v4377_v40  ;;  %v707_v60 = vmul.f32 %v4933_v41, %v3432_v53 }
  0xd1   :  { %4500 = vst [vmem:[#allocation8 + $0x200] sm:$0xff] %v3993_v50   ;;  %v1223_v58 = vmax.f32 %v967_v52, 0.0  ;;  %v3436_v61 = vunpack.c.l.bf16 %v4378_v7  ;;  %v3998_v63 = vpack.c.bf16 %v1221_v54, %v1220_v51  ;;  %v969_v0 = vadd.f32 %v4936_v43, %v706_v56 }
  0xd2   :  { %v1224_v2 = vmax.f32 %v968_v57, 0.0  ;;  %v3437_v3 = vunpack.c.h.bf16 %v4378_v7  ;;  %v708_v6 = vmul.f32 %v4933_v41, %v3433_v59  ;;  %v970_v8 = vadd.f32 %v4936_v43, %v707_v60 }
  0xd3   :  { %v4003_v5 = vpack.c.bf16 %v1223_v58, %v1222_v55  ;;  %v709_v9 = vmul.f32 %v4933_v41, %v3436_v61  ;;  %4501 = vst [vmem:[#allocation8 + $0x208] sm:$0xff] %v3998_v63   ;;  %v1225_v10 = vmax.f32 %v969_v0, 0.0  ;;  %v3440_v12 = vunpack.c.l.bf16 %v4379_v62  ;;  %v4385_v58 = vld [vmem:[#allocation2 + $0x260] sm:$0xff]  }
  0xd4   :  { %v710_v11 = vmul.f32 %v4933_v41, %v3437_v3  ;;  %v3441_v13 = vunpack.c.h.bf16 %v4379_v62  ;;  %v971_v14 = vadd.f32 %v4936_v43, %v708_v6  ;;  %v1226_v15 = vmax.f32 %v970_v8, 0.0 }
  0xd5   :  { %4502 = vst [vmem:[#allocation8 + $0x210] sm:$0xff] %v4003_v5   ;;  %v972_v16 = vadd.f32 %v4936_v43, %v709_v9  ;;  %v3444_v17 = vunpack.c.l.bf16 %v4380_v4  ;;  %v4008_v19 = vpack.c.bf16 %v1225_v10, %v1224_v2  ;;  %v711_v21 = vmul.f32 %v4933_v41, %v3440_v12 }
  0xd6   :  { %v973_v20 = vadd.f32 %v4936_v43, %v710_v11  ;;  %v712_v22 = vmul.f32 %v4933_v41, %v3441_v13  ;;  %v1227_v23 = vmax.f32 %v971_v14, 0.0  ;;  %v3445_v25 = vunpack.c.h.bf16 %v4380_v4  ;;  %v4386_v4 = vld [vmem:[#allocation2 + $0x268] sm:$0xff]  }
  0xd7   :  { %v1228_v24 = vmax.f32 %v972_v16, 0.0  ;;  %v713_v26 = vmul.f32 %v4933_v41, %v3444_v17  ;;  %4503 = vst [vmem:[#allocation8 + $0x218] sm:$0xff] %v4008_v19   ;;  %v974_v28 = vadd.f32 %v4936_v43, %v711_v21  ;;  %v3448_v30 = vunpack.c.l.bf16 %v4381_v18 }
  0xd8   :  { %v1229_v27 = vmax.f32 %v973_v20, 0.0  ;;  %v975_v29 = vadd.f32 %v4936_v43, %v712_v22  ;;  %v4013_v32 = vpack.c.bf16 %v1227_v23, %v1226_v15  ;;  %v714_v33 = vmul.f32 %v4933_v41, %v3445_v25  ;;  %v4388_v23 = vld [vmem:[#allocation2 + $0x278] sm:$0xff]  }
  0xd9   :  { %v976_v34 = vadd.f32 %v4936_v43, %v713_v26  ;;  %v3449_v35 = vunpack.c.h.bf16 %v4381_v18  ;;  %v1230_v38 = vmax.f32 %v974_v28, 0.0  ;;  %v715_v40 = vmul.f32 %v4933_v41, %v3448_v30  ;;  %v4387_v18 = vld [vmem:[#allocation2 + $0x270] sm:$0xff]  }
  0xda   :  { %v4018_v37 = vpack.c.bf16 %v1229_v27, %v1228_v24  ;;  %v1231_v39 = vmax.f32 %v975_v29, 0.0  ;;  %4504 = vst [vmem:[#allocation8 + $0x220] sm:$0xff] %v4013_v32   ;;  %v977_v42 = vadd.f32 %v4936_v43, %v714_v33  ;;  %v3452_v46 = vunpack.c.l.bf16 %v4382_v31 }
  0xdb   :  { %v1232_v44 = vmax.f32 %v976_v34, 0.0  ;;  %v716_v45 = vmul.f32 %v4933_v41, %v3449_v35  ;;  %v978_v48 = vadd.f32 %v4936_v43, %v715_v40  ;;  %v3453_v49 = vunpack.c.h.bf16 %v4382_v31 }
  0xdc   :  { %4505 = vst [vmem:[#allocation8 + $0x228] sm:$0xff] %v4018_v37   ;;  %v4023_v47 = vpack.c.bf16 %v1231_v39, %v1230_v38  ;;  %v3456_v7 = vunpack.c.l.bf16 %v4383_v36  ;;  %v1233_v50 = vmax.f32 %v977_v42, 0.0  ;;  %v717_v52 = vmul.f32 %v4933_v41, %v3452_v46 }
  0xdd   :  { %v979_v51 = vadd.f32 %v4936_v43, %v716_v45  ;;  %v3457_v53 = vunpack.c.h.bf16 %v4383_v36  ;;  %v1234_v54 = vmax.f32 %v978_v48, 0.0  ;;  %v718_v55 = vmul.f32 %v4933_v41, %v3453_v49  ;;  %v4389_v36 = vld [vmem:[#allocation2 + $0x280] sm:$0xff]  }
  0xde   :  { %4506 = vst [vmem:[#allocation8 + $0x230] sm:$0xff] %v4023_v47   ;;  %v719_v56 = vmul.f32 %v4933_v41, %v3456_v7  ;;  %v3460_v57 = vunpack.c.l.bf16 %v4384_v1  ;;  %v4028_v59 = vpack.c.bf16 %v1233_v50, %v1232_v44  ;;  %v980_v61 = vadd.f32 %v4936_v43, %v717_v52  ;;  %v4390_v7 = vld [vmem:[#allocation2 + $0x288] sm:$0xff]  }
  0xdf   :  { %v1235_v60 = vmax.f32 %v979_v51, 0.0  ;;  %v720_v62 = vmul.f32 %v4933_v41, %v3457_v53  ;;  %v981_v63 = vadd.f32 %v4936_v43, %v718_v55  ;;  %v3461_v2 = vunpack.c.h.bf16 %v4384_v1 }
  0xe0   :  { %v982_v0 = vadd.f32 %v4936_v43, %v719_v56  ;;  %v721_v3 = vmul.f32 %v4933_v41, %v3460_v57  ;;  %4507 = vst [vmem:[#allocation8 + $0x238] sm:$0xff] %v4028_v59   ;;  %v1236_v6 = vmax.f32 %v980_v61, 0.0  ;;  %v3464_v9 = vunpack.c.l.bf16 %v4385_v58 }
  0xe1   :  { %v4033_v5 = vpack.c.bf16 %v1235_v60, %v1234_v54  ;;  %v983_v8 = vadd.f32 %v4936_v43, %v720_v62  ;;  %v1237_v10 = vmax.f32 %v981_v63, 0.0  ;;  %v722_v12 = vmul.f32 %v4933_v41, %v3461_v2  ;;  %v4391_v54 = vld [vmem:[#allocation2 + $0x290] sm:$0xff]   ;;  %v4392_v63 = vld [vmem:[#allocation2 + $0x298] sm:$0xff]  }
  0xe2   :  { %v1238_v11 = vmax.f32 %v982_v0, 0.0  ;;  %v984_v13 = vadd.f32 %v4936_v43, %v721_v3  ;;  %v3465_v15 = vunpack.c.h.bf16 %v4385_v58  ;;  %v723_v16 = vmul.f32 %v4933_v41, %v3464_v9 }
  0xe3   :  { %4508 = vst [vmem:[#allocation8 + $0x240] sm:$0xff] %v4033_v5   ;;  %v1239_v14 = vmax.f32 %v983_v8, 0.0  ;;  %v3468_v17 = vunpack.c.l.bf16 %v4386_v4  ;;  %v4038_v19 = vpack.c.bf16 %v1237_v10, %v1236_v6  ;;  %v985_v20 = vadd.f32 %v4936_v43, %v722_v12 }
  0xe4   :  { %v1240_v21 = vmax.f32 %v984_v13, 0.0  ;;  %v3469_v22 = vunpack.c.h.bf16 %v4386_v4  ;;  %v724_v25 = vmul.f32 %v4933_v41, %v3465_v15  ;;  %v986_v26 = vadd.f32 %v4936_v43, %v723_v16 }
  0xe5   :  { %v4043_v24 = vpack.c.bf16 %v1239_v14, %v1238_v11  ;;  %v725_v27 = vmul.f32 %v4933_v41, %v3468_v17  ;;  %4509 = vst [vmem:[#allocation8 + $0x248] sm:$0xff] %v4038_v19   ;;  %v1241_v28 = vmax.f32 %v985_v20, 0.0  ;;  %v3472_v30 = vunpack.c.l.bf16 %v4387_v18  ;;  %v4393_v14 = vld [vmem:[#allocation2 + $0x2a0] sm:$0xff]  }
  0xe6   :  { %v726_v29 = vmul.f32 %v4933_v41, %v3469_v22  ;;  %v3473_v31 = vunpack.c.h.bf16 %v4387_v18  ;;  %v987_v32 = vadd.f32 %v4936_v43, %v724_v25  ;;  %v1242_v33 = vmax.f32 %v986_v26, 0.0 }
  0xe7   :  { %4510 = vst [vmem:[#allocation8 + $0x250] sm:$0xff] %v4043_v24   ;;  %v988_v34 = vadd.f32 %v4936_v43, %v725_v27  ;;  %v3476_v35 = vunpack.c.l.bf16 %v4388_v23  ;;  %v4048_v37 = vpack.c.bf16 %v1241_v28, %v1240_v21  ;;  %v727_v39 = vmul.f32 %v4933_v41, %v3472_v30 }
  0xe8   :  { %v989_v38 = vadd.f32 %v4936_v43, %v726_v29  ;;  %v728_v40 = vmul.f32 %v4933_v41, %v3473_v31  ;;  %v1243_v42 = vmax.f32 %v987_v32, 0.0  ;;  %v3477_v45 = vunpack.c.h.bf16 %v4388_v23  ;;  %v4394_v23 = vld [vmem:[#allocation2 + $0x2a8] sm:$0xff]  }
  0xe9   :  { %v1244_v44 = vmax.f32 %v988_v34, 0.0  ;;  %v729_v46 = vmul.f32 %v4933_v41, %v3476_v35  ;;  %4511 = vst [vmem:[#allocation8 + $0x258] sm:$0xff] %v4048_v37   ;;  %v990_v47 = vadd.f32 %v4936_v43, %v727_v39  ;;  %v3480_v49 = vunpack.c.l.bf16 %v4389_v36 }
  0xea   :  { %v1245_v1 = vmax.f32 %v989_v38, 0.0  ;;  %v991_v48 = vadd.f32 %v4936_v43, %v728_v40  ;;  %v4053_v50 = vpack.c.bf16 %v1243_v42, %v1242_v33  ;;  %v730_v51 = vmul.f32 %v4933_v41, %v3477_v45  ;;  %v4396_v42 = vld [vmem:[#allocation2 + $0x2b8] sm:$0xff]  }
  0xeb   :  { %v992_v52 = vadd.f32 %v4936_v43, %v729_v46  ;;  %v3481_v53 = vunpack.c.h.bf16 %v4389_v36  ;;  %v1246_v56 = vmax.f32 %v990_v47, 0.0  ;;  %v731_v58 = vmul.f32 %v4933_v41, %v3480_v49  ;;  %v4395_v36 = vld [vmem:[#allocation2 + $0x2b0] sm:$0xff]  }
  0xec   :  { %v4058_v55 = vpack.c.bf16 %v1245_v1, %v1244_v44  ;;  %v1247_v57 = vmax.f32 %v991_v48, 0.0  ;;  %4512 = vst [vmem:[#allocation8 + $0x260] sm:$0xff] %v4053_v50   ;;  %v993_v59 = vadd.f32 %v4936_v43, %v730_v51  ;;  %v3484_v62 = vunpack.c.l.bf16 %v4390_v7 }
  0xed   :  { %v1248_v60 = vmax.f32 %v992_v52, 0.0  ;;  %v732_v61 = vmul.f32 %v4933_v41, %v3481_v53  ;;  %v994_v2 = vadd.f32 %v4936_v43, %v731_v58  ;;  %v3485_v3 = vunpack.c.h.bf16 %v4390_v7 }
  0xee   :  { %4513 = vst [vmem:[#allocation8 + $0x268] sm:$0xff] %v4058_v55   ;;  %v4063_v0 = vpack.c.bf16 %v1247_v57, %v1246_v56  ;;  %v3488_v4 = vunpack.c.l.bf16 %v4391_v54  ;;  %v1249_v5 = vmax.f32 %v993_v59, 0.0  ;;  %v733_v8 = vmul.f32 %v4933_v41, %v3484_v62 }
  0xef   :  { %v995_v6 = vadd.f32 %v4936_v43, %v732_v61  ;;  %v3489_v9 = vunpack.c.h.bf16 %v4391_v54  ;;  %v1250_v10 = vmax.f32 %v994_v2, 0.0  ;;  %v734_v11 = vmul.f32 %v4933_v41, %v3485_v3  ;;  %v4397_v54 = vld [vmem:[#allocation2 + $0x2c0] sm:$0xff]  }
  0xf0   :  { %4514 = vst [vmem:[#allocation8 + $0x270] sm:$0xff] %v4063_v0   ;;  %v735_v12 = vmul.f32 %v4933_v41, %v3488_v4  ;;  %v3492_v13 = vunpack.c.l.bf16 %v4392_v63  ;;  %v4068_v15 = vpack.c.bf16 %v1249_v5, %v1248_v60  ;;  %v996_v17 = vadd.f32 %v4936_v43, %v733_v8  ;;  %v4398_v4 = vld [vmem:[#allocation2 + $0x2c8] sm:$0xff]  }
  0xf1   :  { %v1251_v16 = vmax.f32 %v995_v6, 0.0  ;;  %v736_v18 = vmul.f32 %v4933_v41, %v3489_v9  ;;  %v997_v19 = vadd.f32 %v4936_v43, %v734_v11  ;;  %v3493_v21 = vunpack.c.h.bf16 %v4392_v63 }
  0xf2   :  { %v998_v20 = vadd.f32 %v4936_v43, %v735_v12  ;;  %v737_v22 = vmul.f32 %v4933_v41, %v3492_v13  ;;  %4515 = vst [vmem:[#allocation8 + $0x278] sm:$0xff] %v4068_v15   ;;  %v1252_v25 = vmax.f32 %v996_v17, 0.0  ;;  %v3496_v27 = vunpack.c.l.bf16 %v4393_v14 }
  0xf3   :  { %v4073_v24 = vpack.c.bf16 %v1251_v16, %v1250_v10  ;;  %v999_v26 = vadd.f32 %v4936_v43, %v736_v18  ;;  %v1253_v28 = vmax.f32 %v997_v19, 0.0  ;;  %v738_v30 = vmul.f32 %v4933_v41, %v3493_v21  ;;  %v4399_v10 = vld [vmem:[#allocation2 + $0x2d0] sm:$0xff]   ;;  %v4400_v19 = vld [vmem:[#allocation2 + $0x2d8] sm:$0xff]  }
  0xf4   :  { %v1254_v29 = vmax.f32 %v998_v20, 0.0  ;;  %v1000_v31 = vadd.f32 %v4936_v43, %v737_v22  ;;  %v3497_v33 = vunpack.c.h.bf16 %v4393_v14  ;;  %v739_v34 = vmul.f32 %v4933_v41, %v3496_v27 }
  0xf5   :  { %4516 = vst [vmem:[#allocation8 + $0x280] sm:$0xff] %v4073_v24   ;;  %v1255_v32 = vmax.f32 %v999_v26, 0.0  ;;  %v3500_v35 = vunpack.c.l.bf16 %v4394_v23  ;;  %v4078_v37 = vpack.c.bf16 %v1253_v28, %v1252_v25  ;;  %v1001_v38 = vadd.f32 %v4936_v43, %v738_v30 }
  0xf6   :  { %v1256_v39 = vmax.f32 %v1000_v31, 0.0  ;;  %v3501_v40 = vunpack.c.h.bf16 %v4394_v23  ;;  %v740_v45 = vmul.f32 %v4933_v41, %v3497_v33  ;;  %v1002_v46 = vadd.f32 %v4936_v43, %v739_v34 }
  0xf7   :  { %v4083_v44 = vpack.c.bf16 %v1255_v32, %v1254_v29  ;;  %v741_v1 = vmul.f32 %v4933_v41, %v3500_v35  ;;  %4517 = vst [vmem:[#allocation8 + $0x288] sm:$0xff] %v4078_v37   ;;  %v1257_v47 = vmax.f32 %v1001_v38, 0.0  ;;  %v3504_v49 = vunpack.c.l.bf16 %v4395_v36  ;;  %v4401_v32 = vld [vmem:[#allocation2 + $0x2e0] sm:$0xff]  }
  0xf8   :  { %v742_v48 = vmul.f32 %v4933_v41, %v3501_v40  ;;  %v3505_v7 = vunpack.c.h.bf16 %v4395_v36  ;;  %v1003_v50 = vadd.f32 %v4936_v43, %v740_v45  ;;  %v1258_v51 = vmax.f32 %v1002_v46, 0.0 }
  0xf9   :  { %4518 = vst [vmem:[#allocation8 + $0x290] sm:$0xff] %v4083_v44   ;;  %v1004_v52 = vadd.f32 %v4936_v43, %v741_v1  ;;  %v3508_v53 = vunpack.c.l.bf16 %v4396_v42  ;;  %v4088_v55 = vpack.c.bf16 %v1257_v47, %v1256_v39  ;;  %v743_v57 = vmul.f32 %v4933_v41, %v3504_v49 }
  0xfa   :  { %v1005_v56 = vadd.f32 %v4936_v43, %v742_v48  ;;  %v744_v58 = vmul.f32 %v4933_v41, %v3505_v7  ;;  %v1259_v59 = vmax.f32 %v1003_v50, 0.0  ;;  %v3509_v61 = vunpack.c.h.bf16 %v4396_v42  ;;  %v4402_v42 = vld [vmem:[#allocation2 + $0x2e8] sm:$0xff]  }
  0xfb   :  { %v1260_v60 = vmax.f32 %v1004_v52, 0.0  ;;  %v745_v62 = vmul.f32 %v4933_v41, %v3508_v53  ;;  %4519 = vst [vmem:[#allocation8 + $0x298] sm:$0xff] %v4088_v55   ;;  %v1006_v0 = vadd.f32 %v4936_v43, %v743_v57  ;;  %v3512_v3 = vunpack.c.l.bf16 %v4397_v54 }
  0xfc   :  { %v1261_v63 = vmax.f32 %v1005_v56, 0.0  ;;  %v1007_v2 = vadd.f32 %v4936_v43, %v744_v58  ;;  %v4093_v5 = vpack.c.bf16 %v1259_v59, %v1258_v51  ;;  %v746_v6 = vmul.f32 %v4933_v41, %v3509_v61  ;;  %v4404_v59 = vld [vmem:[#allocation2 + $0x2f8] sm:$0xff]  }
  0xfd   :  { %v1008_v8 = vadd.f32 %v4936_v43, %v745_v62  ;;  %v3513_v9 = vunpack.c.h.bf16 %v4397_v54  ;;  %v1262_v12 = vmax.f32 %v1006_v0, 0.0  ;;  %v747_v14 = vmul.f32 %v4933_v41, %v3512_v3  ;;  %v4403_v54 = vld [vmem:[#allocation2 + $0x2f0] sm:$0xff]  }
  0xfe   :  { %v4098_v11 = vpack.c.bf16 %v1261_v63, %v1260_v60  ;;  %v1263_v13 = vmax.f32 %v1007_v2, 0.0  ;;  %4520 = vst [vmem:[#allocation8 + $0x2a0] sm:$0xff] %v4093_v5   ;;  %v1009_v15 = vadd.f32 %v4936_v43, %v746_v6  ;;  %v3516_v18 = vunpack.c.l.bf16 %v4398_v4 }
  0xff   :  { %v1264_v16 = vmax.f32 %v1008_v8, 0.0  ;;  %v748_v17 = vmul.f32 %v4933_v41, %v3513_v9  ;;  %v1010_v21 = vadd.f32 %v4936_v43, %v747_v14  ;;  %v3517_v22 = vunpack.c.h.bf16 %v4398_v4  ;;  %v5126_v14 = vld [vmem:[#allocation5] ss:$0 sm:$0xff] }
 0x100   :  { %4521 = vst [vmem:[#allocation8 + $0x2a8] sm:$0xff] %v4098_v11   ;;  %v4103_v20 = vpack.c.bf16 %v1263_v13, %v1262_v12  ;;  %v3520_v23 = vunpack.c.l.bf16 %v4399_v10  ;;  %v1265_v24 = vmax.f32 %v1009_v15, 0.0  ;;  %v749_v26 = vmul.f32 %v4933_v41, %v3516_v18  ;;  %v5123_v12 = vld [vmem:[#allocation7] ss:$0 sm:$0xff] }
 0x101   :  { %v1011_v25 = vadd.f32 %v4936_v43, %v748_v17  ;;  %v3521_v27 = vunpack.c.h.bf16 %v4399_v10  ;;  %v1266_v28 = vmax.f32 %v1010_v21, 0.0  ;;  %v750_v29 = vmul.f32 %v4933_v41, %v3517_v22  ;;  %v4405_v10 = vld [vmem:[#allocation2 + $0x300] sm:$0xff]  }
 0x102   :  { %4522 = vst [vmem:[#allocation8 + $0x2b0] sm:$0xff] %v4103_v20   ;;  %v751_v30 = vmul.f32 %v4933_v41, %v3520_v23  ;;  %v3524_v31 = vunpack.c.l.bf16 %v4400_v19  ;;  %v4108_v33 = vpack.c.bf16 %v1265_v24, %v1264_v16  ;;  %v1012_v35 = vadd.f32 %v4936_v43, %v749_v26  ;;  %v4406_v23 = vld [vmem:[#allocation2 + $0x308] sm:$0xff]  }
 0x103   :  { %v1267_v34 = vmax.f32 %v1011_v25, 0.0  ;;  %v752_v36 = vmul.f32 %v4933_v41, %v3521_v27  ;;  %v1013_v37 = vadd.f32 %v4936_v43, %v750_v29  ;;  %v3525_v39 = vunpack.c.h.bf16 %v4400_v19 }
 0x104   :  { %v1014_v38 = vadd.f32 %v4936_v43, %v751_v30  ;;  %v753_v40 = vmul.f32 %v4933_v41, %v3524_v31  ;;  %4523 = vst [vmem:[#allocation8 + $0x2b8] sm:$0xff] %v4108_v33   ;;  %v1268_v45 = vmax.f32 %v1012_v35, 0.0  ;;  %v3528_v1 = vunpack.c.l.bf16 %v4401_v32 }
 0x105   :  { %v4113_v44 = vpack.c.bf16 %v1267_v34, %v1266_v28  ;;  %v1015_v46 = vadd.f32 %v4936_v43, %v752_v36  ;;  %v1269_v47 = vmax.f32 %v1013_v37, 0.0  ;;  %v754_v49 = vmul.f32 %v4933_v41, %v3525_v39  ;;  %v4407_v28 = vld [vmem:[#allocation2 + $0x310] sm:$0xff]   ;;  %v4408_v37 = vld [vmem:[#allocation2 + $0x318] sm:$0xff]  }
 0x106   :  { %v1270_v48 = vmax.f32 %v1014_v38, 0.0  ;;  %v1016_v7 = vadd.f32 %v4936_v43, %v753_v40  ;;  %v3529_v51 = vunpack.c.h.bf16 %v4401_v32  ;;  %v755_v52 = vmul.f32 %v4933_v41, %v3528_v1 }
 0x107   :  { %4524 = vst [vmem:[#allocation8 + $0x2c0] sm:$0xff] %v4113_v44   ;;  %v1271_v50 = vmax.f32 %v1015_v46, 0.0  ;;  %v3532_v53 = vunpack.c.l.bf16 %v4402_v42  ;;  %v4118_v55 = vpack.c.bf16 %v1269_v47, %v1268_v45  ;;  %v1017_v56 = vadd.f32 %v4936_v43, %v754_v49 }
 0x108   :  { %v1272_v57 = vmax.f32 %v1016_v7, 0.0  ;;  %v3533_v58 = vunpack.c.h.bf16 %v4402_v42  ;;  %v756_v61 = vmul.f32 %v4933_v41, %v3529_v51  ;;  %v1018_v62 = vadd.f32 %v4936_v43, %v755_v52 }
 0x109   :  { %v4123_v60 = vpack.c.bf16 %v1271_v50, %v1270_v48  ;;  %v757_v63 = vmul.f32 %v4933_v41, %v3532_v53  ;;  %4525 = vst [vmem:[#allocation8 + $0x2c8] sm:$0xff] %v4118_v55   ;;  %v1273_v0 = vmax.f32 %v1017_v56, 0.0  ;;  %v3536_v3 = vunpack.c.l.bf16 %v4403_v54  ;;  %v4409_v50 = vld [vmem:[#allocation2 + $0x320] sm:$0xff]  }
 0x10a   :  { %v758_v2 = vmul.f32 %v4933_v41, %v3533_v58  ;;  %v3537_v4 = vunpack.c.h.bf16 %v4403_v54  ;;  %v1019_v5 = vadd.f32 %v4936_v43, %v756_v61  ;;  %v1274_v6 = vmax.f32 %v1018_v62, 0.0 }
 0x10b   :  { %4526 = vst [vmem:[#allocation8 + $0x2d0] sm:$0xff] %v4123_v60   ;;  %v1020_v8 = vadd.f32 %v4936_v43, %v757_v63  ;;  %v3540_v9 = vunpack.c.l.bf16 %v4404_v59  ;;  %v4128_v11 = vpack.c.bf16 %v1273_v0, %v1272_v57  ;;  %v759_v15 = vmul.f32 %v5126_v14, %v3536_v3 }
 0x10c   :  { %v1021_v13 = vadd.f32 %v5123_v12, %v758_v2  ;;  %v760_v41 = vmul.f32 %v5126_v14, %v3537_v4  ;;  %v1275_v16 = vmax.f32 %v1019_v5, 0.0  ;;  %v3541_v18 = vunpack.c.h.bf16 %v4404_v59  ;;  %v4410_v59 = vld [vmem:[#allocation2 + $0x328] sm:$0xff]  }
 0x10d   :  { %v1276_v17 = vmax.f32 %v1020_v8, 0.0  ;;  %v761_v19 = vmul.f32 %v5126_v14, %v3540_v9  ;;  %4527 = vst [vmem:[#allocation8 + $0x2d8] sm:$0xff] %v4128_v11   ;;  %v1022_v20 = vadd.f32 %v5123_v12, %v759_v15  ;;  %v3544_v22 = vunpack.c.l.bf16 %v4405_v10 }
 0x10e   :  { %v1277_v43 = vmax.f32 %v1021_v13, 0.0  ;;  %v1023_v21 = vadd.f32 %v5123_v12, %v760_v41  ;;  %v4133_v24 = vpack.c.bf16 %v1275_v16, %v1274_v6  ;;  %v762_v25 = vmul.f32 %v5126_v14, %v3541_v18  ;;  %v4412_v16 = vld [vmem:[#allocation2 + $0x338] sm:$0xff]  }
 0x10f   :  { %v1024_v26 = vadd.f32 %v5123_v12, %v761_v19  ;;  %v3545_v27 = vunpack.c.h.bf16 %v4405_v10  ;;  %v1278_v30 = vmax.f32 %v1022_v20, 0.0  ;;  %v763_v32 = vmul.f32 %v5126_v14, %v3544_v22  ;;  %v4411_v10 = vld [vmem:[#allocation2 + $0x330] sm:$0xff]  }
 0x110   :  { %v4138_v29 = vpack.c.bf16 %v1277_v43, %v1276_v17  ;;  %v1279_v31 = vmax.f32 %v1023_v21, 0.0  ;;  %4528 = vst [vmem:[#allocation8 + $0x2e0] sm:$0xff] %v4133_v24   ;;  %v1025_v33 = vadd.f32 %v5123_v12, %v762_v25  ;;  %v3548_v36 = vunpack.c.l.bf16 %v4406_v23 }
 0x111   :  { %v1280_v34 = vmax.f32 %v1024_v26, 0.0  ;;  %v764_v35 = vmul.f32 %v5126_v14, %v3545_v27  ;;  %v1026_v39 = vadd.f32 %v5123_v12, %v763_v32  ;;  %v3549_v40 = vunpack.c.h.bf16 %v4406_v23 }
 0x112   :  { %4529 = vst [vmem:[#allocation8 + $0x2e8] sm:$0xff] %v4138_v29   ;;  %v4143_v38 = vpack.c.bf16 %v1279_v31, %v1278_v30  ;;  %v3552_v42 = vunpack.c.l.bf16 %v4407_v28  ;;  %v1281_v44 = vmax.f32 %v1025_v33, 0.0  ;;  %v765_v46 = vmul.f32 %v5126_v14, %v3548_v36 }
 0x113   :  { %v1027_v45 = vadd.f32 %v5123_v12, %v764_v35  ;;  %v3553_v1 = vunpack.c.h.bf16 %v4407_v28  ;;  %v1282_v47 = vmax.f32 %v1026_v39, 0.0  ;;  %v766_v48 = vmul.f32 %v5126_v14, %v3549_v40  ;;  %v4413_v28 = vld [vmem:[#allocation2 + $0x340] sm:$0xff]  }
 0x114   :  { %4530 = vst [vmem:[#allocation8 + $0x2f0] sm:$0xff] %v4143_v38   ;;  %v767_v49 = vmul.f32 %v5126_v14, %v3552_v42  ;;  %v3556_v7 = vunpack.c.l.bf16 %v4408_v37  ;;  %v4148_v51 = vpack.c.bf16 %v1281_v44, %v1280_v34  ;;  %v1028_v53 = vadd.f32 %v5123_v12, %v765_v46  ;;  %v4414_v42 = vld [vmem:[#allocation2 + $0x348] sm:$0xff]  }
 0x115   :  { %v1283_v52 = vmax.f32 %v1027_v45, 0.0  ;;  %v768_v54 = vmul.f32 %v5126_v14, %v3553_v1  ;;  %v1029_v55 = vadd.f32 %v5123_v12, %v766_v48  ;;  %v3557_v57 = vunpack.c.h.bf16 %v4408_v37 }
 0x116   :  { %v1030_v56 = vadd.f32 %v5123_v12, %v767_v49  ;;  %v769_v58 = vmul.f32 %v5126_v14, %v3556_v7  ;;  %4531 = vst [vmem:[#allocation8 + $0x2f8] sm:$0xff] %v4148_v51   ;;  %v1284_v61 = vmax.f32 %v1028_v53, 0.0  ;;  %v3560_v63 = vunpack.c.l.bf16 %v4409_v50 }
 0x117   :  { %v4153_v60 = vpack.c.bf16 %v1283_v52, %v1282_v47  ;;  %v1031_v62 = vadd.f32 %v5123_v12, %v768_v54  ;;  %v1285_v0 = vmax.f32 %v1029_v55, 0.0  ;;  %v770_v3 = vmul.f32 %v5126_v14, %v3557_v57  ;;  %v4415_v47 = vld [vmem:[#allocation2 + $0x350] sm:$0xff]   ;;  %v4416_v55 = vld [vmem:[#allocation2 + $0x358] sm:$0xff]  }
 0x118   :  { %v1286_v2 = vmax.f32 %v1030_v56, 0.0  ;;  %v1032_v4 = vadd.f32 %v5123_v12, %v769_v58  ;;  %v3561_v6 = vunpack.c.h.bf16 %v4409_v50  ;;  %v771_v8 = vmul.f32 %v5126_v14, %v3560_v63 }
 0x119   :  { %4532 = vst [vmem:[#allocation8 + $0x300] sm:$0xff] %v4153_v60   ;;  %v1287_v5 = vmax.f32 %v1031_v62, 0.0  ;;  %v3564_v9 = vunpack.c.l.bf16 %v4410_v59  ;;  %v4158_v11 = vpack.c.bf16 %v1285_v0, %v1284_v61  ;;  %v1033_v13 = vadd.f32 %v5123_v12, %v770_v3 }
 0x11a   :  { %v1288_v15 = vmax.f32 %v1032_v4, 0.0  ;;  %v3565_v41 = vunpack.c.h.bf16 %v4410_v59  ;;  %v772_v18 = vmul.f32 %v5126_v14, %v3561_v6  ;;  %v1034_v19 = vadd.f32 %v5123_v12, %v771_v8 }
 0x11b   :  { %v4163_v17 = vpack.c.bf16 %v1287_v5, %v1286_v2  ;;  %v773_v43 = vmul.f32 %v5126_v14, %v3564_v9  ;;  %4533 = vst [vmem:[#allocation8 + $0x308] sm:$0xff] %v4158_v11   ;;  %v1289_v20 = vmax.f32 %v1033_v13, 0.0  ;;  %v3568_v22 = vunpack.c.l.bf16 %v4411_v10  ;;  %v4417_v5 = vld [vmem:[#allocation2 + $0x360] sm:$0xff]  }
 0x11c   :  { %v774_v21 = vmul.f32 %v5126_v14, %v3565_v41  ;;  %v3569_v23 = vunpack.c.h.bf16 %v4411_v10  ;;  %v1035_v24 = vadd.f32 %v5123_v12, %v772_v18  ;;  %v1290_v25 = vmax.f32 %v1034_v19, 0.0 }
 0x11d   :  { %4534 = vst [vmem:[#allocation8 + $0x310] sm:$0xff] %v4163_v17   ;;  %v1036_v26 = vadd.f32 %v5123_v12, %v773_v43  ;;  %v3572_v27 = vunpack.c.l.bf16 %v4412_v16  ;;  %v4168_v29 = vpack.c.bf16 %v1289_v20, %v1288_v15  ;;  %v775_v31 = vmul.f32 %v5126_v14, %v3568_v22 }
 0x11e   :  { %v1037_v30 = vadd.f32 %v5123_v12, %v774_v21  ;;  %v776_v32 = vmul.f32 %v5126_v14, %v3569_v23  ;;  %v1291_v33 = vmax.f32 %v1035_v24, 0.0  ;;  %v3573_v35 = vunpack.c.h.bf16 %v4412_v16  ;;  %v4418_v16 = vld [vmem:[#allocation2 + $0x368] sm:$0xff]  }
 0x11f   :  { %v1292_v34 = vmax.f32 %v1036_v26, 0.0  ;;  %v777_v36 = vmul.f32 %v5126_v14, %v3572_v27  ;;  %4535 = vst [vmem:[#allocation8 + $0x318] sm:$0xff] %v4168_v29   ;;  %v1038_v38 = vadd.f32 %v5123_v12, %v775_v31  ;;  %v3576_v40 = vunpack.c.l.bf16 %v4413_v28 }
 0x120   :  { %v1293_v37 = vmax.f32 %v1037_v30, 0.0  ;;  %v1039_v39 = vadd.f32 %v5123_v12, %v776_v32  ;;  %v4173_v44 = vpack.c.bf16 %v1291_v33, %v1290_v25  ;;  %v778_v45 = vmul.f32 %v5126_v14, %v3573_v35  ;;  %v4420_v33 = vld [vmem:[#allocation2 + $0x378] sm:$0xff]  }
 0x121   :  { %v1040_v46 = vadd.f32 %v5123_v12, %v777_v36  ;;  %v3577_v1 = vunpack.c.h.bf16 %v4413_v28  ;;  %v1294_v49 = vmax.f32 %v1038_v38, 0.0  ;;  %v779_v50 = vmul.f32 %v5126_v14, %v3576_v40  ;;  %v4419_v28 = vld [vmem:[#allocation2 + $0x370] sm:$0xff]  }
 0x122   :  { %v4178_v48 = vpack.c.bf16 %v1293_v37, %v1292_v34  ;;  %v1295_v7 = vmax.f32 %v1039_v39, 0.0  ;;  %4536 = vst [vmem:[#allocation8 + $0x320] sm:$0xff] %v4173_v44   ;;  %v1041_v51 = vadd.f32 %v5123_v12, %v778_v45  ;;  %v3580_v54 = vunpack.c.l.bf16 %v4414_v42 }
 0x123   :  { %v1296_v52 = vmax.f32 %v1040_v46, 0.0  ;;  %v780_v53 = vmul.f32 %v5126_v14, %v3577_v1  ;;  %v1042_v57 = vadd.f32 %v5123_v12, %v779_v50  ;;  %v3581_v58 = vunpack.c.h.bf16 %v4414_v42 }
 0x124   :  { %4537 = vst [vmem:[#allocation8 + $0x328] sm:$0xff] %v4178_v48   ;;  %v4183_v56 = vpack.c.bf16 %v1295_v7, %v1294_v49  ;;  %v3584_v59 = vunpack.c.l.bf16 %v4415_v47  ;;  %v1297_v60 = vmax.f32 %v1041_v51, 0.0  ;;  %v781_v62 = vmul.f32 %v5126_v14, %v3580_v54 }
 0x125   :  { %v1043_v61 = vadd.f32 %v5123_v12, %v780_v53  ;;  %v3585_v63 = vunpack.c.h.bf16 %v4415_v47  ;;  %v1298_v0 = vmax.f32 %v1042_v57, 0.0  ;;  %v782_v2 = vmul.f32 %v5126_v14, %v3581_v58  ;;  %v4421_v47 = vld [vmem:[#allocation2 + $0x380] sm:$0xff]  }
 0x126   :  { %4538 = vst [vmem:[#allocation8 + $0x330] sm:$0xff] %v4183_v56   ;;  %v783_v3 = vmul.f32 %v5126_v14, %v3584_v59  ;;  %v3588_v4 = vunpack.c.l.bf16 %v4416_v55  ;;  %v4188_v6 = vpack.c.bf16 %v1297_v60, %v1296_v52  ;;  %v1044_v9 = vadd.f32 %v5123_v12, %v781_v62  ;;  %v4422_v59 = vld [vmem:[#allocation2 + $0x388] sm:$0xff]  }
 0x127   :  { %v1299_v8 = vmax.f32 %v1043_v61, 0.0  ;;  %v784_v10 = vmul.f32 %v5126_v14, %v3585_v63  ;;  %v1045_v11 = vadd.f32 %v5123_v12, %v782_v2  ;;  %v3589_v15 = vunpack.c.h.bf16 %v4416_v55 }
 0x128   :  { %v1046_v13 = vadd.f32 %v5123_v12, %v783_v3  ;;  %v785_v41 = vmul.f32 %v5126_v14, %v3588_v4  ;;  %4539 = vst [vmem:[#allocation8 + $0x338] sm:$0xff] %v4188_v6   ;;  %v1300_v18 = vmax.f32 %v1044_v9, 0.0  ;;  %v3592_v43 = vunpack.c.l.bf16 %v4417_v5 }
 0x129   :  { %v4193_v17 = vpack.c.bf16 %v1299_v8, %v1298_v0  ;;  %v1047_v19 = vadd.f32 %v5123_v12, %v784_v10  ;;  %v1301_v20 = vmax.f32 %v1045_v11, 0.0  ;;  %v786_v22 = vmul.f32 %v5126_v14, %v3589_v15  ;;  %v4423_v0 = vld [vmem:[#allocation2 + $0x390] sm:$0xff]   ;;  %v4424_v11 = vld [vmem:[#allocation2 + $0x398] sm:$0xff]  }
 0x12a   :  { %v1302_v21 = vmax.f32 %v1046_v13, 0.0  ;;  %v1048_v23 = vadd.f32 %v5123_v12, %v785_v41  ;;  %v3593_v25 = vunpack.c.h.bf16 %v4417_v5  ;;  %v787_v26 = vmul.f32 %v5126_v14, %v3592_v43 }
 0x12b   :  { %4540 = vst [vmem:[#allocation8 + $0x340] sm:$0xff] %v4193_v17   ;;  %v1303_v24 = vmax.f32 %v1047_v19, 0.0  ;;  %v3596_v27 = vunpack.c.l.bf16 %v4418_v16  ;;  %v4198_v29 = vpack.c.bf16 %v1301_v20, %v1300_v18  ;;  %v1049_v30 = vadd.f32 %v5123_v12, %v786_v22 }
 0x12c   :  { %v1304_v31 = vmax.f32 %v1048_v23, 0.0  ;;  %v3597_v32 = vunpack.c.h.bf16 %v4418_v16  ;;  %v788_v35 = vmul.f32 %v5126_v14, %v3593_v25  ;;  %v1050_v36 = vadd.f32 %v5123_v12, %v787_v26 }
 0x12d   :  { %v4203_v34 = vpack.c.bf16 %v1303_v24, %v1302_v21  ;;  %v789_v37 = vmul.f32 %v5126_v14, %v3596_v27  ;;  %4541 = vst [vmem:[#allocation8 + $0x348] sm:$0xff] %v4198_v29   ;;  %v1305_v38 = vmax.f32 %v1049_v30, 0.0  ;;  %v3600_v40 = vunpack.c.l.bf16 %v4419_v28  ;;  %v4425_v24 = vld [vmem:[#allocation2 + $0x3a0] sm:$0xff]  }
 0x12e   :  { %v790_v39 = vmul.f32 %v5126_v14, %v3597_v32  ;;  %v3601_v42 = vunpack.c.h.bf16 %v4419_v28  ;;  %v1051_v44 = vadd.f32 %v5123_v12, %v788_v35  ;;  %v1306_v45 = vmax.f32 %v1050_v36, 0.0 }
 0x12f   :  { %4542 = vst [vmem:[#allocation8 + $0x350] sm:$0xff] %v4203_v34   ;;  %v1052_v46 = vadd.f32 %v5123_v12, %v789_v37  ;;  %v3604_v1 = vunpack.c.l.bf16 %v4420_v33  ;;  %v4208_v48 = vpack.c.bf16 %v1305_v38, %v1304_v31  ;;  %v791_v7 = vmul.f32 %v5126_v14, %v3600_v40 }
 0x130   :  { %v1053_v49 = vadd.f32 %v5123_v12, %v790_v39  ;;  %v792_v50 = vmul.f32 %v5126_v14, %v3601_v42  ;;  %v1307_v51 = vmax.f32 %v1051_v44, 0.0  ;;  %v3605_v53 = vunpack.c.h.bf16 %v4420_v33  ;;  %v4426_v33 = vld [vmem:[#allocation2 + $0x3a8] sm:$0xff]  }
 0x131   :  { %v1308_v52 = vmax.f32 %v1052_v46, 0.0  ;;  %v793_v54 = vmul.f32 %v5126_v14, %v3604_v1  ;;  %4543 = vst [vmem:[#allocation8 + $0x358] sm:$0xff] %v4208_v48   ;;  %v1054_v56 = vadd.f32 %v5123_v12, %v791_v7  ;;  %v3608_v58 = vunpack.c.l.bf16 %v4421_v47 }
 0x132   :  { %v1309_v55 = vmax.f32 %v1053_v49, 0.0  ;;  %v1055_v57 = vadd.f32 %v5123_v12, %v792_v50  ;;  %v4213_v60 = vpack.c.bf16 %v1307_v51, %v1306_v45  ;;  %v794_v61 = vmul.f32 %v5126_v14, %v3605_v53  ;;  %v4428_v51 = vld [vmem:[#allocation2 + $0x3b8] sm:$0xff]  }
 0x133   :  { %v1056_v62 = vadd.f32 %v5123_v12, %v793_v54  ;;  %v3609_v63 = vunpack.c.h.bf16 %v4421_v47  ;;  %v1310_v3 = vmax.f32 %v1054_v56, 0.0  ;;  %v795_v5 = vmul.f32 %v5126_v14, %v3608_v58  ;;  %v4427_v47 = vld [vmem:[#allocation2 + $0x3b0] sm:$0xff]  }
 0x134   :  { %v4218_v2 = vpack.c.bf16 %v1309_v55, %v1308_v52  ;;  %v1311_v4 = vmax.f32 %v1055_v57, 0.0  ;;  %4544 = vst [vmem:[#allocation8 + $0x360] sm:$0xff] %v4213_v60   ;;  %v1057_v6 = vadd.f32 %v5123_v12, %v794_v61  ;;  %v3612_v10 = vunpack.c.l.bf16 %v4422_v59 }
 0x135   :  { %v1312_v8 = vmax.f32 %v1056_v62, 0.0  ;;  %v796_v9 = vmul.f32 %v5126_v14, %v3609_v63  ;;  %v1058_v15 = vadd.f32 %v5123_v12, %v795_v5  ;;  %v3613_v41 = vunpack.c.h.bf16 %v4422_v59 }
 0x136   :  { %4545 = vst [vmem:[#allocation8 + $0x368] sm:$0xff] %v4218_v2   ;;  %v4223_v13 = vpack.c.bf16 %v1311_v4, %v1310_v3  ;;  %v3616_v16 = vunpack.c.l.bf16 %v4423_v0  ;;  %v1313_v17 = vmax.f32 %v1057_v6, 0.0  ;;  %v797_v19 = vmul.f32 %v5126_v14, %v3612_v10 }
 0x137   :  { %v1059_v18 = vadd.f32 %v5123_v12, %v796_v9  ;;  %v3617_v43 = vunpack.c.h.bf16 %v4423_v0  ;;  %v1314_v20 = vmax.f32 %v1058_v15, 0.0  ;;  %v798_v21 = vmul.f32 %v5126_v14, %v3613_v41  ;;  %v4429_v0 = vld [vmem:[#allocation2 + $0x3c0] sm:$0xff]  }
 0x138   :  { %4546 = vst [vmem:[#allocation8 + $0x370] sm:$0xff] %v4223_v13   ;;  %v799_v22 = vmul.f32 %v5126_v14, %v3616_v16  ;;  %v3620_v23 = vunpack.c.l.bf16 %v4424_v11  ;;  %v4228_v25 = vpack.c.bf16 %v1313_v17, %v1312_v8  ;;  %v1060_v27 = vadd.f32 %v5123_v12, %v797_v19  ;;  %v4430_v16 = vld [vmem:[#allocation2 + $0x3c8] sm:$0xff]  }
 0x139   :  { %v1315_v26 = vmax.f32 %v1059_v18, 0.0  ;;  %v800_v28 = vmul.f32 %v5126_v14, %v3617_v43  ;;  %v1061_v29 = vadd.f32 %v5123_v12, %v798_v21  ;;  %v3621_v31 = vunpack.c.h.bf16 %v4424_v11 }
 0x13a   :  { %v1062_v30 = vadd.f32 %v5123_v12, %v799_v22  ;;  %v801_v32 = vmul.f32 %v5126_v14, %v3620_v23  ;;  %4547 = vst [vmem:[#allocation8 + $0x378] sm:$0xff] %v4228_v25   ;;  %v1316_v35 = vmax.f32 %v1060_v27, 0.0  ;;  %v3624_v37 = vunpack.c.l.bf16 %v4425_v24 }
 0x13b   :  { %v4233_v34 = vpack.c.bf16 %v1315_v26, %v1314_v20  ;;  %v1063_v36 = vadd.f32 %v5123_v12, %v800_v28  ;;  %v1317_v38 = vmax.f32 %v1061_v29, 0.0  ;;  %v802_v40 = vmul.f32 %v5126_v14, %v3621_v31  ;;  %v4431_v20 = vld [vmem:[#allocation2 + $0x3d0] sm:$0xff]   ;;  %v4432_v29 = vld [vmem:[#allocation2 + $0x3d8] sm:$0xff]  }
 0x13c   :  { %v1318_v39 = vmax.f32 %v1062_v30, 0.0  ;;  %v1064_v42 = vadd.f32 %v5123_v12, %v801_v32  ;;  %v3625_v45 = vunpack.c.h.bf16 %v4425_v24  ;;  %v803_v46 = vmul.f32 %v5126_v14, %v3624_v37 }
 0x13d   :  { %4548 = vst [vmem:[#allocation8 + $0x380] sm:$0xff] %v4233_v34   ;;  %v1319_v44 = vmax.f32 %v1063_v36, 0.0  ;;  %v3628_v1 = vunpack.c.l.bf16 %v4426_v33  ;;  %v4238_v48 = vpack.c.bf16 %v1317_v38, %v1316_v35  ;;  %v1065_v49 = vadd.f32 %v5123_v12, %v802_v40 }
 0x13e   :  { %v1320_v7 = vmax.f32 %v1064_v42, 0.0  ;;  %v3629_v50 = vunpack.c.h.bf16 %v4426_v33  ;;  %v804_v53 = vmul.f32 %v5126_v14, %v3625_v45  ;;  %v1066_v54 = vadd.f32 %v5123_v12, %v803_v46 }
 0x13f   :  { %v4243_v52 = vpack.c.bf16 %v1319_v44, %v1318_v39  ;;  %v805_v55 = vmul.f32 %v5126_v14, %v3628_v1  ;;  %4549 = vst [vmem:[#allocation8 + $0x388] sm:$0xff] %v4238_v48   ;;  %v1321_v56 = vmax.f32 %v1065_v49, 0.0  ;;  %v3632_v58 = vunpack.c.l.bf16 %v4427_v47  ;;  %v4433_v44 = vld [vmem:[#allocation2 + $0x3e0] sm:$0xff]  }
 0x140   :  { %v806_v57 = vmul.f32 %v5126_v14, %v3629_v50  ;;  %v3633_v59 = vunpack.c.h.bf16 %v4427_v47  ;;  %v1067_v60 = vadd.f32 %v5123_v12, %v804_v53  ;;  %v1322_v61 = vmax.f32 %v1066_v54, 0.0 }
 0x141   :  { %4550 = vst [vmem:[#allocation8 + $0x390] sm:$0xff] %v4243_v52   ;;  %v1068_v62 = vadd.f32 %v5123_v12, %v805_v55  ;;  %v3636_v63 = vunpack.c.l.bf16 %v4428_v51  ;;  %v4248_v2 = vpack.c.bf16 %v1321_v56, %v1320_v7  ;;  %v807_v4 = vmul.f32 %v5126_v14, %v3632_v58 }
 0x142   :  { %v1069_v3 = vadd.f32 %v5123_v12, %v806_v57  ;;  %v808_v5 = vmul.f32 %v5126_v14, %v3633_v59  ;;  %v1323_v6 = vmax.f32 %v1067_v60, 0.0  ;;  %v3637_v9 = vunpack.c.h.bf16 %v4428_v51  ;;  %v4434_v51 = vld [vmem:[#allocation2 + $0x3e8] sm:$0xff]  }
 0x143   :  { %v1324_v8 = vmax.f32 %v1068_v62, 0.0  ;;  %v809_v10 = vmul.f32 %v5126_v14, %v3636_v63  ;;  %4551 = vst [vmem:[#allocation8 + $0x398] sm:$0xff] %v4248_v2   ;;  %v1070_v13 = vadd.f32 %v5123_v12, %v807_v4  ;;  %v3640_v41 = vunpack.c.l.bf16 %v4429_v0 }
 0x144   :  { %v1325_v11 = vmax.f32 %v1069_v3, 0.0  ;;  %v1071_v15 = vadd.f32 %v5123_v12, %v808_v5  ;;  %v4253_v17 = vpack.c.bf16 %v1323_v6, %v1322_v61  ;;  %v810_v18 = vmul.f32 %v5126_v14, %v3637_v9  ;;  %v4436_v6 = vld [vmem:[#allocation2 + $0x3f8] sm:$0xff]  }
 0x145   :  { %v1072_v19 = vadd.f32 %v5123_v12, %v809_v10  ;;  %v3641_v43 = vunpack.c.h.bf16 %v4429_v0  ;;  %v1326_v22 = vmax.f32 %v1070_v13, 0.0  ;;  %v811_v24 = vmul.f32 %v5126_v14, %v3640_v41  ;;  %v4435_v0 = vld [vmem:[#allocation2 + $0x3f0] sm:$0xff]  }
 0x146   :  { %v4258_v21 = vpack.c.bf16 %v1325_v11, %v1324_v8  ;;  %v1327_v23 = vmax.f32 %v1071_v15, 0.0  ;;  %4552 = vst [vmem:[#allocation8 + $0x3a0] sm:$0xff] %v4253_v17   ;;  %v1073_v25 = vadd.f32 %v5123_v12, %v810_v18  ;;  %v3644_v28 = vunpack.c.l.bf16 %v4430_v16 }
 0x147   :  { %v1328_v26 = vmax.f32 %v1072_v19, 0.0  ;;  %v812_v27 = vmul.f32 %v5126_v14, %v3641_v43  ;;  %v1074_v31 = vadd.f32 %v5123_v12, %v811_v24  ;;  %v3645_v32 = vunpack.c.h.bf16 %v4430_v16 }
 0x148   :  { %4553 = vst [vmem:[#allocation8 + $0x3a8] sm:$0xff] %v4258_v21   ;;  %v4263_v30 = vpack.c.bf16 %v1327_v23, %v1326_v22  ;;  %v3648_v33 = vunpack.c.l.bf16 %v4431_v20  ;;  %v1329_v34 = vmax.f32 %v1073_v25, 0.0  ;;  %v813_v36 = vmul.f32 %v5126_v14, %v3644_v28 }
 0x149   :  { %v1075_v35 = vadd.f32 %v5123_v12, %v812_v27  ;;  %v3649_v37 = vunpack.c.h.bf16 %v4431_v20  ;;  %v1330_v38 = vmax.f32 %v1074_v31, 0.0  ;;  %v814_v39 = vmul.f32 %v5126_v14, %v3645_v32 }
 0x14a   :  { %4554 = vst [vmem:[#allocation8 + $0x3b0] sm:$0xff] %v4263_v30   ;;  %v815_v40 = vmul.f32 %v5126_v14, %v3648_v33  ;;  %v3652_v42 = vunpack.c.l.bf16 %v4432_v29  ;;  %v4268_v45 = vpack.c.bf16 %v1329_v34, %v1328_v26  ;;  %v1076_v1 = vadd.f32 %v5123_v12, %v813_v36 }
 0x14b   :  { %v1331_v46 = vmax.f32 %v1075_v35, 0.0  ;;  %v816_v47 = vmul.f32 %v5126_v14, %v3649_v37  ;;  %v1077_v48 = vadd.f32 %v5123_v12, %v814_v39  ;;  %v3653_v7 = vunpack.c.h.bf16 %v4432_v29 }
 0x14c   :  { %v1078_v49 = vadd.f32 %v5123_v12, %v815_v40  ;;  %v817_v50 = vmul.f32 %v5126_v14, %v3652_v42  ;;  %4555 = vst [vmem:[#allocation8 + $0x3b8] sm:$0xff] %v4268_v45   ;;  %v1332_v53 = vmax.f32 %v1076_v1, 0.0  ;;  %v3656_v55 = vunpack.c.l.bf16 %v4433_v44 }
 0x14d   :  { %v4273_v52 = vpack.c.bf16 %v1331_v46, %v1330_v38  ;;  %v1079_v54 = vadd.f32 %v5123_v12, %v816_v47  ;;  %v1333_v56 = vmax.f32 %v1077_v48, 0.0  ;;  %v818_v58 = vmul.f32 %v5126_v14, %v3653_v7 }
 0x14e   :  { %v1334_v57 = vmax.f32 %v1078_v49, 0.0  ;;  %v1080_v59 = vadd.f32 %v5123_v12, %v817_v50  ;;  %v3657_v61 = vunpack.c.h.bf16 %v4433_v44  ;;  %v819_v62 = vmul.f32 %v5126_v14, %v3656_v55 }
 0x14f   :  { %4556 = vst [vmem:[#allocation8 + $0x3c0] sm:$0xff] %v4273_v52   ;;  %v1335_v60 = vmax.f32 %v1079_v54, 0.0  ;;  %v3660_v63 = vunpack.c.l.bf16 %v4434_v51  ;;  %v4278_v2 = vpack.c.bf16 %v1333_v56, %v1332_v53  ;;  %v1081_v3 = vadd.f32 %v5123_v12, %v818_v58 }
 0x150   :  { %v1336_v4 = vmax.f32 %v1080_v59, 0.0  ;;  %v3661_v5 = vunpack.c.h.bf16 %v4434_v51  ;;  %v820_v9 = vmul.f32 %v5126_v14, %v3657_v61  ;;  %v1082_v10 = vadd.f32 %v5123_v12, %v819_v62 }
 0x151   :  { %v4283_v8 = vpack.c.bf16 %v1335_v60, %v1334_v57  ;;  %v821_v11 = vmul.f32 %v5126_v14, %v3660_v63  ;;  %4557 = vst [vmem:[#allocation8 + $0x3c8] sm:$0xff] %v4278_v2   ;;  %v1337_v13 = vmax.f32 %v1081_v3, 0.0  ;;  %v3664_v41 = vunpack.c.l.bf16 %v4435_v0 }
 0x152   :  { %v822_v15 = vmul.f32 %v5126_v14, %v3661_v5  ;;  %v3665_v16 = vunpack.c.h.bf16 %v4435_v0  ;;  %v1083_v17 = vadd.f32 %v5123_v12, %v820_v9  ;;  %v1338_v18 = vmax.f32 %v1082_v10, 0.0 }
 0x153   :  { %4558 = vst [vmem:[#allocation8 + $0x3d0] sm:$0xff] %v4283_v8   ;;  %v1084_v19 = vadd.f32 %v5123_v12, %v821_v11  ;;  %v3668_v43 = vunpack.c.l.bf16 %v4436_v6  ;;  %v4288_v20 = vpack.c.bf16 %v1337_v13, %v1336_v4  ;;  %v823_v22 = vmul.f32 %v5126_v14, %v3664_v41 }
 0x154   :  { %v1085_v21 = vadd.f32 %v5123_v12, %v822_v15  ;;  %v824_v23 = vmul.f32 %v5126_v14, %v3665_v16  ;;  %v1339_v24 = vmax.f32 %v1083_v17, 0.0  ;;  %v3669_v26 = vunpack.c.h.bf16 %v4436_v6 }
 0x155   :  { %v1340_v25 = vmax.f32 %v1084_v19, 0.0  ;;  %v825_v27 = vmul.f32 %v5126_v14, %v3668_v43  ;;  %4559 = vst [vmem:[#allocation8 + $0x3d8] sm:$0xff] %v4288_v20   ;;  %v1086_v29 = vadd.f32 %v5123_v12, %v823_v22 }
 0x156   :  { %v1341_v28 = vmax.f32 %v1085_v21, 0.0  ;;  %v1087_v30 = vadd.f32 %v5123_v12, %v824_v23  ;;  %v4293_v31 = vpack.c.bf16 %v1339_v24, %v1338_v18  ;;  %v826_v32 = vmul.f32 %v5126_v14, %v3669_v26 }
 0x157   :  { %v1088_v33 = vadd.f32 %v5123_v12, %v825_v27  ;;  %v1342_v35 = vmax.f32 %v1086_v29, 0.0 }
 0x158   :  { %v4298_v34 = vpack.c.bf16 %v1341_v28, %v1340_v25  ;;  %v1343_v36 = vmax.f32 %v1087_v30, 0.0  ;;  %4560 = vst [vmem:[#allocation8 + $0x3e0] sm:$0xff] %v4293_v31   ;;  %v1089_v37 = vadd.f32 %v5123_v12, %v826_v32 }
 0x159   :  { %v1344_v38 = vmax.f32 %v1088_v33, 0.0 }
 0x15a   :  { %4561 = vst [vmem:[#allocation8 + $0x3e8] sm:$0xff] %v4298_v34   ;;  %v4303_v39 = vpack.c.bf16 %v1343_v36, %v1342_v35  ;;  %v1345_v40 = vmax.f32 %v1089_v37, 0.0 }
 0x15c   :  { %4562 = vst [vmem:[#allocation8 + $0x3f0] sm:$0xff] %v4303_v39   ;;  %v4308_v42 = vpack.c.bf16 %v1345_v40, %v1344_v38 }
 0x15e   :  { %4563 = vst [vmem:[#allocation8 + $0x3f8] sm:$0xff] %v4308_v42  }
 0x15f   :  { %4651 = shalt.err (!%p4648_p0)
}
 0x160   :  { %s4652_s27 = scalar_lea.hbm %s5282_s3, 16384 }
 0x161   :  { %p4653_p1 = scmp.ne.s32.totalorder %s5282_s3, %s4652_s27  ;;  %p4656_p2 = scmp.lt.u32.totalorder %s4652_s27, %s5282_s3 }
 0x163   :  { %p4658_p3 = pnand %p4656_p2, %p4653_p1 }
 0x165   :  { %4661 = shalt.err (!%p4658_p3)
}
 0x166   :  { %2637 = dma.vmem_to_hbm [thread:$0]  %s2632_s23, 16384, %s5282_s3, [#allocation4], %s4670_s1, %s4670_s1, %s4671_s8  }
 0x167   :  { %4666 = dma.done.wait [#allocation4], 16384  }
 0x168   :  { %4667 = vsyncadd [#allocation4], 4294950912 }
 0x169   :  { %2641 = vsyncpa [#allocation3], 1 }
 0x16a   :  { %2642 = vsyncpa [#allocation6], 1 }
 0x16b   :  { %2643 = vsyncpa [#allocation4], 1 }

</bundles_post_ra>
